<compile_context>
chip_gen: v7x
topology: tpu7x:2x2x1
jax: 0.10.0
libtpu: 0.0.40
codegen_flags: <defaults>
</compile_context>

<pallas_src>
import numpy as np
import jax
import jax.numpy as jnp
from jax import lax
from jax.experimental import pallas as pl
from jax.experimental.pallas import tpu as pltpu

_INIT_RES = 1
NEG_SLOPE = 0.2   # LeakyReLU negative slope used by FirstBlock / ResBlock
_PAD = 16         # sublane-aligned guard rows for the shared conv scratch slab


# ----------------------------------------------------------------------------
# In-kernel helpers
# ----------------------------------------------------------------------------
def _leaky(x):
    return jnp.where(x > 0.0, x, NEG_SLOPE * x)


def _conv3x3(pad_ref, x, w_ref, h, w, masks):
    """3x3 same-padding conv on a flattened NHWC slab.

    x:      (M, Cin) value, rows ordered (b, h, w) row-major, M = B*h*w.
    w_ref:  ref of shape (9*Cin, Cout), rows ordered (ky, kx, cin).
    masks:  (row_ok, col_ok) dicts of (M, 1) bool masks for dy/dx in {-1, +1}.
    Returns (M, Cout) f32 (bias / activation applied by the caller).
    """
    m, cin = x.shape
    if h == 1 and w == 1:
        # Only the centre tap can hit a valid pixel at 1x1 spatial size.
        return jnp.dot(x, w_ref[4 * cin:5 * cin, :],
                       preferred_element_type=jnp.float32)

    cout = w_ref.shape[-1]
    # Stage the slab in the (pre-zeroed) padded VMEM scratch so each of the 9
    # taps is a plain static-slice load.  Guard / stale rows are masked below.
    pad_ref[_PAD:_PAD + m, 0:cin] = x

    row_ok, col_ok = masks
    acc = jnp.zeros((m, cout), jnp.float32)
    tap_idx = 0
    for dy in (-1, 0, 1):
        for dx in (-1, 0, 1):
            off = dy * w + dx
            tap = pad_ref[_PAD + off:_PAD + off + m, 0:cin]
            # Mask rows whose tap falls outside the image (this also kills any
            # cross-row / cross-batch / guard-row bleed of the flat-slab shift).
            valid = None
            if dy != 0:
                valid = row_ok[dy]
            if dx != 0:
                valid = col_ok[dx] if valid is None else (valid & col_ok[dx])
            if valid is not None:
                tap = jnp.where(valid, tap, 0.0)
            acc = acc + jnp.dot(
                tap, w_ref[tap_idx * cin:(tap_idx + 1) * cin, :],
                preferred_element_type=jnp.float32)
            tap_idx += 1
    return acc


# ----------------------------------------------------------------------------
# Host-side helpers
# ----------------------------------------------------------------------------
def _pool_matrix(batch, h, w):
    """(B*Ho*Wo, B*H*W) matrix implementing 2x2 / stride-2 average pooling on
    row-major flattened (b, h, w) slabs."""
    ho, wo = h // 2, w // 2
    p = np.zeros((batch * ho * wo, batch * h * w), np.float32)
    for b in range(batch):
        for i in range(ho):
            for j in range(wo):
                r = b * ho * wo + i * wo + j
                for di in range(2):
                    for dj in range(2):
                        c = b * h * w + (2 * i + di) * w + (2 * j + dj)
                        p[r, c] = 0.25
    return p


def build_fused_forward(params, batch, resolution):
    """Builds the single fused pallas_call running the whole encoder forward."""
    assert resolution & (resolution - 1) == 0, "resolution must be a power of 2"
    n_blocks = len(params)
    image_channels = int(params[0]['w'].shape[2])
    w_space_dim = int(params[-1]['w'].shape[1])

    arrays = []

    def add(a):
        arrays.append(jnp.asarray(a, jnp.float32))
        return len(arrays) - 1

    plan = []
    res = resolution
    max_cin = 8
    for idx, p in enumerate(params):
        step = {'kind': p['kind']}
        if 0 < idx < n_blocks - 1:                    # downsample before block
            step['pool'] = add(_pool_matrix(batch, res, res))
            res //= 2
        step['res'] = res
        if p['kind'] == 'first':
            w = p['w'] * p['scale']                   # fold scale into weights
            step['w'] = add(w.reshape(-1, w.shape[3]))
            if res > 1:
                max_cin = max(max_cin, int(w.shape[2]))
        elif p['kind'] == 'res':
            step['shortcut'] = p['add_shortcut']
            if p['add_shortcut']:
                wsc = p['w_sc'] * p['scale_sc']
                step['w_sc'] = add(wsc.reshape(wsc.shape[2], wsc.shape[3]))
            w1 = p['w1'] * p['mult1']                 # fold wscale into weights
            w2 = p['w2'] * p['mult2']
            step['w1'] = add(w1.reshape(-1, w1.shape[3]))
            step['b1'] = add(p['b1'].reshape(1, -1))
            step['w2'] = add(w2.reshape(-1, w2.shape[3]))
            step['b2'] = add(p['b2'].reshape(1, -1))
            if res > 1:
                max_cin = max(max_cin, int(w1.shape[2]), int(w2.shape[2]))
        else:  # 'last'
            step['w'] = add(p['w'] * p['scale'])
        plan.append(step)

    n_params = len(arrays)
    m0 = batch * resolution * resolution
    scratch_rows = m0 + 2 * _PAD

    def kernel(*refs):
        x_ref = refs[0]
        p_refs = refs[1:1 + n_params]
        o_ref = refs[1 + n_params]
        pad_ref = refs[2 + n_params]

        # Zero the shared conv scratch once; per-conv stores only touch the
        # interior rows and the tap masks neutralise anything stale / guard.
        pad_ref[...] = jnp.zeros_like(pad_ref)

        # Per-resolution boundary masks (trace-time cache; kernel traced once).
        mask_cache = {}

        def masks_for(m, h, w):
            key = (m, h, w)
            if key not in mask_cache:
                ridx = lax.broadcasted_iota(jnp.int32, (m, 1), 0)
                hw = jnp.bitwise_and(ridx, h * w - 1)   # h*W + w within image
                wp = jnp.bitwise_and(ridx, w - 1)       # w coordinate
                row_ok = {-1: hw >= w, 1: hw < (h - 1) * w}
                col_ok = {-1: wp >= 1, 1: wp < (w - 1)}
                mask_cache[key] = (row_ok, col_ok)
            return mask_cache[key]

        x = x_ref[...]                                 # (B*H*W, Cin) slab
        for step in plan:
            if 'pool' in step:                         # 2x2 avg pool as matmul
                x = jnp.dot(p_refs[step['pool']][...], x,
                            preferred_element_type=jnp.float32)
            hw_res = step['res']
            if hw_res > 1 and step['kind'] != 'last':
                masks = masks_for(int(x.shape[0]), hw_res, hw_res)
            else:
                masks = None
            if step['kind'] == 'first':
                x = _leaky(_conv3x3(pad_ref, x, p_refs[step['w']],
                                    hw_res, hw_res, masks))
            elif step['kind'] == 'res':
                if step['shortcut']:
                    # 1x1 conv shortcut (+ LeakyReLU, matching the module)
                    sc = _leaky(jnp.dot(x, p_refs[step['w_sc']][...],
                                        preferred_element_type=jnp.float32))
                else:
                    sc = x
                h1 = _leaky(_conv3x3(pad_ref, x, p_refs[step['w1']],
                                     hw_res, hw_res, masks)
                            + p_refs[step['b1']][...])
                x = _leaky(_conv3x3(pad_ref, h1, p_refs[step['w2']],
                                    hw_res, hw_res, masks)
                           + p_refs[step['b2']][...]) + sc
            else:  # 'last': final spatial is 1x1 (_INIT_RES == 1), so the
                   # NHWC slab (B, C) equals PyTorch's NCHW flatten.
                o_ref[...] = jnp.dot(x, p_refs[step['w']][...],
                                     preferred_element_type=jnp.float32)

    def full_spec(shape):
        nd = len(shape)
        return pl.BlockSpec(shape, lambda i, _nd=nd: (0,) * _nd)

    in_specs = ([full_spec((m0, image_channels))]
                + [full_spec(tuple(a.shape)) for a in arrays])

    fused = pl.pallas_call(
        kernel,
        out_shape=jax.ShapeDtypeStruct((batch, w_space_dim), jnp.float32),
        grid=(1,),                      # whole net in one block; for larger
        in_specs=in_specs,              # batches a "parallel" batch grid axis
        out_specs=full_spec((batch, w_space_dim)),  # would feed v7x's 2nd TC.
        scratch_shapes=[pltpu.VMEM((scratch_rows, max_cin), jnp.float32)],
        compiler_params=pltpu.CompilerParams(
            dimension_semantics=("arbitrary",)),
    )

    @jax.jit
    def forward(x_nchw):
        x = jnp.transpose(x_nchw, (0, 2, 3, 1)).astype(jnp.float32)
        x = x.reshape(m0, image_channels)              # lane-dense slab
        return fused(x, *arrays)

    return forward


# ----------------------------------------------------------------------------
# Parameter construction (deterministic, mirrors StyleGANEncoderNet.__init__
# shapes; use_wscale=False, use_bn=False)
# ----------------------------------------------------------------------------
def build_encoder_params(key, *, resolution=8, image_channels=3,
                         w_space_dim=32, base=16, cmax=64):
    num_blocks = int(np.log2(resolution)) + 2
    gain = np.sqrt(2.0)
    keys = list(jax.random.split(key, num_blocks * 6))

    def nxt():
        return keys.pop(0)

    params = []
    in_c, out_c = image_channels, base
    for b in range(num_blocks):
        if b == 0:
            # FirstBlock: conv3x3 no bias, scale=1.0 (use_wscale=False), lrelu
            w = jax.random.normal(nxt(), (3, 3, in_c, out_c), jnp.float32) * 0.1
            params.append(dict(kind='first', w=w, scale=1.0))
        elif b == num_blocks - 1:
            # LastBlock: Linear no bias, use_wscale=True, gain=1.0
            in_fc = in_c * _INIT_RES * _INIT_RES
            w = jax.random.normal(nxt(), (in_fc, w_space_dim), jnp.float32) * 0.1
            params.append(dict(kind='last', w=w, scale=1.0 / np.sqrt(in_fc)))
            out_c = w_space_dim
        else:
            # ResBlock
            hidden = min(in_c, out_c)
            blk = dict(kind='res', add_shortcut=(in_c != out_c))
            if in_c != out_c:
                blk['w_sc'] = jax.random.normal(nxt(), (1, 1, in_c, out_c),
                                                jnp.float32) * 0.1
                blk['scale_sc'] = 1.0                    # use_wscale=False
            scale1 = gain / np.sqrt(in_c * 9)            # use_wscale=False branch
            ws1 = gain / np.sqrt(in_c * 9)               # WScaleLayer scale
            scale2 = gain / np.sqrt(hidden * 9)
            ws2 = gain / np.sqrt(hidden * 9)
            blk.update(
                w1=jax.random.normal(nxt(), (3, 3, in_c, hidden), jnp.float32) * 0.1,
                b1=jax.random.normal(nxt(), (hidden,), jnp.float32) * 0.05,
                mult1=ws1 / scale1,          # conv1(x)/scale1 * ws1.scale
                w2=jax.random.normal(nxt(), (3, 3, hidden, out_c), jnp.float32) * 0.1,
                b2=jax.random.normal(nxt(), (out_c,), jnp.float32) * 0.05,
                mult2=ws2 / scale2,
            )
            params.append(blk)
        in_c = out_c
        out_c = min(out_c * 2, cmax)
    return params


# ----------------------------------------------------------------------------
# Pure-JAX reference (matches the PyTorch module semantics for this config)
# ----------------------------------------------------------------------------
def encoder_forward_ref(params, x_nchw):
    x = jnp.transpose(x_nchw, (0, 2, 3, 1)).astype(jnp.float32)

    def conv_ref(x, w, bias, mult):
        pad = w.shape[0] // 2
        y = lax.conv_general_dilated(x, w, (1, 1), [(pad, pad), (pad, pad)],
                                     dimension_numbers=('NHWC', 'HWIO', 'NHWC'))
        y = y * mult + bias.reshape(1, 1, 1, -1)
        return jnp.where(y > 0.0, y, NEG_SLOPE * y)

    def pool_ref(x):
        B, H, W, C = x.shape
        return x.reshape(B, H // 2, 2, W // 2, 2, C).mean(axis=(2, 4))

    n = len(params)
    for idx, p in enumerate(params):
        if 0 < idx < n - 1:
            x = pool_ref(x)
        if p['kind'] == 'first':
            x = conv_ref(x, p['w'], jnp.zeros((p['w'].shape[-1],)), p['scale'])
        elif p['kind'] == 'res':
            if p['add_shortcut']:
                y = conv_ref(x, p['w_sc'], jnp.zeros((p['w_sc'].shape[-1],)),
                             p['scale_sc'])
            else:
                y = x
            h = conv_ref(x, p['w1'], p['b1'], p['mult1'])
            x = conv_ref(h, p['w2'], p['b2'], p['mult2']) + y
        else:
            x = x.reshape(x.shape[0], -1) @ p['w'] * p['scale']
    return x


# TODO(synk): BatchNormLayer (use_bn=True path, incl. running-stat updates) is
# not implemented; default config uses use_bn=False -> Identity, matched here.

if __name__ == "__main__":
    key = jax.random.PRNGKey(0)
    kp, kx = jax.random.split(key)

    resolution = 8
    params = build_encoder_params(kp, resolution=resolution, image_channels=3,
                                  w_space_dim=32, base=16, cmax=64)

    # PyTorch-style NCHW input: [batch, image_channels, resolution, resolution]
    x = jax.random.normal(kx, (2, 3, resolution, resolution), jnp.float32)

    forward = build_fused_forward(params, batch=2, resolution=resolution)
    out = jax.block_until_ready(forward(x))

    ref = encoder_forward_ref(params, x)
    np.testing.assert_allclose(np.asarray(out), np.asarray(ref),
                               rtol=2e-4, atol=2e-4)
    assert out.shape == (2, 32)          # (batch, w_space_dim)
    print("KERNEL_OK")
</pallas_src>

<mosaic_0001>
module attributes {stable_mosaic.version = 11 : i64} {
  func.func @kernel(%arg0: i32, %arg1: memref<128x3xf32, #tpu.memory_space<vmem>>, %arg2: memref<27x16xf32, #tpu.memory_space<vmem>>, %arg3: memref<32x128xf32, #tpu.memory_space<vmem>>, %arg4: memref<16x32xf32, #tpu.memory_space<vmem>>, %arg5: memref<144x16xf32, #tpu.memory_space<vmem>>, %arg6: memref<1x16xf32, #tpu.memory_space<vmem>>, %arg7: memref<144x32xf32, #tpu.memory_space<vmem>>, %arg8: memref<1x32xf32, #tpu.memory_space<vmem>>, %arg9: memref<8x32xf32, #tpu.memory_space<vmem>>, %arg10: memref<32x64xf32, #tpu.memory_space<vmem>>, %arg11: memref<288x32xf32, #tpu.memory_space<vmem>>, %arg12: memref<1x32xf32, #tpu.memory_space<vmem>>, %arg13: memref<288x64xf32, #tpu.memory_space<vmem>>, %arg14: memref<1x64xf32, #tpu.memory_space<vmem>>, %arg15: memref<2x8xf32, #tpu.memory_space<vmem>>, %arg16: memref<576x64xf32, #tpu.memory_space<vmem>>, %arg17: memref<1x64xf32, #tpu.memory_space<vmem>>, %arg18: memref<576x64xf32, #tpu.memory_space<vmem>>, %arg19: memref<1x64xf32, #tpu.memory_space<vmem>>, %arg20: memref<64x32xf32, #tpu.memory_space<vmem>>, %arg21: memref<2x32xf32, #tpu.memory_space<vmem>>, %arg22: memref<160x32xf32, #tpu.memory_space<vmem>>) attributes {dimension_semantics = [#tpu.dimension_semantics<arbitrary>], iteration_bounds = array<i64: 1>, scalar_prefetch = 0 : i64, scratch_operands = 1 : i64, tpu.core_type = #tpu.core_type<tc>, window_params = [{pipeline_mode = #tpu.pipeline_mode<synchronous>, transform_indices = @transform_0, window_bounds = array<i64: 128, 3>}, {pipeline_mode = #tpu.pipeline_mode<synchronous>, transform_indices = @transform_1, window_bounds = array<i64: 27, 16>}, {pipeline_mode = #tpu.pipeline_mode<synchronous>, transform_indices = @transform_2, window_bounds = array<i64: 32, 128>}, {pipeline_mode = #tpu.pipeline_mode<synchronous>, transform_indices = @transform_3, window_bounds = array<i64: 16, 32>}, {pipeline_mode = #tpu.pipeline_mode<synchronous>, transform_indices = @transform_4, window_bounds = array<i64: 144, 16>}, {pipeline_mode = #tpu.pipeline_mode<synchronous>, transform_indices = @transform_5, window_bounds = array<i64: 1, 16>}, {pipeline_mode = #tpu.pipeline_mode<synchronous>, transform_indices = @transform_6, window_bounds = array<i64: 144, 32>}, {pipeline_mode = #tpu.pipeline_mode<synchronous>, transform_indices = @transform_7, window_bounds = array<i64: 1, 32>}, {pipeline_mode = #tpu.pipeline_mode<synchronous>, transform_indices = @transform_8, window_bounds = array<i64: 8, 32>}, {pipeline_mode = #tpu.pipeline_mode<synchronous>, transform_indices = @transform_9, window_bounds = array<i64: 32, 64>}, {pipeline_mode = #tpu.pipeline_mode<synchronous>, transform_indices = @transform_10, window_bounds = array<i64: 288, 32>}, {pipeline_mode = #tpu.pipeline_mode<synchronous>, transform_indices = @transform_11, window_bounds = array<i64: 1, 32>}, {pipeline_mode = #tpu.pipeline_mode<synchronous>, transform_indices = @transform_12, window_bounds = array<i64: 288, 64>}, {pipeline_mode = #tpu.pipeline_mode<synchronous>, transform_indices = @transform_13, window_bounds = array<i64: 1, 64>}, {pipeline_mode = #tpu.pipeline_mode<synchronous>, transform_indices = @transform_14, window_bounds = array<i64: 2, 8>}, {pipeline_mode = #tpu.pipeline_mode<synchronous>, transform_indices = @transform_15, window_bounds = array<i64: 576, 64>}, {pipeline_mode = #tpu.pipeline_mode<synchronous>, transform_indices = @transform_16, window_bounds = array<i64: 1, 64>}, {pipeline_mode = #tpu.pipeline_mode<synchronous>, transform_indices = @transform_17, window_bounds = array<i64: 576, 64>}, {pipeline_mode = #tpu.pipeline_mode<synchronous>, transform_indices = @transform_18, window_bounds = array<i64: 1, 64>}, {pipeline_mode = #tpu.pipeline_mode<synchronous>, transform_indices = @transform_19, window_bounds = array<i64: 64, 32>}, {pipeline_mode = #tpu.pipeline_mode<synchronous>, transform_indices = @transform_20, window_bounds = array<i64: 2, 32>}]} {
    %cst = arith.constant 0.000000e+00 : f32
    %0 = vector.broadcast %cst : f32 to vector<160x32xf32>
    %c0 = arith.constant 0 : index
    %c0_0 = arith.constant 0 : index
    %1 = vector.load %arg22[%c0, %c0_0] : memref<160x32xf32, #tpu.memory_space<vmem>>, vector<160x32xf32>
    tpu.vector_store %arg22[%c0, %c0_0], %0 {strides = array<i32>} : memref<160x32xf32, #tpu.memory_space<vmem>>, vector<160x32xf32>,
    %c0_1 = arith.constant 0 : index
    %c0_2 = arith.constant 0 : index
    %2 = vector.load %arg1[%c0_1, %c0_2] : memref<128x3xf32, #tpu.memory_space<vmem>>, vector<128x3xf32>
    %3 = tpu.iota {dimensions = array<i32: 0>} : vector<128x1xi32>
    %c63_i32 = arith.constant 63 : i32
    %4 = vector.broadcast %c63_i32 : i32 to vector<128x1xi32>
    %5 = arith.andi %3, %4 : vector<128x1xi32>
    %c7_i32 = arith.constant 7 : i32
    %6 = vector.broadcast %c7_i32 : i32 to vector<128x1xi32>
    %7 = arith.andi %3, %6 : vector<128x1xi32>
    %c8_i32 = arith.constant 8 : i32
    %8 = vector.broadcast %c8_i32 : i32 to vector<128x1xi32>
    %9 = arith.cmpi sge, %5, %8 : vector<128x1xi32>
    %c56_i32 = arith.constant 56 : i32
    %10 = vector.broadcast %c56_i32 : i32 to vector<128x1xi32>
    %11 = arith.cmpi slt, %5, %10 : vector<128x1xi32>
    %c1_i32 = arith.constant 1 : i32
    %12 = vector.broadcast %c1_i32 : i32 to vector<128x1xi32>
    %13 = arith.cmpi sge, %7, %12 : vector<128x1xi32>
    %c7_i32_3 = arith.constant 7 : i32
    %14 = vector.broadcast %c7_i32_3 : i32 to vector<128x1xi32>
    %15 = arith.cmpi slt, %7, %14 : vector<128x1xi32>
    %c16 = arith.constant 16 : index
    %c0_4 = arith.constant 0 : index
    %16 = vector.load %arg22[%c16, %c0_4] : memref<160x32xf32, #tpu.memory_space<vmem>>, vector<128x3xf32>
    tpu.vector_store %arg22[%c16, %c0_4], %2 {strides = array<i32>} : memref<160x32xf32, #tpu.memory_space<vmem>>, vector<128x3xf32>,
    %cst_5 = arith.constant 0.000000e+00 : f32
    %17 = vector.broadcast %cst_5 : f32 to vector<128x16xf32>
    %c7 = arith.constant 7 : index
    %c0_6 = arith.constant 0 : index
    %18 = vector.load %arg22[%c7, %c0_6] : memref<160x32xf32, #tpu.memory_space<vmem>>, vector<128x3xf32>
    %19 = arith.andi %9, %13 : vector<128x1xi1>
    %cst_7 = arith.constant 0.000000e+00 : f32
    %20 = vector.shape_cast %19 : vector<128x1xi1> to vector<128x1xi1>
    %21 = vector.broadcast %20 : vector<128x1xi1> to vector<128x3xi1>
    %22 = vector.broadcast %cst_7 : f32 to vector<128x3xf32>
    %23 = arith.select %21, %18, %22 : vector<128x3xi1>, vector<128x3xf32>
    %c0_8 = arith.constant 0 : index
    %c0_9 = arith.constant 0 : index
    %24 = vector.load %arg2[%c0_8, %c0_9] : memref<27x16xf32, #tpu.memory_space<vmem>>, vector<3x16xf32>
    %cst_10 = arith.constant dense<0.000000e+00> : vector<128x16xf32>
    %25 = tpu.matmul %23, %24, %cst_10 {dimension_numbers = #tpu.dot_dimension_numbers<[1], [0], [0], [1], [0, 0, 1, 1], [], []>} : vector<128x3xf32>, vector<3x16xf32>, vector<128x16xf32> -> vector<128x16xf32>
    %26 = arith.addf %17, %25 : vector<128x16xf32>
    %c8 = arith.constant 8 : index
    %c0_11 = arith.constant 0 : index
    %27 = vector.load %arg22[%c8, %c0_11] : memref<160x32xf32, #tpu.memory_space<vmem>>, vector<128x3xf32>
    %cst_12 = arith.constant 0.000000e+00 : f32
    %28 = vector.shape_cast %9 : vector<128x1xi1> to vector<128x1xi1>
    %29 = vector.broadcast %28 : vector<128x1xi1> to vector<128x3xi1>
    %30 = vector.broadcast %cst_12 : f32 to vector<128x3xf32>
    %31 = arith.select %29, %27, %30 : vector<128x3xi1>, vector<128x3xf32>
    %c3 = arith.constant 3 : index
    %c0_13 = arith.constant 0 : index
    %32 = vector.load %arg2[%c3, %c0_13] : memref<27x16xf32, #tpu.memory_space<vmem>>, vector<3x16xf32>
    %cst_14 = arith.constant dense<0.000000e+00> : vector<128x16xf32>
    %33 = tpu.matmul %31, %32, %cst_14 {dimension_numbers = #tpu.dot_dimension_numbers<[1], [0], [0], [1], [0, 0, 1, 1], [], []>} : vector<128x3xf32>, vector<3x16xf32>, vector<128x16xf32> -> vector<128x16xf32>
    %34 = arith.addf %26, %33 : vector<128x16xf32>
    %c9 = arith.constant 9 : index
    %c0_15 = arith.constant 0 : index
    %35 = vector.load %arg22[%c9, %c0_15] : memref<160x32xf32, #tpu.memory_space<vmem>>, vector<128x3xf32>
    %36 = arith.andi %9, %15 : vector<128x1xi1>
    %cst_16 = arith.constant 0.000000e+00 : f32
    %37 = vector.shape_cast %36 : vector<128x1xi1> to vector<128x1xi1>
    %38 = vector.broadcast %37 : vector<128x1xi1> to vector<128x3xi1>
    %39 = vector.broadcast %cst_16 : f32 to vector<128x3xf32>
    %40 = arith.select %38, %35, %39 : vector<128x3xi1>, vector<128x3xf32>
    %c6 = arith.constant 6 : index
    %c0_17 = arith.constant 0 : index
    %41 = vector.load %arg2[%c6, %c0_17] : memref<27x16xf32, #tpu.memory_space<vmem>>, vector<3x16xf32>
    %cst_18 = arith.constant dense<0.000000e+00> : vector<128x16xf32>
    %42 = tpu.matmul %40, %41, %cst_18 {dimension_numbers = #tpu.dot_dimension_numbers<[1], [0], [0], [1], [0, 0, 1, 1], [], []>} : vector<128x3xf32>, vector<3x16xf32>, vector<128x16xf32> -> vector<128x16xf32>
    %43 = arith.addf %34, %42 : vector<128x16xf32>
    %c15 = arith.constant 15 : index
    %c0_19 = arith.constant 0 : index
    %44 = vector.load %arg22[%c15, %c0_19] : memref<160x32xf32, #tpu.memory_space<vmem>>, vector<128x3xf32>
    %cst_20 = arith.constant 0.000000e+00 : f32
    %45 = vector.shape_cast %13 : vector<128x1xi1> to vector<128x1xi1>
    %46 = vector.broadcast %45 : vector<128x1xi1> to vector<128x3xi1>
    %47 = vector.broadcast %cst_20 : f32 to vector<128x3xf32>
    %48 = arith.select %46, %44, %47 : vector<128x3xi1>, vector<128x3xf32>
    %c9_21 = arith.constant 9 : index
    %c0_22 = arith.constant 0 : index
    %49 = vector.load %arg2[%c9_21, %c0_22] : memref<27x16xf32, #tpu.memory_space<vmem>>, vector<3x16xf32>
    %cst_23 = arith.constant dense<0.000000e+00> : vector<128x16xf32>
    %50 = tpu.matmul %48, %49, %cst_23 {dimension_numbers = #tpu.dot_dimension_numbers<[1], [0], [0], [1], [0, 0, 1, 1], [], []>} : vector<128x3xf32>, vector<3x16xf32>, vector<128x16xf32> -> vector<128x16xf32>
    %51 = arith.addf %43, %50 : vector<128x16xf32>
    %c16_24 = arith.constant 16 : index
    %c0_25 = arith.constant 0 : index
    %52 = vector.load %arg22[%c16_24, %c0_25] : memref<160x32xf32, #tpu.memory_space<vmem>>, vector<128x3xf32>
    %c12 = arith.constant 12 : index
    %c0_26 = arith.constant 0 : index
    %53 = vector.load %arg2[%c12, %c0_26] : memref<27x16xf32, #tpu.memory_space<vmem>>, vector<3x16xf32>
    %cst_27 = arith.constant dense<0.000000e+00> : vector<128x16xf32>
    %54 = tpu.matmul %52, %53, %cst_27 {dimension_numbers = #tpu.dot_dimension_numbers<[1], [0], [0], [1], [0, 0, 1, 1], [], []>} : vector<128x3xf32>, vector<3x16xf32>, vector<128x16xf32> -> vector<128x16xf32>
    %55 = arith.addf %51, %54 : vector<128x16xf32>
    %c17 = arith.constant 17 : index
    %c0_28 = arith.constant 0 : index
    %56 = vector.load %arg22[%c17, %c0_28] : memref<160x32xf32, #tpu.memory_space<vmem>>, vector<128x3xf32>
    %cst_29 = arith.constant 0.000000e+00 : f32
    %57 = vector.shape_cast %15 : vector<128x1xi1> to vector<128x1xi1>
    %58 = vector.broadcast %57 : vector<128x1xi1> to vector<128x3xi1>
    %59 = vector.broadcast %cst_29 : f32 to vector<128x3xf32>
    %60 = arith.select %58, %56, %59 : vector<128x3xi1>, vector<128x3xf32>
    %c15_30 = arith.constant 15 : index
    %c0_31 = arith.constant 0 : index
    %61 = vector.load %arg2[%c15_30, %c0_31] : memref<27x16xf32, #tpu.memory_space<vmem>>, vector<3x16xf32>
    %cst_32 = arith.constant dense<0.000000e+00> : vector<128x16xf32>
    %62 = tpu.matmul %60, %61, %cst_32 {dimension_numbers = #tpu.dot_dimension_numbers<[1], [0], [0], [1], [0, 0, 1, 1], [], []>} : vector<128x3xf32>, vector<3x16xf32>, vector<128x16xf32> -> vector<128x16xf32>
    %63 = arith.addf %55, %62 : vector<128x16xf32>
    %c23 = arith.constant 23 : index
    %c0_33 = arith.constant 0 : index
    %64 = vector.load %arg22[%c23, %c0_33] : memref<160x32xf32, #tpu.memory_space<vmem>>, vector<128x3xf32>
    %65 = arith.andi %11, %13 : vector<128x1xi1>
    %cst_34 = arith.constant 0.000000e+00 : f32
    %66 = vector.shape_cast %65 : vector<128x1xi1> to vector<128x1xi1>
    %67 = vector.broadcast %66 : vector<128x1xi1> to vector<128x3xi1>
    %68 = vector.broadcast %cst_34 : f32 to vector<128x3xf32>
    %69 = arith.select %67, %64, %68 : vector<128x3xi1>, vector<128x3xf32>
    %c18 = arith.constant 18 : index
    %c0_35 = arith.constant 0 : index
    %70 = vector.load %arg2[%c18, %c0_35] : memref<27x16xf32, #tpu.memory_space<vmem>>, vector<3x16xf32>
    %cst_36 = arith.constant dense<0.000000e+00> : vector<128x16xf32>
    %71 = tpu.matmul %69, %70, %cst_36 {dimension_numbers = #tpu.dot_dimension_numbers<[1], [0], [0], [1], [0, 0, 1, 1], [], []>} : vector<128x3xf32>, vector<3x16xf32>, vector<128x16xf32> -> vector<128x16xf32>
    %72 = arith.addf %63, %71 : vector<128x16xf32>
    %c24 = arith.constant 24 : index
    %c0_37 = arith.constant 0 : index
    %73 = vector.load %arg22[%c24, %c0_37] : memref<160x32xf32, #tpu.memory_space<vmem>>, vector<128x3xf32>
    %cst_38 = arith.constant 0.000000e+00 : f32
    %74 = vector.shape_cast %11 : vector<128x1xi1> to vector<128x1xi1>
    %75 = vector.broadcast %74 : vector<128x1xi1> to vector<128x3xi1>
    %76 = vector.broadcast %cst_38 : f32 to vector<128x3xf32>
    %77 = arith.select %75, %73, %76 : vector<128x3xi1>, vector<128x3xf32>
    %c21 = arith.constant 21 : index
    %c0_39 = arith.constant 0 : index
    %78 = vector.load %arg2[%c21, %c0_39] : memref<27x16xf32, #tpu.memory_space<vmem>>, vector<3x16xf32>
    %cst_40 = arith.constant dense<0.000000e+00> : vector<128x16xf32>
    %79 = tpu.matmul %77, %78, %cst_40 {dimension_numbers = #tpu.dot_dimension_numbers<[1], [0], [0], [1], [0, 0, 1, 1], [], []>} : vector<128x3xf32>, vector<3x16xf32>, vector<128x16xf32> -> vector<128x16xf32>
    %80 = arith.addf %72, %79 : vector<128x16xf32>
    %c25 = arith.constant 25 : index
    %c0_41 = arith.constant 0 : index
    %81 = vector.load %arg22[%c25, %c0_41] : memref<160x32xf32, #tpu.memory_space<vmem>>, vector<128x3xf32>
    %82 = arith.andi %11, %15 : vector<128x1xi1>
    %cst_42 = arith.constant 0.000000e+00 : f32
    %83 = vector.shape_cast %82 : vector<128x1xi1> to vector<128x1xi1>
    %84 = vector.broadcast %83 : vector<128x1xi1> to vector<128x3xi1>
    %85 = vector.broadcast %cst_42 : f32 to vector<128x3xf32>
    %86 = arith.select %84, %81, %85 : vector<128x3xi1>, vector<128x3xf32>
    %c24_43 = arith.constant 24 : index
    %c0_44 = arith.constant 0 : index
    %87 = vector.load %arg2[%c24_43, %c0_44] : memref<27x16xf32, #tpu.memory_space<vmem>>, vector<3x16xf32>
    %cst_45 = arith.constant dense<0.000000e+00> : vector<128x16xf32>
    %88 = tpu.matmul %86, %87, %cst_45 {dimension_numbers = #tpu.dot_dimension_numbers<[1], [0], [0], [1], [0, 0, 1, 1], [], []>} : vector<128x3xf32>, vector<3x16xf32>, vector<128x16xf32> -> vector<128x16xf32>
    %89 = arith.addf %80, %88 : vector<128x16xf32>
    %cst_46 = arith.constant 0.000000e+00 : f32
    %90 = vector.broadcast %cst_46 : f32 to vector<128x16xf32>
    %91 = arith.cmpf ogt, %89, %90 : vector<128x16xf32>
    %cst_47 = arith.constant 2.000000e-01 : f32
    %92 = vector.broadcast %cst_47 : f32 to vector<128x16xf32>
    %93 = arith.mulf %92, %89 : vector<128x16xf32>
    %94 = arith.select %91, %89, %93 : vector<128x16xi1>, vector<128x16xf32>
    %c0_48 = arith.constant 0 : index
    %c0_49 = arith.constant 0 : index
    %95 = vector.load %arg3[%c0_48, %c0_49] : memref<32x128xf32, #tpu.memory_space<vmem>>, vector<32x128xf32>
    %cst_50 = arith.constant dense<0.000000e+00> : vector<32x16xf32>
    %96 = tpu.matmul %95, %94, %cst_50 {dimension_numbers = #tpu.dot_dimension_numbers<[1], [0], [0], [1], [0, 0, 1, 1], [], []>} : vector<32x128xf32>, vector<128x16xf32>, vector<32x16xf32> -> vector<32x16xf32>
    %97 = tpu.iota {dimensions = array<i32: 0>} : vector<32x1xi32>
    %c15_i32 = arith.constant 15 : i32
    %98 = vector.broadcast %c15_i32 : i32 to vector<32x1xi32>
    %99 = arith.andi %97, %98 : vector<32x1xi32>
    %c3_i32 = arith.constant 3 : i32
    %100 = vector.broadcast %c3_i32 : i32 to vector<32x1xi32>
    %101 = arith.andi %97, %100 : vector<32x1xi32>
    %c4_i32 = arith.constant 4 : i32
    %102 = vector.broadcast %c4_i32 : i32 to vector<32x1xi32>
    %103 = arith.cmpi sge, %99, %102 : vector<32x1xi32>
    %c12_i32 = arith.constant 12 : i32
    %104 = vector.broadcast %c12_i32 : i32 to vector<32x1xi32>
    %105 = arith.cmpi slt, %99, %104 : vector<32x1xi32>
    %c1_i32_51 = arith.constant 1 : i32
    %106 = vector.broadcast %c1_i32_51 : i32 to vector<32x1xi32>
    %107 = arith.cmpi sge, %101, %106 : vector<32x1xi32>
    %c3_i32_52 = arith.constant 3 : i32
    %108 = vector.broadcast %c3_i32_52 : i32 to vector<32x1xi32>
    %109 = arith.cmpi slt, %101, %108 : vector<32x1xi32>
    %c0_53 = arith.constant 0 : index
    %c0_54 = arith.constant 0 : index
    %110 = vector.load %arg4[%c0_53, %c0_54] : memref<16x32xf32, #tpu.memory_space<vmem>>, vector<16x32xf32>
    %cst_55 = arith.constant dense<0.000000e+00> : vector<32x32xf32>
    %111 = tpu.matmul %96, %110, %cst_55 {dimension_numbers = #tpu.dot_dimension_numbers<[1], [0], [0], [1], [0, 0, 1, 1], [], []>} : vector<32x16xf32>, vector<16x32xf32>, vector<32x32xf32> -> vector<32x32xf32>
    %cst_56 = arith.constant 0.000000e+00 : f32
    %112 = vector.broadcast %cst_56 : f32 to vector<32x32xf32>
    %113 = arith.cmpf ogt, %111, %112 : vector<32x32xf32>
    %cst_57 = arith.constant 2.000000e-01 : f32
    %114 = vector.broadcast %cst_57 : f32 to vector<32x32xf32>
    %115 = arith.mulf %114, %111 : vector<32x32xf32>
    %116 = arith.select %113, %111, %115 : vector<32x32xi1>, vector<32x32xf32>
    %c16_58 = arith.constant 16 : index
    %c0_59 = arith.constant 0 : index
    %117 = vector.load %arg22[%c16_58, %c0_59] : memref<160x32xf32, #tpu.memory_space<vmem>>, vector<32x16xf32>
    tpu.vector_store %arg22[%c16_58, %c0_59], %96 {strides = array<i32>} : memref<160x32xf32, #tpu.memory_space<vmem>>, vector<32x16xf32>,
    %cst_60 = arith.constant 0.000000e+00 : f32
    %118 = vector.broadcast %cst_60 : f32 to vector<32x16xf32>
    %c11 = arith.constant 11 : index
    %c0_61 = arith.constant 0 : index
    %119 = vector.load %arg22[%c11, %c0_61] : memref<160x32xf32, #tpu.memory_space<vmem>>, vector<32x16xf32>
    %120 = arith.andi %103, %107 : vector<32x1xi1>
    %cst_62 = arith.constant 0.000000e+00 : f32
    %121 = vector.shape_cast %120 : vector<32x1xi1> to vector<32x1xi1>
    %122 = vector.broadcast %121 : vector<32x1xi1> to vector<32x16xi1>
    %123 = vector.broadcast %cst_62 : f32 to vector<32x16xf32>
    %124 = arith.select %122, %119, %123 : vector<32x16xi1>, vector<32x16xf32>
    %c0_63 = arith.constant 0 : index
    %c0_64 = arith.constant 0 : index
    %125 = vector.load %arg5[%c0_63, %c0_64] : memref<144x16xf32, #tpu.memory_space<vmem>>, vector<16x16xf32>
    %cst_65 = arith.constant dense<0.000000e+00> : vector<32x16xf32>
    %126 = tpu.matmul %124, %125, %cst_65 {dimension_numbers = #tpu.dot_dimension_numbers<[1], [0], [0], [1], [0, 0, 1, 1], [], []>} : vector<32x16xf32>, vector<16x16xf32>, vector<32x16xf32> -> vector<32x16xf32>
    %127 = arith.addf %118, %126 : vector<32x16xf32>
    %c12_66 = arith.constant 12 : index
    %c0_67 = arith.constant 0 : index
    %128 = vector.load %arg22[%c12_66, %c0_67] : memref<160x32xf32, #tpu.memory_space<vmem>>, vector<32x16xf32>
    %cst_68 = arith.constant 0.000000e+00 : f32
    %129 = vector.shape_cast %103 : vector<32x1xi1> to vector<32x1xi1>
    %130 = vector.broadcast %129 : vector<32x1xi1> to vector<32x16xi1>
    %131 = vector.broadcast %cst_68 : f32 to vector<32x16xf32>
    %132 = arith.select %130, %128, %131 : vector<32x16xi1>, vector<32x16xf32>
    %c16_69 = arith.constant 16 : index
    %c0_70 = arith.constant 0 : index
    %133 = vector.load %arg5[%c16_69, %c0_70] : memref<144x16xf32, #tpu.memory_space<vmem>>, vector<16x16xf32>
    %cst_71 = arith.constant dense<0.000000e+00> : vector<32x16xf32>
    %134 = tpu.matmul %132, %133, %cst_71 {dimension_numbers = #tpu.dot_dimension_numbers<[1], [0], [0], [1], [0, 0, 1, 1], [], []>} : vector<32x16xf32>, vector<16x16xf32>, vector<32x16xf32> -> vector<32x16xf32>
    %135 = arith.addf %127, %134 : vector<32x16xf32>
    %c13 = arith.constant 13 : index
    %c0_72 = arith.constant 0 : index
    %136 = vector.load %arg22[%c13, %c0_72] : memref<160x32xf32, #tpu.memory_space<vmem>>, vector<32x16xf32>
    %137 = arith.andi %103, %109 : vector<32x1xi1>
    %cst_73 = arith.constant 0.000000e+00 : f32
    %138 = vector.shape_cast %137 : vector<32x1xi1> to vector<32x1xi1>
    %139 = vector.broadcast %138 : vector<32x1xi1> to vector<32x16xi1>
    %140 = vector.broadcast %cst_73 : f32 to vector<32x16xf32>
    %141 = arith.select %139, %136, %140 : vector<32x16xi1>, vector<32x16xf32>
    %c32 = arith.constant 32 : index
    %c0_74 = arith.constant 0 : index
    %142 = vector.load %arg5[%c32, %c0_74] : memref<144x16xf32, #tpu.memory_space<vmem>>, vector<16x16xf32>
    %cst_75 = arith.constant dense<0.000000e+00> : vector<32x16xf32>
    %143 = tpu.matmul %141, %142, %cst_75 {dimension_numbers = #tpu.dot_dimension_numbers<[1], [0], [0], [1], [0, 0, 1, 1], [], []>} : vector<32x16xf32>, vector<16x16xf32>, vector<32x16xf32> -> vector<32x16xf32>
    %144 = arith.addf %135, %143 : vector<32x16xf32>
    %c15_76 = arith.constant 15 : index
    %c0_77 = arith.constant 0 : index
    %145 = vector.load %arg22[%c15_76, %c0_77] : memref<160x32xf32, #tpu.memory_space<vmem>>, vector<32x16xf32>
    %cst_78 = arith.constant 0.000000e+00 : f32
    %146 = vector.shape_cast %107 : vector<32x1xi1> to vector<32x1xi1>
    %147 = vector.broadcast %146 : vector<32x1xi1> to vector<32x16xi1>
    %148 = vector.broadcast %cst_78 : f32 to vector<32x16xf32>
    %149 = arith.select %147, %145, %148 : vector<32x16xi1>, vector<32x16xf32>
    %c48 = arith.constant 48 : index
    %c0_79 = arith.constant 0 : index
    %150 = vector.load %arg5[%c48, %c0_79] : memref<144x16xf32, #tpu.memory_space<vmem>>, vector<16x16xf32>
    %cst_80 = arith.constant dense<0.000000e+00> : vector<32x16xf32>
    %151 = tpu.matmul %149, %150, %cst_80 {dimension_numbers = #tpu.dot_dimension_numbers<[1], [0], [0], [1], [0, 0, 1, 1], [], []>} : vector<32x16xf32>, vector<16x16xf32>, vector<32x16xf32> -> vector<32x16xf32>
    %152 = arith.addf %144, %151 : vector<32x16xf32>
    %c16_81 = arith.constant 16 : index
    %c0_82 = arith.constant 0 : index
    %153 = vector.load %arg22[%c16_81, %c0_82] : memref<160x32xf32, #tpu.memory_space<vmem>>, vector<32x16xf32>
    %c64 = arith.constant 64 : index
    %c0_83 = arith.constant 0 : index
    %154 = vector.load %arg5[%c64, %c0_83] : memref<144x16xf32, #tpu.memory_space<vmem>>, vector<16x16xf32>
    %cst_84 = arith.constant dense<0.000000e+00> : vector<32x16xf32>
    %155 = tpu.matmul %153, %154, %cst_84 {dimension_numbers = #tpu.dot_dimension_numbers<[1], [0], [0], [1], [0, 0, 1, 1], [], []>} : vector<32x16xf32>, vector<16x16xf32>, vector<32x16xf32> -> vector<32x16xf32>
    %156 = arith.addf %152, %155 : vector<32x16xf32>
    %c17_85 = arith.constant 17 : index
    %c0_86 = arith.constant 0 : index
    %157 = vector.load %arg22[%c17_85, %c0_86] : memref<160x32xf32, #tpu.memory_space<vmem>>, vector<32x16xf32>
    %cst_87 = arith.constant 0.000000e+00 : f32
    %158 = vector.shape_cast %109 : vector<32x1xi1> to vector<32x1xi1>
    %159 = vector.broadcast %158 : vector<32x1xi1> to vector<32x16xi1>
    %160 = vector.broadcast %cst_87 : f32 to vector<32x16xf32>
    %161 = arith.select %159, %157, %160 : vector<32x16xi1>, vector<32x16xf32>
    %c80 = arith.constant 80 : index
    %c0_88 = arith.constant 0 : index
    %162 = vector.load %arg5[%c80, %c0_88] : memref<144x16xf32, #tpu.memory_space<vmem>>, vector<16x16xf32>
    %cst_89 = arith.constant dense<0.000000e+00> : vector<32x16xf32>
    %163 = tpu.matmul %161, %162, %cst_89 {dimension_numbers = #tpu.dot_dimension_numbers<[1], [0], [0], [1], [0, 0, 1, 1], [], []>} : vector<32x16xf32>, vector<16x16xf32>, vector<32x16xf32> -> vector<32x16xf32>
    %164 = arith.addf %156, %163 : vector<32x16xf32>
    %c19 = arith.constant 19 : index
    %c0_90 = arith.constant 0 : index
    %165 = vector.load %arg22[%c19, %c0_90] : memref<160x32xf32, #tpu.memory_space<vmem>>, vector<32x16xf32>
    %166 = arith.andi %105, %107 : vector<32x1xi1>
    %cst_91 = arith.constant 0.000000e+00 : f32
    %167 = vector.shape_cast %166 : vector<32x1xi1> to vector<32x1xi1>
    %168 = vector.broadcast %167 : vector<32x1xi1> to vector<32x16xi1>
    %169 = vector.broadcast %cst_91 : f32 to vector<32x16xf32>
    %170 = arith.select %168, %165, %169 : vector<32x16xi1>, vector<32x16xf32>
    %c96 = arith.constant 96 : index
    %c0_92 = arith.constant 0 : index
    %171 = vector.load %arg5[%c96, %c0_92] : memref<144x16xf32, #tpu.memory_space<vmem>>, vector<16x16xf32>
    %cst_93 = arith.constant dense<0.000000e+00> : vector<32x16xf32>
    %172 = tpu.matmul %170, %171, %cst_93 {dimension_numbers = #tpu.dot_dimension_numbers<[1], [0], [0], [1], [0, 0, 1, 1], [], []>} : vector<32x16xf32>, vector<16x16xf32>, vector<32x16xf32> -> vector<32x16xf32>
    %173 = arith.addf %164, %172 : vector<32x16xf32>
    %c20 = arith.constant 20 : index
    %c0_94 = arith.constant 0 : index
    %174 = vector.load %arg22[%c20, %c0_94] : memref<160x32xf32, #tpu.memory_space<vmem>>, vector<32x16xf32>
    %cst_95 = arith.constant 0.000000e+00 : f32
    %175 = vector.shape_cast %105 : vector<32x1xi1> to vector<32x1xi1>
    %176 = vector.broadcast %175 : vector<32x1xi1> to vector<32x16xi1>
    %177 = vector.broadcast %cst_95 : f32 to vector<32x16xf32>
    %178 = arith.select %176, %174, %177 : vector<32x16xi1>, vector<32x16xf32>
    %c112 = arith.constant 112 : index
    %c0_96 = arith.constant 0 : index
    %179 = vector.load %arg5[%c112, %c0_96] : memref<144x16xf32, #tpu.memory_space<vmem>>, vector<16x16xf32>
    %cst_97 = arith.constant dense<0.000000e+00> : vector<32x16xf32>
    %180 = tpu.matmul %178, %179, %cst_97 {dimension_numbers = #tpu.dot_dimension_numbers<[1], [0], [0], [1], [0, 0, 1, 1], [], []>} : vector<32x16xf32>, vector<16x16xf32>, vector<32x16xf32> -> vector<32x16xf32>
    %181 = arith.addf %173, %180 : vector<32x16xf32>
    %c21_98 = arith.constant 21 : index
    %c0_99 = arith.constant 0 : index
    %182 = vector.load %arg22[%c21_98, %c0_99] : memref<160x32xf32, #tpu.memory_space<vmem>>, vector<32x16xf32>
    %183 = arith.andi %105, %109 : vector<32x1xi1>
    %cst_100 = arith.constant 0.000000e+00 : f32
    %184 = vector.shape_cast %183 : vector<32x1xi1> to vector<32x1xi1>
    %185 = vector.broadcast %184 : vector<32x1xi1> to vector<32x16xi1>
    %186 = vector.broadcast %cst_100 : f32 to vector<32x16xf32>
    %187 = arith.select %185, %182, %186 : vector<32x16xi1>, vector<32x16xf32>
    %c128 = arith.constant 128 : index
    %c0_101 = arith.constant 0 : index
    %188 = vector.load %arg5[%c128, %c0_101] : memref<144x16xf32, #tpu.memory_space<vmem>>, vector<16x16xf32>
    %cst_102 = arith.constant dense<0.000000e+00> : vector<32x16xf32>
    %189 = tpu.matmul %187, %188, %cst_102 {dimension_numbers = #tpu.dot_dimension_numbers<[1], [0], [0], [1], [0, 0, 1, 1], [], []>} : vector<32x16xf32>, vector<16x16xf32>, vector<32x16xf32> -> vector<32x16xf32>
    %190 = arith.addf %181, %189 : vector<32x16xf32>
    %c0_103 = arith.constant 0 : index
    %c0_104 = arith.constant 0 : index
    %191 = vector.load %arg6[%c0_103, %c0_104] : memref<1x16xf32, #tpu.memory_space<vmem>>, vector<1x16xf32>
    %192 = vector.broadcast %191 : vector<1x16xf32> to vector<32x16xf32>
    %193 = arith.addf %190, %192 : vector<32x16xf32>
    %cst_105 = arith.constant 0.000000e+00 : f32
    %194 = vector.broadcast %cst_105 : f32 to vector<32x16xf32>
    %195 = arith.cmpf ogt, %193, %194 : vector<32x16xf32>
    %cst_106 = arith.constant 2.000000e-01 : f32
    %196 = vector.broadcast %cst_106 : f32 to vector<32x16xf32>
    %197 = arith.mulf %196, %193 : vector<32x16xf32>
    %198 = arith.select %195, %193, %197 : vector<32x16xi1>, vector<32x16xf32>
    %c16_107 = arith.constant 16 : index
    %c0_108 = arith.constant 0 : index
    %199 = vector.load %arg22[%c16_107, %c0_108] : memref<160x32xf32, #tpu.memory_space<vmem>>, vector<32x16xf32>
    tpu.vector_store %arg22[%c16_107, %c0_108], %198 {strides = array<i32>} : memref<160x32xf32, #tpu.memory_space<vmem>>, vector<32x16xf32>,
    %cst_109 = arith.constant 0.000000e+00 : f32
    %200 = vector.broadcast %cst_109 : f32 to vector<32x32xf32>
    %c11_110 = arith.constant 11 : index
    %c0_111 = arith.constant 0 : index
    %201 = vector.load %arg22[%c11_110, %c0_111] : memref<160x32xf32, #tpu.memory_space<vmem>>, vector<32x16xf32>
    %202 = arith.andi %103, %107 : vector<32x1xi1>
    %cst_112 = arith.constant 0.000000e+00 : f32
    %203 = vector.shape_cast %202 : vector<32x1xi1> to vector<32x1xi1>
    %204 = vector.broadcast %203 : vector<32x1xi1> to vector<32x16xi1>
    %205 = vector.broadcast %cst_112 : f32 to vector<32x16xf32>
    %206 = arith.select %204, %201, %205 : vector<32x16xi1>, vector<32x16xf32>
    %c0_113 = arith.constant 0 : index
    %c0_114 = arith.constant 0 : index
    %207 = vector.load %arg7[%c0_113, %c0_114] : memref<144x32xf32, #tpu.memory_space<vmem>>, vector<16x32xf32>
    %cst_115 = arith.constant dense<0.000000e+00> : vector<32x32xf32>
    %208 = tpu.matmul %206, %207, %cst_115 {dimension_numbers = #tpu.dot_dimension_numbers<[1], [0], [0], [1], [0, 0, 1, 1], [], []>} : vector<32x16xf32>, vector<16x32xf32>, vector<32x32xf32> -> vector<32x32xf32>
    %209 = arith.addf %200, %208 : vector<32x32xf32>
    %c12_116 = arith.constant 12 : index
    %c0_117 = arith.constant 0 : index
    %210 = vector.load %arg22[%c12_116, %c0_117] : memref<160x32xf32, #tpu.memory_space<vmem>>, vector<32x16xf32>
    %cst_118 = arith.constant 0.000000e+00 : f32
    %211 = vector.shape_cast %103 : vector<32x1xi1> to vector<32x1xi1>
    %212 = vector.broadcast %211 : vector<32x1xi1> to vector<32x16xi1>
    %213 = vector.broadcast %cst_118 : f32 to vector<32x16xf32>
    %214 = arith.select %212, %210, %213 : vector<32x16xi1>, vector<32x16xf32>
    %c16_119 = arith.constant 16 : index
    %c0_120 = arith.constant 0 : index
    %215 = vector.load %arg7[%c16_119, %c0_120] : memref<144x32xf32, #tpu.memory_space<vmem>>, vector<16x32xf32>
    %cst_121 = arith.constant dense<0.000000e+00> : vector<32x32xf32>
    %216 = tpu.matmul %214, %215, %cst_121 {dimension_numbers = #tpu.dot_dimension_numbers<[1], [0], [0], [1], [0, 0, 1, 1], [], []>} : vector<32x16xf32>, vector<16x32xf32>, vector<32x32xf32> -> vector<32x32xf32>
    %217 = arith.addf %209, %216 : vector<32x32xf32>
    %c13_122 = arith.constant 13 : index
    %c0_123 = arith.constant 0 : index
    %218 = vector.load %arg22[%c13_122, %c0_123] : memref<160x32xf32, #tpu.memory_space<vmem>>, vector<32x16xf32>
    %219 = arith.andi %103, %109 : vector<32x1xi1>
    %cst_124 = arith.constant 0.000000e+00 : f32
    %220 = vector.shape_cast %219 : vector<32x1xi1> to vector<32x1xi1>
    %221 = vector.broadcast %220 : vector<32x1xi1> to vector<32x16xi1>
    %222 = vector.broadcast %cst_124 : f32 to vector<32x16xf32>
    %223 = arith.select %221, %218, %222 : vector<32x16xi1>, vector<32x16xf32>
    %c32_125 = arith.constant 32 : index
    %c0_126 = arith.constant 0 : index
    %224 = vector.load %arg7[%c32_125, %c0_126] : memref<144x32xf32, #tpu.memory_space<vmem>>, vector<16x32xf32>
    %cst_127 = arith.constant dense<0.000000e+00> : vector<32x32xf32>
    %225 = tpu.matmul %223, %224, %cst_127 {dimension_numbers = #tpu.dot_dimension_numbers<[1], [0], [0], [1], [0, 0, 1, 1], [], []>} : vector<32x16xf32>, vector<16x32xf32>, vector<32x32xf32> -> vector<32x32xf32>
    %226 = arith.addf %217, %225 : vector<32x32xf32>
    %c15_128 = arith.constant 15 : index
    %c0_129 = arith.constant 0 : index
    %227 = vector.load %arg22[%c15_128, %c0_129] : memref<160x32xf32, #tpu.memory_space<vmem>>, vector<32x16xf32>
    %cst_130 = arith.constant 0.000000e+00 : f32
    %228 = vector.shape_cast %107 : vector<32x1xi1> to vector<32x1xi1>
    %229 = vector.broadcast %228 : vector<32x1xi1> to vector<32x16xi1>
    %230 = vector.broadcast %cst_130 : f32 to vector<32x16xf32>
    %231 = arith.select %229, %227, %230 : vector<32x16xi1>, vector<32x16xf32>
    %c48_131 = arith.constant 48 : index
    %c0_132 = arith.constant 0 : index
    %232 = vector.load %arg7[%c48_131, %c0_132] : memref<144x32xf32, #tpu.memory_space<vmem>>, vector<16x32xf32>
    %cst_133 = arith.constant dense<0.000000e+00> : vector<32x32xf32>
    %233 = tpu.matmul %231, %232, %cst_133 {dimension_numbers = #tpu.dot_dimension_numbers<[1], [0], [0], [1], [0, 0, 1, 1], [], []>} : vector<32x16xf32>, vector<16x32xf32>, vector<32x32xf32> -> vector<32x32xf32>
    %234 = arith.addf %226, %233 : vector<32x32xf32>
    %c16_134 = arith.constant 16 : index
    %c0_135 = arith.constant 0 : index
    %235 = vector.load %arg22[%c16_134, %c0_135] : memref<160x32xf32, #tpu.memory_space<vmem>>, vector<32x16xf32>
    %c64_136 = arith.constant 64 : index
    %c0_137 = arith.constant 0 : index
    %236 = vector.load %arg7[%c64_136, %c0_137] : memref<144x32xf32, #tpu.memory_space<vmem>>, vector<16x32xf32>
    %cst_138 = arith.constant dense<0.000000e+00> : vector<32x32xf32>
    %237 = tpu.matmul %235, %236, %cst_138 {dimension_numbers = #tpu.dot_dimension_numbers<[1], [0], [0], [1], [0, 0, 1, 1], [], []>} : vector<32x16xf32>, vector<16x32xf32>, vector<32x32xf32> -> vector<32x32xf32>
    %238 = arith.addf %234, %237 : vector<32x32xf32>
    %c17_139 = arith.constant 17 : index
    %c0_140 = arith.constant 0 : index
    %239 = vector.load %arg22[%c17_139, %c0_140] : memref<160x32xf32, #tpu.memory_space<vmem>>, vector<32x16xf32>
    %cst_141 = arith.constant 0.000000e+00 : f32
    %240 = vector.shape_cast %109 : vector<32x1xi1> to vector<32x1xi1>
    %241 = vector.broadcast %240 : vector<32x1xi1> to vector<32x16xi1>
    %242 = vector.broadcast %cst_141 : f32 to vector<32x16xf32>
    %243 = arith.select %241, %239, %242 : vector<32x16xi1>, vector<32x16xf32>
    %c80_142 = arith.constant 80 : index
    %c0_143 = arith.constant 0 : index
    %244 = vector.load %arg7[%c80_142, %c0_143] : memref<144x32xf32, #tpu.memory_space<vmem>>, vector<16x32xf32>
    %cst_144 = arith.constant dense<0.000000e+00> : vector<32x32xf32>
    %245 = tpu.matmul %243, %244, %cst_144 {dimension_numbers = #tpu.dot_dimension_numbers<[1], [0], [0], [1], [0, 0, 1, 1], [], []>} : vector<32x16xf32>, vector<16x32xf32>, vector<32x32xf32> -> vector<32x32xf32>
    %246 = arith.addf %238, %245 : vector<32x32xf32>
    %c19_145 = arith.constant 19 : index
    %c0_146 = arith.constant 0 : index
    %247 = vector.load %arg22[%c19_145, %c0_146] : memref<160x32xf32, #tpu.memory_space<vmem>>, vector<32x16xf32>
    %248 = arith.andi %105, %107 : vector<32x1xi1>
    %cst_147 = arith.constant 0.000000e+00 : f32
    %249 = vector.shape_cast %248 : vector<32x1xi1> to vector<32x1xi1>
    %250 = vector.broadcast %249 : vector<32x1xi1> to vector<32x16xi1>
    %251 = vector.broadcast %cst_147 : f32 to vector<32x16xf32>
    %252 = arith.select %250, %247, %251 : vector<32x16xi1>, vector<32x16xf32>
    %c96_148 = arith.constant 96 : index
    %c0_149 = arith.constant 0 : index
    %253 = vector.load %arg7[%c96_148, %c0_149] : memref<144x32xf32, #tpu.memory_space<vmem>>, vector<16x32xf32>
    %cst_150 = arith.constant dense<0.000000e+00> : vector<32x32xf32>
    %254 = tpu.matmul %252, %253, %cst_150 {dimension_numbers = #tpu.dot_dimension_numbers<[1], [0], [0], [1], [0, 0, 1, 1], [], []>} : vector<32x16xf32>, vector<16x32xf32>, vector<32x32xf32> -> vector<32x32xf32>
    %255 = arith.addf %246, %254 : vector<32x32xf32>
    %c20_151 = arith.constant 20 : index
    %c0_152 = arith.constant 0 : index
    %256 = vector.load %arg22[%c20_151, %c0_152] : memref<160x32xf32, #tpu.memory_space<vmem>>, vector<32x16xf32>
    %cst_153 = arith.constant 0.000000e+00 : f32
    %257 = vector.shape_cast %105 : vector<32x1xi1> to vector<32x1xi1>
    %258 = vector.broadcast %257 : vector<32x1xi1> to vector<32x16xi1>
    %259 = vector.broadcast %cst_153 : f32 to vector<32x16xf32>
    %260 = arith.select %258, %256, %259 : vector<32x16xi1>, vector<32x16xf32>
    %c112_154 = arith.constant 112 : index
    %c0_155 = arith.constant 0 : index
    %261 = vector.load %arg7[%c112_154, %c0_155] : memref<144x32xf32, #tpu.memory_space<vmem>>, vector<16x32xf32>
    %cst_156 = arith.constant dense<0.000000e+00> : vector<32x32xf32>
    %262 = tpu.matmul %260, %261, %cst_156 {dimension_numbers = #tpu.dot_dimension_numbers<[1], [0], [0], [1], [0, 0, 1, 1], [], []>} : vector<32x16xf32>, vector<16x32xf32>, vector<32x32xf32> -> vector<32x32xf32>
    %263 = arith.addf %255, %262 : vector<32x32xf32>
    %c21_157 = arith.constant 21 : index
    %c0_158 = arith.constant 0 : index
    %264 = vector.load %arg22[%c21_157, %c0_158] : memref<160x32xf32, #tpu.memory_space<vmem>>, vector<32x16xf32>
    %265 = arith.andi %105, %109 : vector<32x1xi1>
    %cst_159 = arith.constant 0.000000e+00 : f32
    %266 = vector.shape_cast %265 : vector<32x1xi1> to vector<32x1xi1>
    %267 = vector.broadcast %266 : vector<32x1xi1> to vector<32x16xi1>
    %268 = vector.broadcast %cst_159 : f32 to vector<32x16xf32>
    %269 = arith.select %267, %264, %268 : vector<32x16xi1>, vector<32x16xf32>
    %c128_160 = arith.constant 128 : index
    %c0_161 = arith.constant 0 : index
    %270 = vector.load %arg7[%c128_160, %c0_161] : memref<144x32xf32, #tpu.memory_space<vmem>>, vector<16x32xf32>
    %cst_162 = arith.constant dense<0.000000e+00> : vector<32x32xf32>
    %271 = tpu.matmul %269, %270, %cst_162 {dimension_numbers = #tpu.dot_dimension_numbers<[1], [0], [0], [1], [0, 0, 1, 1], [], []>} : vector<32x16xf32>, vector<16x32xf32>, vector<32x32xf32> -> vector<32x32xf32>
    %272 = arith.addf %263, %271 : vector<32x32xf32>
    %c0_163 = arith.constant 0 : index
    %c0_164 = arith.constant 0 : index
    %273 = vector.load %arg8[%c0_163, %c0_164] : memref<1x32xf32, #tpu.memory_space<vmem>>, vector<1x32xf32>
    %274 = vector.broadcast %273 : vector<1x32xf32> to vector<32x32xf32>
    %275 = arith.addf %272, %274 : vector<32x32xf32>
    %cst_165 = arith.constant 0.000000e+00 : f32
    %276 = vector.broadcast %cst_165 : f32 to vector<32x32xf32>
    %277 = arith.cmpf ogt, %275, %276 : vector<32x32xf32>
    %cst_166 = arith.constant 2.000000e-01 : f32
    %278 = vector.broadcast %cst_166 : f32 to vector<32x32xf32>
    %279 = arith.mulf %278, %275 : vector<32x32xf32>
    %280 = arith.select %277, %275, %279 : vector<32x32xi1>, vector<32x32xf32>
    %281 = arith.addf %280, %116 : vector<32x32xf32>
    %c0_167 = arith.constant 0 : index
    %c0_168 = arith.constant 0 : index
    %282 = vector.load %arg9[%c0_167, %c0_168] : memref<8x32xf32, #tpu.memory_space<vmem>>, vector<8x32xf32>
    %cst_169 = arith.constant dense<0.000000e+00> : vector<8x32xf32>
    %283 = tpu.matmul %282, %281, %cst_169 {dimension_numbers = #tpu.dot_dimension_numbers<[1], [0], [0], [1], [0, 0, 1, 1], [], []>} : vector<8x32xf32>, vector<32x32xf32>, vector<8x32xf32> -> vector<8x32xf32>
    %284 = tpu.iota {dimensions = array<i32: 0>} : vector<8x1xi32>
    %c3_i32_170 = arith.constant 3 : i32
    %285 = vector.broadcast %c3_i32_170 : i32 to vector<8x1xi32>
    %286 = arith.andi %284, %285 : vector<8x1xi32>
    %c1_i32_171 = arith.constant 1 : i32
    %287 = vector.broadcast %c1_i32_171 : i32 to vector<8x1xi32>
    %288 = arith.andi %284, %287 : vector<8x1xi32>
    %c2_i32 = arith.constant 2 : i32
    %289 = vector.broadcast %c2_i32 : i32 to vector<8x1xi32>
    %290 = arith.cmpi sge, %286, %289 : vector<8x1xi32>
    %c2_i32_172 = arith.constant 2 : i32
    %291 = vector.broadcast %c2_i32_172 : i32 to vector<8x1xi32>
    %292 = arith.cmpi slt, %286, %291 : vector<8x1xi32>
    %c1_i32_173 = arith.constant 1 : i32
    %293 = vector.broadcast %c1_i32_173 : i32 to vector<8x1xi32>
    %294 = arith.cmpi sge, %288, %293 : vector<8x1xi32>
    %c1_i32_174 = arith.constant 1 : i32
    %295 = vector.broadcast %c1_i32_174 : i32 to vector<8x1xi32>
    %296 = arith.cmpi slt, %288, %295 : vector<8x1xi32>
    %c0_175 = arith.constant 0 : index
    %c0_176 = arith.constant 0 : index
    %297 = vector.load %arg10[%c0_175, %c0_176] : memref<32x64xf32, #tpu.memory_space<vmem>>, vector<32x64xf32>
    %cst_177 = arith.constant dense<0.000000e+00> : vector<8x64xf32>
    %298 = tpu.matmul %283, %297, %cst_177 {dimension_numbers = #tpu.dot_dimension_numbers<[1], [0], [0], [1], [0, 0, 1, 1], [], []>} : vector<8x32xf32>, vector<32x64xf32>, vector<8x64xf32> -> vector<8x64xf32>
    %cst_178 = arith.constant 0.000000e+00 : f32
    %299 = vector.broadcast %cst_178 : f32 to vector<8x64xf32>
    %300 = arith.cmpf ogt, %298, %299 : vector<8x64xf32>
    %cst_179 = arith.constant 2.000000e-01 : f32
    %301 = vector.broadcast %cst_179 : f32 to vector<8x64xf32>
    %302 = arith.mulf %301, %298 : vector<8x64xf32>
    %303 = arith.select %300, %298, %302 : vector<8x64xi1>, vector<8x64xf32>
    %c16_180 = arith.constant 16 : index
    %c0_181 = arith.constant 0 : index
    %304 = vector.load %arg22[%c16_180, %c0_181] : memref<160x32xf32, #tpu.memory_space<vmem>>, vector<8x32xf32>
    tpu.vector_store %arg22[%c16_180, %c0_181], %283 {strides = array<i32>} : memref<160x32xf32, #tpu.memory_space<vmem>>, vector<8x32xf32>,
    %cst_182 = arith.constant 0.000000e+00 : f32
    %305 = vector.broadcast %cst_182 : f32 to vector<8x32xf32>
    %c13_183 = arith.constant 13 : index
    %c0_184 = arith.constant 0 : index
    %306 = vector.load %arg22[%c13_183, %c0_184] : memref<160x32xf32, #tpu.memory_space<vmem>>, vector<8x32xf32>
    %307 = arith.andi %290, %294 : vector<8x1xi1>
    %cst_185 = arith.constant 0.000000e+00 : f32
    %308 = vector.shape_cast %307 : vector<8x1xi1> to vector<8x1xi1>
    %309 = vector.broadcast %308 : vector<8x1xi1> to vector<8x32xi1>
    %310 = vector.broadcast %cst_185 : f32 to vector<8x32xf32>
    %311 = arith.select %309, %306, %310 : vector<8x32xi1>, vector<8x32xf32>
    %c0_186 = arith.constant 0 : index
    %c0_187 = arith.constant 0 : index
    %312 = vector.load %arg11[%c0_186, %c0_187] : memref<288x32xf32, #tpu.memory_space<vmem>>, vector<32x32xf32>
    %cst_188 = arith.constant dense<0.000000e+00> : vector<8x32xf32>
    %313 = tpu.matmul %311, %312, %cst_188 {dimension_numbers = #tpu.dot_dimension_numbers<[1], [0], [0], [1], [0, 0, 1, 1], [], []>} : vector<8x32xf32>, vector<32x32xf32>, vector<8x32xf32> -> vector<8x32xf32>
    %314 = arith.addf %305, %313 : vector<8x32xf32>
    %c14 = arith.constant 14 : index
    %c0_189 = arith.constant 0 : index
    %315 = vector.load %arg22[%c14, %c0_189] : memref<160x32xf32, #tpu.memory_space<vmem>>, vector<8x32xf32>
    %cst_190 = arith.constant 0.000000e+00 : f32
    %316 = vector.shape_cast %290 : vector<8x1xi1> to vector<8x1xi1>
    %317 = vector.broadcast %316 : vector<8x1xi1> to vector<8x32xi1>
    %318 = vector.broadcast %cst_190 : f32 to vector<8x32xf32>
    %319 = arith.select %317, %315, %318 : vector<8x32xi1>, vector<8x32xf32>
    %c32_191 = arith.constant 32 : index
    %c0_192 = arith.constant 0 : index
    %320 = vector.load %arg11[%c32_191, %c0_192] : memref<288x32xf32, #tpu.memory_space<vmem>>, vector<32x32xf32>
    %cst_193 = arith.constant dense<0.000000e+00> : vector<8x32xf32>
    %321 = tpu.matmul %319, %320, %cst_193 {dimension_numbers = #tpu.dot_dimension_numbers<[1], [0], [0], [1], [0, 0, 1, 1], [], []>} : vector<8x32xf32>, vector<32x32xf32>, vector<8x32xf32> -> vector<8x32xf32>
    %322 = arith.addf %314, %321 : vector<8x32xf32>
    %c15_194 = arith.constant 15 : index
    %c0_195 = arith.constant 0 : index
    %323 = vector.load %arg22[%c15_194, %c0_195] : memref<160x32xf32, #tpu.memory_space<vmem>>, vector<8x32xf32>
    %324 = arith.andi %290, %296 : vector<8x1xi1>
    %cst_196 = arith.constant 0.000000e+00 : f32
    %325 = vector.shape_cast %324 : vector<8x1xi1> to vector<8x1xi1>
    %326 = vector.broadcast %325 : vector<8x1xi1> to vector<8x32xi1>
    %327 = vector.broadcast %cst_196 : f32 to vector<8x32xf32>
    %328 = arith.select %326, %323, %327 : vector<8x32xi1>, vector<8x32xf32>
    %c64_197 = arith.constant 64 : index
    %c0_198 = arith.constant 0 : index
    %329 = vector.load %arg11[%c64_197, %c0_198] : memref<288x32xf32, #tpu.memory_space<vmem>>, vector<32x32xf32>
    %cst_199 = arith.constant dense<0.000000e+00> : vector<8x32xf32>
    %330 = tpu.matmul %328, %329, %cst_199 {dimension_numbers = #tpu.dot_dimension_numbers<[1], [0], [0], [1], [0, 0, 1, 1], [], []>} : vector<8x32xf32>, vector<32x32xf32>, vector<8x32xf32> -> vector<8x32xf32>
    %331 = arith.addf %322, %330 : vector<8x32xf32>
    %c15_200 = arith.constant 15 : index
    %c0_201 = arith.constant 0 : index
    %332 = vector.load %arg22[%c15_200, %c0_201] : memref<160x32xf32, #tpu.memory_space<vmem>>, vector<8x32xf32>
    %cst_202 = arith.constant 0.000000e+00 : f32
    %333 = vector.shape_cast %294 : vector<8x1xi1> to vector<8x1xi1>
    %334 = vector.broadcast %333 : vector<8x1xi1> to vector<8x32xi1>
    %335 = vector.broadcast %cst_202 : f32 to vector<8x32xf32>
    %336 = arith.select %334, %332, %335 : vector<8x32xi1>, vector<8x32xf32>
    %c96_203 = arith.constant 96 : index
    %c0_204 = arith.constant 0 : index
    %337 = vector.load %arg11[%c96_203, %c0_204] : memref<288x32xf32, #tpu.memory_space<vmem>>, vector<32x32xf32>
    %cst_205 = arith.constant dense<0.000000e+00> : vector<8x32xf32>
    %338 = tpu.matmul %336, %337, %cst_205 {dimension_numbers = #tpu.dot_dimension_numbers<[1], [0], [0], [1], [0, 0, 1, 1], [], []>} : vector<8x32xf32>, vector<32x32xf32>, vector<8x32xf32> -> vector<8x32xf32>
    %339 = arith.addf %331, %338 : vector<8x32xf32>
    %c16_206 = arith.constant 16 : index
    %c0_207 = arith.constant 0 : index
    %340 = vector.load %arg22[%c16_206, %c0_207] : memref<160x32xf32, #tpu.memory_space<vmem>>, vector<8x32xf32>
    %c128_208 = arith.constant 128 : index
    %c0_209 = arith.constant 0 : index
    %341 = vector.load %arg11[%c128_208, %c0_209] : memref<288x32xf32, #tpu.memory_space<vmem>>, vector<32x32xf32>
    %cst_210 = arith.constant dense<0.000000e+00> : vector<8x32xf32>
    %342 = tpu.matmul %340, %341, %cst_210 {dimension_numbers = #tpu.dot_dimension_numbers<[1], [0], [0], [1], [0, 0, 1, 1], [], []>} : vector<8x32xf32>, vector<32x32xf32>, vector<8x32xf32> -> vector<8x32xf32>
    %343 = arith.addf %339, %342 : vector<8x32xf32>
    %c17_211 = arith.constant 17 : index
    %c0_212 = arith.constant 0 : index
    %344 = vector.load %arg22[%c17_211, %c0_212] : memref<160x32xf32, #tpu.memory_space<vmem>>, vector<8x32xf32>
    %cst_213 = arith.constant 0.000000e+00 : f32
    %345 = vector.shape_cast %296 : vector<8x1xi1> to vector<8x1xi1>
    %346 = vector.broadcast %345 : vector<8x1xi1> to vector<8x32xi1>
    %347 = vector.broadcast %cst_213 : f32 to vector<8x32xf32>
    %348 = arith.select %346, %344, %347 : vector<8x32xi1>, vector<8x32xf32>
    %c160 = arith.constant 160 : index
    %c0_214 = arith.constant 0 : index
    %349 = vector.load %arg11[%c160, %c0_214] : memref<288x32xf32, #tpu.memory_space<vmem>>, vector<32x32xf32>
    %cst_215 = arith.constant dense<0.000000e+00> : vector<8x32xf32>
    %350 = tpu.matmul %348, %349, %cst_215 {dimension_numbers = #tpu.dot_dimension_numbers<[1], [0], [0], [1], [0, 0, 1, 1], [], []>} : vector<8x32xf32>, vector<32x32xf32>, vector<8x32xf32> -> vector<8x32xf32>
    %351 = arith.addf %343, %350 : vector<8x32xf32>
    %c17_216 = arith.constant 17 : index
    %c0_217 = arith.constant 0 : index
    %352 = vector.load %arg22[%c17_216, %c0_217] : memref<160x32xf32, #tpu.memory_space<vmem>>, vector<8x32xf32>
    %353 = arith.andi %292, %294 : vector<8x1xi1>
    %cst_218 = arith.constant 0.000000e+00 : f32
    %354 = vector.shape_cast %353 : vector<8x1xi1> to vector<8x1xi1>
    %355 = vector.broadcast %354 : vector<8x1xi1> to vector<8x32xi1>
    %356 = vector.broadcast %cst_218 : f32 to vector<8x32xf32>
    %357 = arith.select %355, %352, %356 : vector<8x32xi1>, vector<8x32xf32>
    %c192 = arith.constant 192 : index
    %c0_219 = arith.constant 0 : index
    %358 = vector.load %arg11[%c192, %c0_219] : memref<288x32xf32, #tpu.memory_space<vmem>>, vector<32x32xf32>
    %cst_220 = arith.constant dense<0.000000e+00> : vector<8x32xf32>
    %359 = tpu.matmul %357, %358, %cst_220 {dimension_numbers = #tpu.dot_dimension_numbers<[1], [0], [0], [1], [0, 0, 1, 1], [], []>} : vector<8x32xf32>, vector<32x32xf32>, vector<8x32xf32> -> vector<8x32xf32>
    %360 = arith.addf %351, %359 : vector<8x32xf32>
    %c18_221 = arith.constant 18 : index
    %c0_222 = arith.constant 0 : index
    %361 = vector.load %arg22[%c18_221, %c0_222] : memref<160x32xf32, #tpu.memory_space<vmem>>, vector<8x32xf32>
    %cst_223 = arith.constant 0.000000e+00 : f32
    %362 = vector.shape_cast %292 : vector<8x1xi1> to vector<8x1xi1>
    %363 = vector.broadcast %362 : vector<8x1xi1> to vector<8x32xi1>
    %364 = vector.broadcast %cst_223 : f32 to vector<8x32xf32>
    %365 = arith.select %363, %361, %364 : vector<8x32xi1>, vector<8x32xf32>
    %c224 = arith.constant 224 : index
    %c0_224 = arith.constant 0 : index
    %366 = vector.load %arg11[%c224, %c0_224] : memref<288x32xf32, #tpu.memory_space<vmem>>, vector<32x32xf32>
    %cst_225 = arith.constant dense<0.000000e+00> : vector<8x32xf32>
    %367 = tpu.matmul %365, %366, %cst_225 {dimension_numbers = #tpu.dot_dimension_numbers<[1], [0], [0], [1], [0, 0, 1, 1], [], []>} : vector<8x32xf32>, vector<32x32xf32>, vector<8x32xf32> -> vector<8x32xf32>
    %368 = arith.addf %360, %367 : vector<8x32xf32>
    %c19_226 = arith.constant 19 : index
    %c0_227 = arith.constant 0 : index
    %369 = vector.load %arg22[%c19_226, %c0_227] : memref<160x32xf32, #tpu.memory_space<vmem>>, vector<8x32xf32>
    %370 = arith.andi %292, %296 : vector<8x1xi1>
    %cst_228 = arith.constant 0.000000e+00 : f32
    %371 = vector.shape_cast %370 : vector<8x1xi1> to vector<8x1xi1>
    %372 = vector.broadcast %371 : vector<8x1xi1> to vector<8x32xi1>
    %373 = vector.broadcast %cst_228 : f32 to vector<8x32xf32>
    %374 = arith.select %372, %369, %373 : vector<8x32xi1>, vector<8x32xf32>
    %c256 = arith.constant 256 : index
    %c0_229 = arith.constant 0 : index
    %375 = vector.load %arg11[%c256, %c0_229] : memref<288x32xf32, #tpu.memory_space<vmem>>, vector<32x32xf32>
    %cst_230 = arith.constant dense<0.000000e+00> : vector<8x32xf32>
    %376 = tpu.matmul %374, %375, %cst_230 {dimension_numbers = #tpu.dot_dimension_numbers<[1], [0], [0], [1], [0, 0, 1, 1], [], []>} : vector<8x32xf32>, vector<32x32xf32>, vector<8x32xf32> -> vector<8x32xf32>
    %377 = arith.addf %368, %376 : vector<8x32xf32>
    %c0_231 = arith.constant 0 : index
    %c0_232 = arith.constant 0 : index
    %378 = vector.load %arg12[%c0_231, %c0_232] : memref<1x32xf32, #tpu.memory_space<vmem>>, vector<1x32xf32>
    %379 = vector.broadcast %378 : vector<1x32xf32> to vector<8x32xf32>
    %380 = arith.addf %377, %379 : vector<8x32xf32>
    %cst_233 = arith.constant 0.000000e+00 : f32
    %381 = vector.broadcast %cst_233 : f32 to vector<8x32xf32>
    %382 = arith.cmpf ogt, %380, %381 : vector<8x32xf32>
    %cst_234 = arith.constant 2.000000e-01 : f32
    %383 = vector.broadcast %cst_234 : f32 to vector<8x32xf32>
    %384 = arith.mulf %383, %380 : vector<8x32xf32>
    %385 = arith.select %382, %380, %384 : vector<8x32xi1>, vector<8x32xf32>
    %c16_235 = arith.constant 16 : index
    %c0_236 = arith.constant 0 : index
    %386 = vector.load %arg22[%c16_235, %c0_236] : memref<160x32xf32, #tpu.memory_space<vmem>>, vector<8x32xf32>
    tpu.vector_store %arg22[%c16_235, %c0_236], %385 {strides = array<i32>} : memref<160x32xf32, #tpu.memory_space<vmem>>, vector<8x32xf32>,
    %cst_237 = arith.constant 0.000000e+00 : f32
    %387 = vector.broadcast %cst_237 : f32 to vector<8x64xf32>
    %c13_238 = arith.constant 13 : index
    %c0_239 = arith.constant 0 : index
    %388 = vector.load %arg22[%c13_238, %c0_239] : memref<160x32xf32, #tpu.memory_space<vmem>>, vector<8x32xf32>
    %389 = arith.andi %290, %294 : vector<8x1xi1>
    %cst_240 = arith.constant 0.000000e+00 : f32
    %390 = vector.shape_cast %389 : vector<8x1xi1> to vector<8x1xi1>
    %391 = vector.broadcast %390 : vector<8x1xi1> to vector<8x32xi1>
    %392 = vector.broadcast %cst_240 : f32 to vector<8x32xf32>
    %393 = arith.select %391, %388, %392 : vector<8x32xi1>, vector<8x32xf32>
    %c0_241 = arith.constant 0 : index
    %c0_242 = arith.constant 0 : index
    %394 = vector.load %arg13[%c0_241, %c0_242] : memref<288x64xf32, #tpu.memory_space<vmem>>, vector<32x64xf32>
    %cst_243 = arith.constant dense<0.000000e+00> : vector<8x64xf32>
    %395 = tpu.matmul %393, %394, %cst_243 {dimension_numbers = #tpu.dot_dimension_numbers<[1], [0], [0], [1], [0, 0, 1, 1], [], []>} : vector<8x32xf32>, vector<32x64xf32>, vector<8x64xf32> -> vector<8x64xf32>
    %396 = arith.addf %387, %395 : vector<8x64xf32>
    %c14_244 = arith.constant 14 : index
    %c0_245 = arith.constant 0 : index
    %397 = vector.load %arg22[%c14_244, %c0_245] : memref<160x32xf32, #tpu.memory_space<vmem>>, vector<8x32xf32>
    %cst_246 = arith.constant 0.000000e+00 : f32
    %398 = vector.shape_cast %290 : vector<8x1xi1> to vector<8x1xi1>
    %399 = vector.broadcast %398 : vector<8x1xi1> to vector<8x32xi1>
    %400 = vector.broadcast %cst_246 : f32 to vector<8x32xf32>
    %401 = arith.select %399, %397, %400 : vector<8x32xi1>, vector<8x32xf32>
    %c32_247 = arith.constant 32 : index
    %c0_248 = arith.constant 0 : index
    %402 = vector.load %arg13[%c32_247, %c0_248] : memref<288x64xf32, #tpu.memory_space<vmem>>, vector<32x64xf32>
    %cst_249 = arith.constant dense<0.000000e+00> : vector<8x64xf32>
    %403 = tpu.matmul %401, %402, %cst_249 {dimension_numbers = #tpu.dot_dimension_numbers<[1], [0], [0], [1], [0, 0, 1, 1], [], []>} : vector<8x32xf32>, vector<32x64xf32>, vector<8x64xf32> -> vector<8x64xf32>
    %404 = arith.addf %396, %403 : vector<8x64xf32>
    %c15_250 = arith.constant 15 : index
    %c0_251 = arith.constant 0 : index
    %405 = vector.load %arg22[%c15_250, %c0_251] : memref<160x32xf32, #tpu.memory_space<vmem>>, vector<8x32xf32>
    %406 = arith.andi %290, %296 : vector<8x1xi1>
    %cst_252 = arith.constant 0.000000e+00 : f32
    %407 = vector.shape_cast %406 : vector<8x1xi1> to vector<8x1xi1>
    %408 = vector.broadcast %407 : vector<8x1xi1> to vector<8x32xi1>
    %409 = vector.broadcast %cst_252 : f32 to vector<8x32xf32>
    %410 = arith.select %408, %405, %409 : vector<8x32xi1>, vector<8x32xf32>
    %c64_253 = arith.constant 64 : index
    %c0_254 = arith.constant 0 : index
    %411 = vector.load %arg13[%c64_253, %c0_254] : memref<288x64xf32, #tpu.memory_space<vmem>>, vector<32x64xf32>
    %cst_255 = arith.constant dense<0.000000e+00> : vector<8x64xf32>
    %412 = tpu.matmul %410, %411, %cst_255 {dimension_numbers = #tpu.dot_dimension_numbers<[1], [0], [0], [1], [0, 0, 1, 1], [], []>} : vector<8x32xf32>, vector<32x64xf32>, vector<8x64xf32> -> vector<8x64xf32>
    %413 = arith.addf %404, %412 : vector<8x64xf32>
    %c15_256 = arith.constant 15 : index
    %c0_257 = arith.constant 0 : index
    %414 = vector.load %arg22[%c15_256, %c0_257] : memref<160x32xf32, #tpu.memory_space<vmem>>, vector<8x32xf32>
    %cst_258 = arith.constant 0.000000e+00 : f32
    %415 = vector.shape_cast %294 : vector<8x1xi1> to vector<8x1xi1>
    %416 = vector.broadcast %415 : vector<8x1xi1> to vector<8x32xi1>
    %417 = vector.broadcast %cst_258 : f32 to vector<8x32xf32>
    %418 = arith.select %416, %414, %417 : vector<8x32xi1>, vector<8x32xf32>
    %c96_259 = arith.constant 96 : index
    %c0_260 = arith.constant 0 : index
    %419 = vector.load %arg13[%c96_259, %c0_260] : memref<288x64xf32, #tpu.memory_space<vmem>>, vector<32x64xf32>
    %cst_261 = arith.constant dense<0.000000e+00> : vector<8x64xf32>
    %420 = tpu.matmul %418, %419, %cst_261 {dimension_numbers = #tpu.dot_dimension_numbers<[1], [0], [0], [1], [0, 0, 1, 1], [], []>} : vector<8x32xf32>, vector<32x64xf32>, vector<8x64xf32> -> vector<8x64xf32>
    %421 = arith.addf %413, %420 : vector<8x64xf32>
    %c16_262 = arith.constant 16 : index
    %c0_263 = arith.constant 0 : index
    %422 = vector.load %arg22[%c16_262, %c0_263] : memref<160x32xf32, #tpu.memory_space<vmem>>, vector<8x32xf32>
    %c128_264 = arith.constant 128 : index
    %c0_265 = arith.constant 0 : index
    %423 = vector.load %arg13[%c128_264, %c0_265] : memref<288x64xf32, #tpu.memory_space<vmem>>, vector<32x64xf32>
    %cst_266 = arith.constant dense<0.000000e+00> : vector<8x64xf32>
    %424 = tpu.matmul %422, %423, %cst_266 {dimension_numbers = #tpu.dot_dimension_numbers<[1], [0], [0], [1], [0, 0, 1, 1], [], []>} : vector<8x32xf32>, vector<32x64xf32>, vector<8x64xf32> -> vector<8x64xf32>
    %425 = arith.addf %421, %424 : vector<8x64xf32>
    %c17_267 = arith.constant 17 : index
    %c0_268 = arith.constant 0 : index
    %426 = vector.load %arg22[%c17_267, %c0_268] : memref<160x32xf32, #tpu.memory_space<vmem>>, vector<8x32xf32>
    %cst_269 = arith.constant 0.000000e+00 : f32
    %427 = vector.shape_cast %296 : vector<8x1xi1> to vector<8x1xi1>
    %428 = vector.broadcast %427 : vector<8x1xi1> to vector<8x32xi1>
    %429 = vector.broadcast %cst_269 : f32 to vector<8x32xf32>
    %430 = arith.select %428, %426, %429 : vector<8x32xi1>, vector<8x32xf32>
    %c160_270 = arith.constant 160 : index
    %c0_271 = arith.constant 0 : index
    %431 = vector.load %arg13[%c160_270, %c0_271] : memref<288x64xf32, #tpu.memory_space<vmem>>, vector<32x64xf32>
    %cst_272 = arith.constant dense<0.000000e+00> : vector<8x64xf32>
    %432 = tpu.matmul %430, %431, %cst_272 {dimension_numbers = #tpu.dot_dimension_numbers<[1], [0], [0], [1], [0, 0, 1, 1], [], []>} : vector<8x32xf32>, vector<32x64xf32>, vector<8x64xf32> -> vector<8x64xf32>
    %433 = arith.addf %425, %432 : vector<8x64xf32>
    %c17_273 = arith.constant 17 : index
    %c0_274 = arith.constant 0 : index
    %434 = vector.load %arg22[%c17_273, %c0_274] : memref<160x32xf32, #tpu.memory_space<vmem>>, vector<8x32xf32>
    %435 = arith.andi %292, %294 : vector<8x1xi1>
    %cst_275 = arith.constant 0.000000e+00 : f32
    %436 = vector.shape_cast %435 : vector<8x1xi1> to vector<8x1xi1>
    %437 = vector.broadcast %436 : vector<8x1xi1> to vector<8x32xi1>
    %438 = vector.broadcast %cst_275 : f32 to vector<8x32xf32>
    %439 = arith.select %437, %434, %438 : vector<8x32xi1>, vector<8x32xf32>
    %c192_276 = arith.constant 192 : index
    %c0_277 = arith.constant 0 : index
    %440 = vector.load %arg13[%c192_276, %c0_277] : memref<288x64xf32, #tpu.memory_space<vmem>>, vector<32x64xf32>
    %cst_278 = arith.constant dense<0.000000e+00> : vector<8x64xf32>
    %441 = tpu.matmul %439, %440, %cst_278 {dimension_numbers = #tpu.dot_dimension_numbers<[1], [0], [0], [1], [0, 0, 1, 1], [], []>} : vector<8x32xf32>, vector<32x64xf32>, vector<8x64xf32> -> vector<8x64xf32>
    %442 = arith.addf %433, %441 : vector<8x64xf32>
    %c18_279 = arith.constant 18 : index
    %c0_280 = arith.constant 0 : index
    %443 = vector.load %arg22[%c18_279, %c0_280] : memref<160x32xf32, #tpu.memory_space<vmem>>, vector<8x32xf32>
    %cst_281 = arith.constant 0.000000e+00 : f32
    %444 = vector.shape_cast %292 : vector<8x1xi1> to vector<8x1xi1>
    %445 = vector.broadcast %444 : vector<8x1xi1> to vector<8x32xi1>
    %446 = vector.broadcast %cst_281 : f32 to vector<8x32xf32>
    %447 = arith.select %445, %443, %446 : vector<8x32xi1>, vector<8x32xf32>
    %c224_282 = arith.constant 224 : index
    %c0_283 = arith.constant 0 : index
    %448 = vector.load %arg13[%c224_282, %c0_283] : memref<288x64xf32, #tpu.memory_space<vmem>>, vector<32x64xf32>
    %cst_284 = arith.constant dense<0.000000e+00> : vector<8x64xf32>
    %449 = tpu.matmul %447, %448, %cst_284 {dimension_numbers = #tpu.dot_dimension_numbers<[1], [0], [0], [1], [0, 0, 1, 1], [], []>} : vector<8x32xf32>, vector<32x64xf32>, vector<8x64xf32> -> vector<8x64xf32>
    %450 = arith.addf %442, %449 : vector<8x64xf32>
    %c19_285 = arith.constant 19 : index
    %c0_286 = arith.constant 0 : index
    %451 = vector.load %arg22[%c19_285, %c0_286] : memref<160x32xf32, #tpu.memory_space<vmem>>, vector<8x32xf32>
    %452 = arith.andi %292, %296 : vector<8x1xi1>
    %cst_287 = arith.constant 0.000000e+00 : f32
    %453 = vector.shape_cast %452 : vector<8x1xi1> to vector<8x1xi1>
    %454 = vector.broadcast %453 : vector<8x1xi1> to vector<8x32xi1>
    %455 = vector.broadcast %cst_287 : f32 to vector<8x32xf32>
    %456 = arith.select %454, %451, %455 : vector<8x32xi1>, vector<8x32xf32>
    %c256_288 = arith.constant 256 : index
    %c0_289 = arith.constant 0 : index
    %457 = vector.load %arg13[%c256_288, %c0_289] : memref<288x64xf32, #tpu.memory_space<vmem>>, vector<32x64xf32>
    %cst_290 = arith.constant dense<0.000000e+00> : vector<8x64xf32>
    %458 = tpu.matmul %456, %457, %cst_290 {dimension_numbers = #tpu.dot_dimension_numbers<[1], [0], [0], [1], [0, 0, 1, 1], [], []>} : vector<8x32xf32>, vector<32x64xf32>, vector<8x64xf32> -> vector<8x64xf32>
    %459 = arith.addf %450, %458 : vector<8x64xf32>
    %c0_291 = arith.constant 0 : index
    %c0_292 = arith.constant 0 : index
    %460 = vector.load %arg14[%c0_291, %c0_292] : memref<1x64xf32, #tpu.memory_space<vmem>>, vector<1x64xf32>
    %461 = vector.broadcast %460 : vector<1x64xf32> to vector<8x64xf32>
    %462 = arith.addf %459, %461 : vector<8x64xf32>
    %cst_293 = arith.constant 0.000000e+00 : f32
    %463 = vector.broadcast %cst_293 : f32 to vector<8x64xf32>
    %464 = arith.cmpf ogt, %462, %463 : vector<8x64xf32>
    %cst_294 = arith.constant 2.000000e-01 : f32
    %465 = vector.broadcast %cst_294 : f32 to vector<8x64xf32>
    %466 = arith.mulf %465, %462 : vector<8x64xf32>
    %467 = arith.select %464, %462, %466 : vector<8x64xi1>, vector<8x64xf32>
    %468 = arith.addf %467, %303 : vector<8x64xf32>
    %c0_295 = arith.constant 0 : index
    %c0_296 = arith.constant 0 : index
    %469 = vector.load %arg15[%c0_295, %c0_296] : memref<2x8xf32, #tpu.memory_space<vmem>>, vector<2x8xf32>
    %cst_297 = arith.constant dense<0.000000e+00> : vector<2x64xf32>
    %470 = tpu.matmul %469, %468, %cst_297 {dimension_numbers = #tpu.dot_dimension_numbers<[1], [0], [0], [1], [0, 0, 1, 1], [], []>} : vector<2x8xf32>, vector<8x64xf32>, vector<2x64xf32> -> vector<2x64xf32>
    %c256_298 = arith.constant 256 : index
    %c0_299 = arith.constant 0 : index
    %471 = vector.load %arg16[%c256_298, %c0_299] : memref<576x64xf32, #tpu.memory_space<vmem>>, vector<64x64xf32>
    %cst_300 = arith.constant dense<0.000000e+00> : vector<2x64xf32>
    %472 = tpu.matmul %470, %471, %cst_300 {dimension_numbers = #tpu.dot_dimension_numbers<[1], [0], [0], [1], [0, 0, 1, 1], [], []>} : vector<2x64xf32>, vector<64x64xf32>, vector<2x64xf32> -> vector<2x64xf32>
    %c0_301 = arith.constant 0 : index
    %c0_302 = arith.constant 0 : index
    %473 = vector.load %arg17[%c0_301, %c0_302] : memref<1x64xf32, #tpu.memory_space<vmem>>, vector<1x64xf32>
    %474 = vector.broadcast %473 : vector<1x64xf32> to vector<2x64xf32>
    %475 = arith.addf %472, %474 : vector<2x64xf32>
    %cst_303 = arith.constant 0.000000e+00 : f32
    %476 = vector.broadcast %cst_303 : f32 to vector<2x64xf32>
    %477 = arith.cmpf ogt, %475, %476 : vector<2x64xf32>
    %cst_304 = arith.constant 2.000000e-01 : f32
    %478 = vector.broadcast %cst_304 : f32 to vector<2x64xf32>
    %479 = arith.mulf %478, %475 : vector<2x64xf32>
    %480 = arith.select %477, %475, %479 : vector<2x64xi1>, vector<2x64xf32>
    %c256_305 = arith.constant 256 : index
    %c0_306 = arith.constant 0 : index
    %481 = vector.load %arg18[%c256_305, %c0_306] : memref<576x64xf32, #tpu.memory_space<vmem>>, vector<64x64xf32>
    %cst_307 = arith.constant dense<0.000000e+00> : vector<2x64xf32>
    %482 = tpu.matmul %480, %481, %cst_307 {dimension_numbers = #tpu.dot_dimension_numbers<[1], [0], [0], [1], [0, 0, 1, 1], [], []>} : vector<2x64xf32>, vector<64x64xf32>, vector<2x64xf32> -> vector<2x64xf32>
    %c0_308 = arith.constant 0 : index
    %c0_309 = arith.constant 0 : index
    %483 = vector.load %arg19[%c0_308, %c0_309] : memref<1x64xf32, #tpu.memory_space<vmem>>, vector<1x64xf32>
    %484 = vector.broadcast %483 : vector<1x64xf32> to vector<2x64xf32>
    %485 = arith.addf %482, %484 : vector<2x64xf32>
    %cst_310 = arith.constant 0.000000e+00 : f32
    %486 = vector.broadcast %cst_310 : f32 to vector<2x64xf32>
    %487 = arith.cmpf ogt, %485, %486 : vector<2x64xf32>
    %cst_311 = arith.constant 2.000000e-01 : f32
    %488 = vector.broadcast %cst_311 : f32 to vector<2x64xf32>
    %489 = arith.mulf %488, %485 : vector<2x64xf32>
    %490 = arith.select %487, %485, %489 : vector<2x64xi1>, vector<2x64xf32>
    %491 = arith.addf %490, %470 : vector<2x64xf32>
    %c0_312 = arith.constant 0 : index
    %c0_313 = arith.constant 0 : index
    %492 = vector.load %arg20[%c0_312, %c0_313] : memref<64x32xf32, #tpu.memory_space<vmem>>, vector<64x32xf32>
    %cst_314 = arith.constant dense<0.000000e+00> : vector<2x32xf32>
    %493 = tpu.matmul %491, %492, %cst_314 {dimension_numbers = #tpu.dot_dimension_numbers<[1], [0], [0], [1], [0, 0, 1, 1], [], []>} : vector<2x64xf32>, vector<64x32xf32>, vector<2x32xf32> -> vector<2x32xf32>
    %c0_315 = arith.constant 0 : index
    %c0_316 = arith.constant 0 : index
    %494 = vector.load %arg21[%c0_315, %c0_316] : memref<2x32xf32, #tpu.memory_space<vmem>>, vector<2x32xf32>
    tpu.vector_store %arg21[%c0_315, %c0_316], %493 {strides = array<i32>} : memref<2x32xf32, #tpu.memory_space<vmem>>, vector<2x32xf32>,
    return
  }
  func.func @transform_0(%arg0: i32) -> (i32, i32) {
    %c0_i32 = arith.constant 0 : i32
    %c0_i32_0 = arith.constant 0 : i32
    %c0_i32_1 = arith.constant 0 : i32
    return %c0_i32, %c0_i32_0 : i32, i32
  }
  func.func @transform_1(%arg0: i32) -> (i32, i32) {
    %c0_i32 = arith.constant 0 : i32
    %c0_i32_0 = arith.constant 0 : i32
    %c0_i32_1 = arith.constant 0 : i32
    return %c0_i32, %c0_i32_0 : i32, i32
  }
  func.func @transform_2(%arg0: i32) -> (i32, i32) {
    %c0_i32 = arith.constant 0 : i32
    %c0_i32_0 = arith.constant 0 : i32
    %c0_i32_1 = arith.constant 0 : i32
    return %c0_i32, %c0_i32_0 : i32, i32
  }
  func.func @transform_3(%arg0: i32) -> (i32, i32) {
    %c0_i32 = arith.constant 0 : i32
    %c0_i32_0 = arith.constant 0 : i32
    %c0_i32_1 = arith.constant 0 : i32
    return %c0_i32, %c0_i32_0 : i32, i32
  }
  func.func @transform_4(%arg0: i32) -> (i32, i32) {
    %c0_i32 = arith.constant 0 : i32
    %c0_i32_0 = arith.constant 0 : i32
    %c0_i32_1 = arith.constant 0 : i32
    return %c0_i32, %c0_i32_0 : i32, i32
  }
  func.func @transform_5(%arg0: i32) -> (i32, i32) {
    %c0_i32 = arith.constant 0 : i32
    %c0_i32_0 = arith.constant 0 : i32
    %c0_i32_1 = arith.constant 0 : i32
    return %c0_i32, %c0_i32_0 : i32, i32
  }
  func.func @transform_6(%arg0: i32) -> (i32, i32) {
    %c0_i32 = arith.constant 0 : i32
    %c0_i32_0 = arith.constant 0 : i32
    %c0_i32_1 = arith.constant 0 : i32
    return %c0_i32, %c0_i32_0 : i32, i32
  }
  func.func @transform_7(%arg0: i32) -> (i32, i32) {
    %c0_i32 = arith.constant 0 : i32
    %c0_i32_0 = arith.constant 0 : i32
    %c0_i32_1 = arith.constant 0 : i32
    return %c0_i32, %c0_i32_0 : i32, i32
  }
  func.func @transform_8(%arg0: i32) -> (i32, i32) {
    %c0_i32 = arith.constant 0 : i32
    %c0_i32_0 = arith.constant 0 : i32
    %c0_i32_1 = arith.constant 0 : i32
    return %c0_i32, %c0_i32_0 : i32, i32
  }
  func.func @transform_9(%arg0: i32) -> (i32, i32) {
    %c0_i32 = arith.constant 0 : i32
    %c0_i32_0 = arith.constant 0 : i32
    %c0_i32_1 = arith.constant 0 : i32
    return %c0_i32, %c0_i32_0 : i32, i32
  }
  func.func @transform_10(%arg0: i32) -> (i32, i32) {
    %c0_i32 = arith.constant 0 : i32
    %c0_i32_0 = arith.constant 0 : i32
    %c0_i32_1 = arith.constant 0 : i32
    return %c0_i32, %c0_i32_0 : i32, i32
  }
  func.func @transform_11(%arg0: i32) -> (i32, i32) {
    %c0_i32 = arith.constant 0 : i32
    %c0_i32_0 = arith.constant 0 : i32
    %c0_i32_1 = arith.constant 0 : i32
    return %c0_i32, %c0_i32_0 : i32, i32
  }
  func.func @transform_12(%arg0: i32) -> (i32, i32) {
    %c0_i32 = arith.constant 0 : i32
    %c0_i32_0 = arith.constant 0 : i32
    %c0_i32_1 = arith.constant 0 : i32
    return %c0_i32, %c0_i32_0 : i32, i32
  }
  func.func @transform_13(%arg0: i32) -> (i32, i32) {
    %c0_i32 = arith.constant 0 : i32
    %c0_i32_0 = arith.constant 0 : i32
    %c0_i32_1 = arith.constant 0 : i32
    return %c0_i32, %c0_i32_0 : i32, i32
  }
  func.func @transform_14(%arg0: i32) -> (i32, i32) {
    %c0_i32 = arith.constant 0 : i32
    %c0_i32_0 = arith.constant 0 : i32
    %c0_i32_1 = arith.constant 0 : i32
    return %c0_i32, %c0_i32_0 : i32, i32
  }
  func.func @transform_15(%arg0: i32) -> (i32, i32) {
    %c0_i32 = arith.constant 0 : i32
    %c0_i32_0 = arith.constant 0 : i32
    %c0_i32_1 = arith.constant 0 : i32
    return %c0_i32, %c0_i32_0 : i32, i32
  }
  func.func @transform_16(%arg0: i32) -> (i32, i32) {
    %c0_i32 = arith.constant 0 : i32
    %c0_i32_0 = arith.constant 0 : i32
    %c0_i32_1 = arith.constant 0 : i32
    return %c0_i32, %c0_i32_0 : i32, i32
  }
  func.func @transform_17(%arg0: i32) -> (i32, i32) {
    %c0_i32 = arith.constant 0 : i32
    %c0_i32_0 = arith.constant 0 : i32
    %c0_i32_1 = arith.constant 0 : i32
    return %c0_i32, %c0_i32_0 : i32, i32
  }
  func.func @transform_18(%arg0: i32) -> (i32, i32) {
    %c0_i32 = arith.constant 0 : i32
    %c0_i32_0 = arith.constant 0 : i32
    %c0_i32_1 = arith.constant 0 : i32
    return %c0_i32, %c0_i32_0 : i32, i32
  }
  func.func @transform_19(%arg0: i32) -> (i32, i32) {
    %c0_i32 = arith.constant 0 : i32
    %c0_i32_0 = arith.constant 0 : i32
    %c0_i32_1 = arith.constant 0 : i32
    return %c0_i32, %c0_i32_0 : i32, i32
  }
  func.func @transform_20(%arg0: i32) -> (i32, i32) {
    %c0_i32 = arith.constant 0 : i32
    %c0_i32_0 = arith.constant 0 : i32
    %c0_i32_1 = arith.constant 0 : i32
    return %c0_i32, %c0_i32_0 : i32, i32
  }
}

</mosaic_0001>

<bundles_post_ra>
// kernel: forward.1
= control target key start
LH: loop header
LB: loop body
LE: loop exit
PB: predicated region body
PF: predicated region fallthrough
CT: control target
= control target key end

     0   :  { %s11471_s0 = inlined_call_operand.vmem [shape: f32[128,3], index: 0, kind: input, shape index: {}]   ;;  %s11472_s1 = inlined_call_operand.hbm [shape: f32[27,16], index: 1, kind: input, shape index: {}]   ;;  %s11473_s2 = inlined_call_operand.hbm [shape: f32[32,128], index: 2, kind: input, shape index: {}]   ;;  %s11474_s3 = inlined_call_operand.hbm [shape: f32[16,32], index: 3, kind: input, shape index: {}]   ;;  %s11475_s4 = inlined_call_operand.hbm [shape: f32[144,16], index: 4, kind: input, shape index: {}]   ;;  %s11476_s5 = inlined_call_operand.hbm [shape: f32[1,16], index: 5, kind: input, shape index: {}]   ;;  %s11477_s6 = inlined_call_operand.vmem [shape: f32[144,32], index: 6, kind: input, shape index: {}]   ;;  %s11478_s7 = inlined_call_operand.hbm [shape: f32[1,32], index: 7, kind: input, shape index: {}]   ;;  %s11479_s8 = inlined_call_operand.hbm [shape: f32[8,32], index: 8, kind: input, shape index: {}]   ;;  %s11480_s9 = inlined_call_operand.hbm [shape: f32[32,64], index: 9, kind: input, shape index: {}]   ;;  %s11481_s10 = inlined_call_operand.hbm [shape: f32[288,32], index: 10, kind: input, shape index: {}]   ;;  %s11482_s11 = inlined_call_operand.vmem [shape: f32[1,32], index: 11, kind: input, shape index: {}]   ;;  %s11483_s12 = inlined_call_operand.hbm [shape: f32[288,64], index: 12, kind: input, shape index: {}]   ;;  %s11484_s13 = inlined_call_operand.vmem [shape: f32[1,64], index: 13, kind: input, shape index: {}]   ;;  %s11485_s14 = inlined_call_operand.vmem [shape: f32[2,8], index: 14, kind: input, shape index: {}]   ;;  %s11486_s15 = inlined_call_operand.hbm [shape: f32[576,64], index: 15, kind: input, shape index: {}]   ;;  %s11487_s16 = inlined_call_operand.vmem [shape: f32[1,64], index: 16, kind: input, shape index: {}]   ;;  %s11488_s17 = inlined_call_operand.hbm [shape: f32[576,64], index: 17, kind: input, shape index: {}]   ;;  %s11489_s18 = inlined_call_operand.vmem [shape: f32[1,64], index: 18, kind: input, shape index: {}]   ;;  %s11490_s19 = inlined_call_operand.vmem [shape: f32[64,32], index: 19, kind: input, shape index: {}]   ;;  %s11491_s20 = inlined_call_operand.hbm [shape: f32[2,32], index: 20, kind: output, shape index: {}]  }
   0x1   :  { %11591 = sst [smem:[#allocation54_spill]] %s11471_s0 }
   0x2   :  { %11592 = sst [smem:[#allocation55_spill]] %s11472_s1 }
   0x3   :  { %11593 = sst [smem:[#allocation56_spill]] %s11473_s2 }
   0x4   :  { %11594 = sst [smem:[#allocation57_spill]] %s11474_s3 }
   0x5   :  { %11595 = sst [smem:[#allocation58_spill]] %s11475_s4 }
   0x6   :  { %11596 = sst [smem:[#allocation59_spill]] %s11489_s18 }
   0x7   :  { %11597 = sst [smem:[#allocation60_spill]] %s11491_s20 }
   0x8   :  { %25 = vsyncpa [#allocation4], 0 }
   0x9   :  { %26 = vsyncpa [#allocation7], 0 }
   0xa   :  { %27 = vsyncpa [#allocation10], 0 }
   0xb   :  { %28 = vsyncpa [#allocation13], 0 }
   0xc   :  { %29 = vsyncpa [#allocation16], 0 }
   0xd   :  { %30 = vsyncpa [#allocation19], 0 }
   0xe   :  { %31 = vsyncpa [#allocation22], 0 }
   0xf   :  { %32 = vsyncpa [#allocation5], 0  ;;  %s9433_s1 = smov [#allocation6]   ;;  %s9434_s23 = smov [#allocation9]  }
  0x10   :  { %s52_s22 = sshll.u32 %s9433_s1, 4  ;;  %s76_s24 = sshll.u32 %s9434_s23, 4  ;;  %s53_s22 = int_to_ptr.vmem [resolvable:$true] %s52_s22  ;;  %s9556_s24 = int_to_ptr.vmem [resolvable:$true] %s76_s24 }
  0x11   :  { %s11598_s3 = sld [smem:[#allocation56_spill]] }
  0x17   :  { %s9131_s26 = scalar_lea.hbm %s11598_s3, 512 }
  0x18   :  { %p9132_p0 = scmp.ne.s32.totalorder %s11598_s3, %s9131_s26  ;;  %p9135_p1 = scmp.lt.u32.totalorder %s9131_s26, %s11598_s3 }
  0x1a   :  { %p9137_p2 = pnand %p9135_p1, %p9132_p0 }
  0x1c   :  { %9140 = shalt.err (!%p9137_p2)
}
  0x1d   :  { %s9141_s30 = scalar_lea.vmem %s53_s22, 512  ;;  %p9146_p4 = scmp.lt.s32.totalorder %s53_s22, %s53_s22 }
  0x1e   :  { %p9142_p3 = scmp.ne.s32.totalorder %s53_s22, %s9141_s30  ;;  %p9147_p5 = scmp.lt.s32.totalorder %s9141_s30, %s9141_s30 }
  0x20   :  { %p9148_p6 = por %p9147_p5, %p9146_p4 }
  0x22   :  { %p9149_p7 = pnand %p9148_p6, %p9142_p3 }
  0x24   :  { %9152 = shalt.err (!%p9149_p7)
}
  0x25   :  { %s9435_s0 = smov 128   ;;  %s9436_s21 = smov 8  }
  0x26   :  { %58 = dma.hbm_to_vmem [thread:$0]  %s11598_s3, 512, %s53_s22, [#allocation7], %s9435_s0, %s9435_s0, %s9436_s21  }
  0x27   :  { %s11599_s26 = sld [smem:[#allocation58_spill]] }
  0x2d   :  { %s9153_s27 = scalar_lea.hbm %s11599_s26, 2304 }
  0x2e   :  { %p9154_p8 = scmp.ne.s32.totalorder %s11599_s26, %s9153_s27  ;;  %p9157_p9 = scmp.lt.u32.totalorder %s9153_s27, %s11599_s26 }
  0x30   :  { %p9159_p10 = pnand %p9157_p9, %p9154_p8 }
  0x32   :  { %9162 = shalt.err (!%p9159_p10)
}
  0x33   :  { %s9163_s20 = scalar_lea.vmem %s9556_s24, 2304  ;;  %p9168_p12 = scmp.lt.s32.totalorder %s9556_s24, %s9556_s24 }
  0x34   :  { %p9164_p11 = scmp.ne.s32.totalorder %s9556_s24, %s9163_s20  ;;  %p9169_p13 = scmp.lt.s32.totalorder %s9163_s20, %s9163_s20 }
  0x36   :  { %p9170_p0 = por %p9169_p13, %p9168_p12 }
  0x38   :  { %p9171_p1 = pnand %p9170_p0, %p9164_p11 }
  0x3a   :  { %9174 = shalt.err (!%p9171_p1)
}
  0x3b   :  { %82 = dma.hbm_to_vmem [thread:$0]  %s11599_s26, 2304, %s9556_s24, [#allocation10], %s9435_s0, %s9435_s0, %s9436_s21  }
  0x3c   :  { %s9437_s1 = smov [#allocation12]   ;;  %s9438_s2 = smov [#allocation15]  }
  0x3d   :  { %s101_s23 = sshll.u32 %s9437_s1, 4  ;;  %s120_s25 = sshll.u32 %s9438_s2, 4  ;;  %s102_s23 = int_to_ptr.vmem [resolvable:$true] %s101_s23  ;;  %s9593_s25 = int_to_ptr.vmem [resolvable:$true] %s120_s25 }
  0x3e   :  { %s9175_s28 = scalar_lea.hbm %s11478_s7, 16 }
  0x3f   :  { %p9176_p2 = scmp.ne.s32.totalorder %s11478_s7, %s9175_s28  ;;  %p9179_p3 = scmp.lt.u32.totalorder %s9175_s28, %s11478_s7 }
  0x41   :  { %p9181_p4 = pnand %p9179_p3, %p9176_p2 }
  0x43   :  { %9184 = shalt.err (!%p9181_p4)
}
  0x44   :  { %s9185_s24 = scalar_lea.vmem %s102_s23, 16  ;;  %s9189_s26 = scalar_lea.vmem %s102_s23, 32 }
  0x45   :  { %p9186_p5 = scmp.ne.s32.totalorder %s102_s23, %s9185_s24  ;;  %p9190_p6 = scmp.lt.s32.totalorder %s102_s23, %s102_s23 }
  0x46   :  { %p9191_p7 = scmp.lt.s32.totalorder %s9189_s26, %s9185_s24 }
  0x48   :  { %p9192_p8 = por %p9191_p7, %p9190_p6 }
  0x4a   :  { %p9193_p9 = pnand %p9192_p8, %p9186_p5 }
  0x4c   :  { %9196 = shalt.err (!%p9193_p9)
}
  0x4d   :  { %104 = dma.hbm_to_vmem [thread:$0]  %s11478_s7, 16, %s102_s23, [#allocation13]  }
  0x4e   :  { %s9197_s27 = scalar_lea.hbm %s11480_s9, 512 }
  0x4f   :  { %p9198_p10 = scmp.ne.s32.totalorder %s11480_s9, %s9197_s27  ;;  %p9201_p11 = scmp.lt.u32.totalorder %s9197_s27, %s11480_s9 }
  0x51   :  { %p9203_p12 = pnand %p9201_p11, %p9198_p10 }
  0x53   :  { %9206 = shalt.err (!%p9203_p12)
}
  0x54   :  { %s9207_s29 = scalar_lea.vmem %s9593_s25, 512  ;;  %p9212_p0 = scmp.lt.s32.totalorder %s9593_s25, %s9593_s25 }
  0x55   :  { %p9208_p13 = scmp.ne.s32.totalorder %s9593_s25, %s9207_s29  ;;  %p9213_p1 = scmp.lt.s32.totalorder %s9207_s29, %s9207_s29 }
  0x57   :  { %p9214_p2 = por %p9213_p1, %p9212_p0 }
  0x59   :  { %p9215_p3 = pnand %p9214_p2, %p9208_p13 }
  0x5b   :  { %9218 = shalt.err (!%p9215_p3)
}
  0x5c   :  { %126 = dma.hbm_to_vmem [thread:$0]  %s11480_s9, 512, %s9593_s25, [#allocation16], %s9435_s0, %s9435_s0, %s9436_s21  }
  0x5d   :  { %s9439_s30 = smov [#allocation18]   ;;  %s9440_s26 = smov [#allocation3]  }
  0x5e   :  { %s146_s24 = sshll.u32 %s9439_s30, 4  ;;  %s40_s22 = sshll.u32 %s9440_s26, 4  ;;  %s147_s24 = int_to_ptr.vmem [resolvable:$true] %s146_s24  ;;  %s9627_s22 = int_to_ptr.vmem [resolvable:$true] %s40_s22 }
  0x5f   :  { %s9219_s2 = scalar_lea.hbm %s11483_s12, 4608 }
  0x60   :  { %p9220_p4 = scmp.ne.s32.totalorder %s11483_s12, %s9219_s2  ;;  %p9223_p5 = scmp.lt.u32.totalorder %s9219_s2, %s11483_s12 }
  0x62   :  { %p9225_p6 = pnand %p9223_p5, %p9220_p4 }
  0x64   :  { %9228 = shalt.err (!%p9225_p6)
}
  0x65   :  { %s9229_s9 = scalar_lea.vmem %s147_s24, 4608  ;;  %p9234_p8 = scmp.lt.s32.totalorder %s147_s24, %s147_s24 }
  0x66   :  { %p9230_p7 = scmp.ne.s32.totalorder %s147_s24, %s9229_s9  ;;  %p9235_p9 = scmp.lt.s32.totalorder %s9229_s9, %s9229_s9 }
  0x68   :  { %p9236_p10 = por %p9235_p9, %p9234_p8 }
  0x6a   :  { %p9237_p11 = pnand %p9236_p10, %p9230_p7 }
  0x6c   :  { %9240 = shalt.err (!%p9237_p11)
}
  0x6d   :  { %152 = dma.hbm_to_vmem [thread:$0]  %s11483_s12, 4608, %s147_s24, [#allocation19], %s9435_s0, %s9435_s0, %s9436_s21  }
  0x6e   :  { %s11600_s23 = sld [smem:[#allocation55_spill]] }
  0x74   :  { %s9241_s30 = scalar_lea.hbm %s11600_s23, 512 }
  0x75   :  { %p9242_p12 = scmp.ne.s32.totalorder %s11600_s23, %s9241_s30  ;;  %p9245_p13 = scmp.lt.u32.totalorder %s9241_s30, %s11600_s23 }
  0x77   :  { %p9247_p0 = pnand %p9245_p13, %p9242_p12 }
  0x79   :  { %9250 = shalt.err (!%p9247_p0)
}
  0x7a   :  { %s9251_s27 = scalar_lea.vmem %s9627_s22, 512  ;;  %p9256_p2 = scmp.lt.s32.totalorder %s9627_s22, %s9627_s22 }
  0x7b   :  { %p9252_p1 = scmp.ne.s32.totalorder %s9627_s22, %s9251_s27  ;;  %p9257_p3 = scmp.lt.s32.totalorder %s9251_s27, %s9251_s27 }
  0x7d   :  { %p9258_p4 = por %p9257_p3, %p9256_p2 }
  0x7f   :  { %p9259_p5 = pnand %p9258_p4, %p9252_p1 }
  0x81   :  { %9262 = shalt.err (!%p9259_p5)
}
  0x82   :  { %46 = dma.hbm_to_vmem [thread:$0]  %s11600_s23, 512, %s9627_s22, [#allocation4], %s9435_s0, %s9435_s0, %s9436_s21  }
  0x83   :  { %s9441_s18 = smov [#allocation8]   ;;  %s9442_s28 = smov [#allocation11]  }
  0x84   :  { %s64_s20 = sshll.u32 %s9441_s18, 4  ;;  %s89_s9 = sshll.u32 %s9442_s28, 4  ;;  %s65_s20 = int_to_ptr.vmem [resolvable:$true] %s64_s20  ;;  %s90_s9 = int_to_ptr.vmem [resolvable:$true] %s89_s9 }
  0x85   :  { %s11601_s29 = sld [smem:[#allocation57_spill]] }
  0x8b   :  { %s9263_s7 = scalar_lea.hbm %s11601_s29, 256 }
  0x8c   :  { %p9264_p6 = scmp.ne.s32.totalorder %s11601_s29, %s9263_s7  ;;  %p9267_p7 = scmp.lt.u32.totalorder %s9263_s7, %s11601_s29 }
  0x8e   :  { %p9269_p8 = pnand %p9267_p7, %p9264_p6 }
  0x90   :  { %9272 = shalt.err (!%p9269_p8)
}
  0x91   :  { %s9273_s22 = scalar_lea.vmem %s65_s20, 256  ;;  %p9278_p10 = scmp.lt.s32.totalorder %s65_s20, %s65_s20 }
  0x92   :  { %p9274_p9 = scmp.ne.s32.totalorder %s65_s20, %s9273_s22  ;;  %p9279_p11 = scmp.lt.s32.totalorder %s9273_s22, %s9273_s22 }
  0x94   :  { %p9280_p12 = por %p9279_p11, %p9278_p10 }
  0x96   :  { %p9281_p13 = pnand %p9280_p12, %p9274_p9 }
  0x98   :  { %9284 = shalt.err (!%p9281_p13)
}
  0x99   :  { %70 = dma.hbm_to_vmem [thread:$0]  %s11601_s29, 256, %s65_s20, [#allocation7], %s9435_s0, %s9435_s0, %s9436_s21  }
  0x9a   :  { %s9285_s24 = scalar_lea.hbm %s11476_s5, 16 }
  0x9b   :  { %p9286_p0 = scmp.ne.s32.totalorder %s11476_s5, %s9285_s24  ;;  %p9289_p1 = scmp.lt.u32.totalorder %s9285_s24, %s11476_s5 }
  0x9d   :  { %p9291_p2 = pnand %p9289_p1, %p9286_p0 }
  0x9f   :  { %9294 = shalt.err (!%p9291_p2)
}
  0xa0   :  { %s9295_s7 = scalar_lea.vmem %s90_s9, 16  ;;  %s9299_s30 = scalar_lea.vmem %s90_s9, 32 }
  0xa1   :  { %p9296_p3 = scmp.ne.s32.totalorder %s90_s9, %s9295_s7  ;;  %p9300_p4 = scmp.lt.s32.totalorder %s90_s9, %s90_s9 }
  0xa2   :  { %p9301_p5 = scmp.lt.s32.totalorder %s9299_s30, %s9295_s7 }
  0xa4   :  { %p9302_p6 = por %p9301_p5, %p9300_p4 }
  0xa6   :  { %p9303_p7 = pnand %p9302_p6, %p9296_p3 }
  0xa8   :  { %9306 = shalt.err (!%p9303_p7)
}
  0xa9   :  { %92 = dma.hbm_to_vmem [thread:$0]  %s11476_s5, 16, %s90_s9, [#allocation10]  }
  0xaa   :  { %s9443_s26 = smov [#allocation14]   ;;  %s9444_s1 = smov [#allocation17]  }
  0xab   :  { %s111_s3 = sshll.u32 %s9443_s26, 4  ;;  %s132_s22 = sshll.u32 %s9444_s1, 4  ;;  %s112_s3 = int_to_ptr.vmem [resolvable:$true] %s111_s3  ;;  %s9691_s22 = int_to_ptr.vmem [resolvable:$true] %s132_s22 }
  0xac   :  { %s9307_s27 = scalar_lea.hbm %s11479_s8, 128 }
  0xad   :  { %p9308_p8 = scmp.ne.s32.totalorder %s11479_s8, %s9307_s27  ;;  %p9311_p9 = scmp.lt.u32.totalorder %s9307_s27, %s11479_s8 }
  0xaf   :  { %p9313_p10 = pnand %p9311_p9, %p9308_p8 }
  0xb1   :  { %9316 = shalt.err (!%p9313_p10)
}
  0xb2   :  { %s9317_s5 = scalar_lea.vmem %s112_s3, 128  ;;  %p9322_p12 = scmp.lt.s32.totalorder %s112_s3, %s112_s3 }
  0xb3   :  { %p9318_p11 = scmp.ne.s32.totalorder %s112_s3, %s9317_s5  ;;  %p9323_p13 = scmp.lt.s32.totalorder %s9317_s5, %s9317_s5 }
  0xb5   :  { %p9324_p0 = por %p9323_p13, %p9322_p12 }
  0xb7   :  { %p9325_p1 = pnand %p9324_p0, %p9318_p11 }
  0xb9   :  { %9328 = shalt.err (!%p9325_p1)
}
  0xba   :  { %114 = dma.hbm_to_vmem [thread:$0]  %s11479_s8, 128, %s112_s3, [#allocation13]  }
  0xbb   :  { %s9329_s30 = scalar_lea.hbm %s11481_s10, 4608 }
  0xbc   :  { %p9330_p2 = scmp.ne.s32.totalorder %s11481_s10, %s9329_s30  ;;  %p9333_p3 = scmp.lt.u32.totalorder %s9329_s30, %s11481_s10 }
  0xbe   :  { %p9335_p4 = pnand %p9333_p3, %p9330_p2 }
  0xc0   :  { %9338 = shalt.err (!%p9335_p4)
}
  0xc1   :  { %s9339_s23 = scalar_lea.vmem %s9691_s22, 4608  ;;  %p9344_p6 = scmp.lt.s32.totalorder %s9691_s22, %s9691_s22 }
  0xc2   :  { %p9340_p5 = scmp.ne.s32.totalorder %s9691_s22, %s9339_s23  ;;  %p9345_p7 = scmp.lt.s32.totalorder %s9339_s23, %s9339_s23 }
  0xc4   :  { %p9346_p8 = por %p9345_p7, %p9344_p6 }
  0xc6   :  { %p9347_p9 = pnand %p9346_p8, %p9340_p5 }
  0xc8   :  { %9350 = shalt.err (!%p9347_p9)
}
  0xc9   :  { %138 = dma.hbm_to_vmem [thread:$0]  %s11481_s10, 4608, %s9691_s22, [#allocation16], %s9435_s0, %s9435_s0, %s9436_s21  }
  0xca   :  { %s9445_s2 = smov [#allocation20]   ;;  %s9446_s12 = smov [#allocation21]  }
  0xcb   :  { %s162_s27 = sshll.u32 %s9445_s2, 4  ;;  %s176_s24 = sshll.u32 %s9446_s12, 4  ;;  %s163_s27 = int_to_ptr.vmem [resolvable:$true] %s162_s27  ;;  %s9725_s24 = int_to_ptr.vmem [resolvable:$true] %s176_s24 }
  0xcc   :  { %s9351_s5 = scalar_lea.hbm %s11486_s15, 9216 }
  0xcd   :  { %p9352_p10 = scmp.ne.s32.totalorder %s11486_s15, %s9351_s5  ;;  %p9355_p11 = scmp.lt.u32.totalorder %s9351_s5, %s11486_s15 }
  0xcf   :  { %p9357_p12 = pnand %p9355_p11, %p9352_p10 }
  0xd1   :  { %9360 = shalt.err (!%p9357_p12)
}
  0xd2   :  { %s9361_s10 = scalar_lea.vmem %s163_s27, 9216  ;;  %p9366_p0 = scmp.lt.s32.totalorder %s163_s27, %s163_s27 }
  0xd3   :  { %p9362_p13 = scmp.ne.s32.totalorder %s163_s27, %s9361_s10  ;;  %p9367_p1 = scmp.lt.s32.totalorder %s9361_s10, %s9361_s10 }
  0xd5   :  { %p9368_p2 = por %p9367_p1, %p9366_p0 }
  0xd7   :  { %p9369_p3 = pnand %p9368_p2, %p9362_p13 }
  0xd9   :  { %9372 = shalt.err (!%p9369_p3)
}
  0xda   :  { %168 = dma.hbm_to_vmem [thread:$0]  %s11486_s15, 9216, %s163_s27, [#allocation19], %s9435_s0, %s9435_s0, %s9436_s21  }
  0xdb   :  { %s9373_s26 = scalar_lea.hbm %s11488_s17, 9216 }
  0xdc   :  { %p9374_p4 = scmp.ne.s32.totalorder %s11488_s17, %s9373_s26  ;;  %p9377_p5 = scmp.lt.u32.totalorder %s9373_s26, %s11488_s17 }
  0xde   :  { %p9379_p6 = pnand %p9377_p5, %p9374_p4 }
  0xe0   :  { %9382 = shalt.err (!%p9379_p6)
}
  0xe1   :  { %s9383_s2 = scalar_lea.vmem %s9725_s24, 9216  ;;  %p9388_p8 = scmp.lt.s32.totalorder %s9725_s24, %s9725_s24 }
  0xe2   :  { %p9384_p7 = scmp.ne.s32.totalorder %s9725_s24, %s9383_s2  ;;  %p9389_p9 = scmp.lt.s32.totalorder %s9383_s2, %s9383_s2 }
  0xe4   :  { %p9390_p10 = por %p9389_p9, %p9388_p8 }
  0xe6   :  { %p9391_p11 = pnand %p9390_p10, %p9384_p7 }
  0xe8   :  { %9394 = shalt.err (!%p9391_p11)
}
  0xe9   :  { %182 = dma.hbm_to_vmem [thread:$0]  %s11488_s17, 9216, %s9725_s24, [#allocation22], %s9435_s0, %s9435_s0, %s9436_s21  }
  0xea   :  { %9417 = dma.done.wait [#allocation4], 512  }
  0xeb   :  { %9418 = vsyncadd [#allocation4], 4294966784 }
  0xec   :  { %9419 = dma.done.wait [#allocation7], 768  }
  0xed   :  { %9420 = vsyncadd [#allocation7], 4294966528 }
  0xee   :  { %9421 = dma.done.wait [#allocation10], 2320  }
  0xef   :  { %9422 = vsyncadd [#allocation10], 4294964976 }
  0xf0   :  { %9423 = dma.done.wait [#allocation13], 144  }
  0xf1   :  { %9424 = vsyncadd [#allocation13], 4294967152 }
  0xf2   :  { %9425 = dma.done.wait [#allocation16], 5120  }
  0xf3   :  { %9426 = vsyncadd [#allocation16], 4294962176 }
  0xf4   :  { %9427 = dma.done.wait [#allocation19], 13824  }
  0xf5   :  { %9428 = vsyncadd [#allocation19], 4294953472 }
  0xf6   :  { %9429 = dma.done.wait [#allocation22], 9216  }
  0xf7   :  { %9430 = vsyncadd [#allocation22], 4294958080  ;;  %vm11498_vm0 = vcmask 261120   ;;  %v260_v0 = vlaneseq  ;;  %v11518_v1 = vmov 0.0   ;;  %vm11499_vm1 = vcmask 1042432   ;;  %s11605_s21 = sld [smem:[#allocation54_spill]] }
  0xf8   :  { %225 = vst.msk [vmem:[#allocation2 + $0x8] sm:$0xff] %vm11498_vm0, %v11518_v1  ;;  %226 = vst.msk [vmem:[#allocation2 + $0x10] sm:$0xff] %vm11498_vm0, %v11518_v1  ;;  %7941 = vmatprep.mubr.f32.mxu0 %v11518_v1  ;;  %7915 = vmatprep.mubr.f32.mxu1 %v11518_v1  ;;  %vm11504_vm2 = vcmask 23552   ;;  %v470_v5 = vld [vmem:[#allocation3] sm:$0x7]  ;;  %v11607_v29 = vmov 0 }
  0xf9   :  { %227 = vst.msk [vmem:[#allocation2 + $0x18] sm:$0xff] %vm11498_vm0, %v11518_v1  ;;  %228 = vst.msk [vmem:[#allocation2 + $0x20] sm:$0xff] %vm11498_vm0, %v11518_v1  ;;  %v9800_v2 = vshrl.u32 %v260_v0, 7  ;;  %7939 = vmatprep.subr.msk.mxu0 %vm11499_vm1, %v470_v5  ;;  %v1009_v10 = vld [vmem:[#allocation3 + $0x6] sm:$0x7]  ;;  %v11609_v30 = vmov 0 }
  0xfa   :  { %229 = vst.msk [vmem:[#allocation2 + $0x28] sm:$0xff] %vm11498_vm0, %v11518_v1  ;;  %230 = vst.msk [vmem:[#allocation2 + $0x30] sm:$0xff] %vm11498_vm0, %v11518_v1  ;;  %7940 = vmatpush3.msk.msra.mxu0 %vm11499_vm1, %v470_v5  ;;  %v11611_v35 = vmov 0  ;;  %v9932_v43 = vld [vmem:[#allocation3 + $0x9] sm:$0x7]  ;;  %v11619_v56 = vmov 0 }
  0xfb   :  { %231 = vst.msk [vmem:[#allocation2 + $0x38] sm:$0xff] %vm11498_vm0, %v11518_v1  ;;  %232 = vst.msk [vmem:[#allocation2 + $0x40] sm:$0xff] %vm11498_vm0, %v11518_v1  ;;  %v9803_v3 = vadd.s32 8, %v9800_v2  ;;  %v9806_v4 = vadd.s32 16, %v9800_v2  ;;  %v9815_v8 = vadd.s32 24, %v9800_v2  ;;  %v9824_v11 = vadd.s32 32, %v9800_v2  ;;  %7965 = vmatprep.subr.msk.mxu0 %vm11499_vm1, %v1009_v10 }
  0xfc   :  { %233 = vst.msk [vmem:[#allocation2 + $0x48] sm:$0xff] %vm11498_vm0, %v11518_v1  ;;  %234 = vst.msk [vmem:[#allocation2 + $0x50] sm:$0xff] %vm11498_vm0, %v11518_v1  ;;  %v9854_v21 = vadd.s32 40, %v9800_v2  ;;  %v9857_v22 = vadd.s32 48, %v9800_v2  ;;  %v9916_v38 = vadd.s32 56, %v9800_v2  ;;  %v9955_v50 = vadd.s32 72, %v9800_v2 }
  0xfd   :  { %235 = vst.msk [vmem:[#allocation2 + $0x58] sm:$0xff] %vm11498_vm0, %v11518_v1  ;;  %236 = vst.msk [vmem:[#allocation2 + $0x60] sm:$0xff] %vm11498_vm0, %v11518_v1  ;;  %v244_v6 = vld [vmem:[%s11605_s21] sm:$0xff]  ;;  %v245_v7 = vld [vmem:[%s11605_s21 + $0x8] sm:$0xff]  ;;  %v294_v12 = vand.u32 7, %v9803_v3  ;;  %v295_v13 = vand.u32 7, %v9806_v4 }
  0xfe   :  { %237 = vst.msk [vmem:[#allocation2 + $0x68] sm:$0xff] %vm11498_vm0, %v11518_v1  ;;  %238 = vst.msk [vmem:[#allocation2 + $0x70] sm:$0xff] %vm11498_vm0, %v11518_v1  ;;  %v246_v9 = vld [vmem:[%s11605_s21 + $0x10] sm:$0xff]  ;;  %v247_v14 = vld [vmem:[%s11605_s21 + $0x18] sm:$0xff]  ;;  %v296_v20 = vand.u32 7, %v9815_v8  ;;  %v297_v26 = vand.u32 7, %v9824_v11 }
  0xff   :  { %239 = vst.msk [vmem:[#allocation2 + $0x78] sm:$0xff] %vm11498_vm0, %v11518_v1  ;;  %240 = vst.msk [vmem:[#allocation2 + $0x80] sm:$0xff] %vm11498_vm0, %v11518_v1  ;;  %v248_v15 = vld [vmem:[%s11605_s21 + $0x20] sm:$0xff]  ;;  %v249_v16 = vld [vmem:[%s11605_s21 + $0x28] sm:$0xff]  ;;  %vm9883_vm3 = vcmp.ge.s32.totalorder %v294_v12, 1  ;;  %vm9889_vm4 = vcmp.ge.s32.totalorder %v295_v13, 1 }
 0x100   :  { %241 = vst.msk [vmem:[#allocation2 + $0x88] sm:$0xff] %vm11498_vm0, %v11518_v1  ;;  %242 = vst.msk [vmem:[#allocation2 + $0x90] sm:$0xff] %vm11498_vm0, %v11518_v1  ;;  %v250_v17 = vld [vmem:[%s11605_s21 + $0x30] sm:$0xff]  ;;  %v251_v18 = vld [vmem:[%s11605_s21 + $0x38] sm:$0xff]  ;;  %v11608_v29 = vsel %vm9883_vm3, 4294967295, %v11607_v29  ;;  %v11610_v30 = vsel %vm9889_vm4, 4294967295, %v11609_v30 }
 0x101   :  { %11602 = vst [vmem:[#allocation32_spill] sm:$0xff] %v9800_v2  ;;  %11603 = vst [vmem:[#allocation33_spill] sm:$0xff] %v9803_v3  ;;  %v252_v19 = vld [vmem:[%s11605_s21 + $0x40] sm:$0xff]  ;;  %v253_v23 = vld [vmem:[%s11605_s21 + $0x48] sm:$0xff]  ;;  %vm9909_vm5 = vcmp.ge.s32.totalorder %v296_v20, 1  ;;  %v298_v36 = vand.u32 7, %v9854_v21 }
 0x102   :  { %11604 = vst [vmem:[#allocation34_spill] sm:$0xff] %v9806_v4  ;;  %11606 = vst [vmem:[#allocation35_spill] sm:$0xff] %v9815_v8  ;;  %v254_v24 = vld [vmem:[%s11605_s21 + $0x50] sm:$0xff]  ;;  %v255_v25 = vld [vmem:[%s11605_s21 + $0x58] sm:$0xff]  ;;  %v11612_v35 = vsel %vm9909_vm5, 4294967295, %v11611_v35  ;;  %v299_v37 = vand.u32 7, %v9857_v22 }
 0x103   :  { %374 = vst.msk [vmem:[#allocation2 + $0x10] sm:$0xff] %vm11504_vm2, %v244_v6  ;;  %375 = vst.msk [vmem:[#allocation2 + $0x18] sm:$0xff] %vm11504_vm2, %v245_v7  ;;  %v256_v27 = vld [vmem:[%s11605_s21 + $0x60] sm:$0xff]  ;;  %v257_v28 = vld [vmem:[%s11605_s21 + $0x68] sm:$0xff]  ;;  %vm9928_vm6 = vcmp.ge.s32.totalorder %v297_v26, 1  ;;  %vm9947_vm7 = vcmp.ge.s32.totalorder %v298_v36, 1 }
 0x104   :  { %376 = vst.msk [vmem:[#allocation2 + $0x20] sm:$0xff] %vm11504_vm2, %v246_v9  ;;  %377 = vst.msk [vmem:[#allocation2 + $0x28] sm:$0xff] %vm11504_vm2, %v247_v14  ;;  %v258_v31 = vld [vmem:[%s11605_s21 + $0x70] sm:$0xff]  ;;  %v259_v32 = vld [vmem:[%s11605_s21 + $0x78] sm:$0xff]  ;;  %v300_v49 = vand.u32 7, %v9916_v38  ;;  %vm9961_vm8 = vcmp.ge.s32.totalorder %v299_v37, 1 }
 0x105   :  { %378 = vst.msk [vmem:[#allocation2 + $0x30] sm:$0xff] %vm11504_vm2, %v248_v15  ;;  %379 = vst.msk [vmem:[#allocation2 + $0x38] sm:$0xff] %vm11504_vm2, %v249_v16  ;;  %v9968_v53 = vadd.s32 80, %v9800_v2  ;;  %v302_v58 = vand.u32 7, %v9955_v50  ;;  %v9988_v59 = vadd.s32 88, %v9800_v2  ;;  %v9992_v61 = vadd.s32 96, %v9800_v2 }
 0x106   :  { %380 = vst.msk [vmem:[#allocation2 + $0x40] sm:$0xff] %vm11504_vm2, %v250_v17  ;;  %381 = vst.msk [vmem:[#allocation2 + $0x48] sm:$0xff] %vm11504_vm2, %v251_v18  ;;  %vm9980_vm9 = vcmp.ge.s32.totalorder %v300_v49, 1  ;;  %v10009_v6 = vadd.s32 104, %v9800_v2  ;;  %v10021_v14 = vadd.s32 112, %v9800_v2  ;;  %v11625_v17 = vmov 0 }
 0x107   :  { %382 = vst.msk [vmem:[#allocation2 + $0x50] sm:$0xff] %vm11504_vm2, %v252_v19  ;;  %383 = vst.msk [vmem:[#allocation2 + $0x58] sm:$0xff] %vm11504_vm2, %v253_v23  ;;  %v11620_v56 = vsel %vm9980_vm9, 4294967295, %v11619_v56  ;;  %v11522_v60 = vand.u32 7, %v9968_v53  ;;  %vm10001_vm10 = vcmp.ge.s32.totalorder %v302_v58, 1  ;;  %v11515_v5 = vand.u32 7, %v9988_v59 }
 0x108   :  { %384 = vst.msk [vmem:[#allocation2 + $0x60] sm:$0xff] %vm11504_vm2, %v254_v24  ;;  %385 = vst.msk [vmem:[#allocation2 + $0x68] sm:$0xff] %vm11504_vm2, %v255_v25  ;;  %v11505_v19 = vand.u32 7, %v10009_v6  ;;  %v10041_v23 = vadd.s32 120, %v9800_v2  ;;  %v11627_v24 = vmov 0  ;;  %v11672_v3 = vmov 0 }
 0x109   :  { %386 = vst.msk [vmem:[#allocation2 + $0x70] sm:$0xff] %vm11504_vm2, %v256_v27  ;;  %387 = vst.msk [vmem:[#allocation2 + $0x78] sm:$0xff] %vm11504_vm2, %v257_v28  ;;  %vm10013_vm11 = vcmp.ge.s32.totalorder %v11522_v60, 1  ;;  %vm10033_vm12 = vcmp.ge.s32.totalorder %v11515_v5, 1  ;;  %v11503_v27 = vand.u32 7, %v10021_v14  ;;  %v10169_v5 = vadd.s32 64, %v9800_v2 }
 0x10a   :  { %388 = vst.msk [vmem:[#allocation2 + $0x80] sm:$0xff] %vm11504_vm2, %v258_v31  ;;  %389 = vst.msk [vmem:[#allocation2 + $0x88] sm:$0xff] %vm11504_vm2, %v259_v32  ;;  %v9903_v33 = vld [vmem:[#allocation2 + $0xf] sm:$0xff]  ;;  %v9905_v34 = vld [vmem:[#allocation2 + $0x17] sm:$0xff]  ;;  %v11626_v17 = vsel %vm10033_vm12, 4294967295, %v11625_v17  ;;  %vm10062_vm14 = vcmp.ge.s32.totalorder %v11505_v19, 1 }
 0x10b   :  { %v455_v39 = vsel %vm9883_vm3, %v9903_v33, 0.0  ;;  %v9921_v40 = vld [vmem:[#allocation2 + $0x1f] sm:$0xff]  ;;  %v456_v41 = vsel %vm9889_vm4, %v9905_v34, 0.0  ;;  %v9935_v44 = vld [vmem:[#allocation2 + $0x27] sm:$0xff]  ;;  %v11629_v32 = vmov 0  ;;  %vm10071_vm15 = vcmp.ge.s32.totalorder %v11503_v27, 1 }
 0x10c   :  { %7942 = vmatmul.mubr.msk.f32.vlgmr.msra.gmra.mrb[0].mxu0 %vm11504_vm2, %v455_v39  ;;  %v457_v45 = vsel %vm9909_vm5, %v9921_v40, 0.0  ;;  %v458_v46 = vsel %vm9928_vm6, %v9935_v44, 0.0  ;;  %v9951_v48 = vld [vmem:[#allocation2 + $0x2f] sm:$0xff]  ;;  %v9965_v52 = vld [vmem:[#allocation2 + $0x37] sm:$0xff]  ;;  %v11630_v32 = vsel %vm10062_vm14, 4294967295, %v11629_v32  ;;  %v10128_v27 = vld [vmem:[#allocation2 + $0x21] sm:$0xff] }
 0x10d   :  { %7944 = vmatprep.mubr.msk.f32.mxu0 %vm11504_vm2, %v456_v41  ;;  %7966 = vmatpush3.msk.msra.mxu0 %vm11499_vm1, %v1009_v10  ;;  %v459_v54 = vsel %vm9947_vm7, %v9951_v48, 0.0  ;;  %v460_v55 = vsel %vm9961_vm8, %v9965_v52, 0.0  ;;  %v9984_v57 = vld [vmem:[#allocation2 + $0x3f] sm:$0xff]  ;;  %v11506_v10 = vand.u32 7, %v9992_v61  ;;  %v11501_v41 = vand.u32 7, %v10041_v23  ;;  %v10136_v19 = vld [vmem:[#allocation2 + $0x29] sm:$0xff] }
 0x10e   :  { %7991 = vmatprep.subr.msk.mxu0 %vm11499_vm1, %v9932_v43  ;;  %v461_v62 = vsel %vm9980_vm9, %v9984_v57, 0.0  ;;  %v10005_v0 = vld [vmem:[#allocation2 + $0x4f] sm:$0xff]  ;;  %v10017_v9 = vld [vmem:[#allocation2 + $0x57] sm:$0xff]  ;;  %vm10100_vm1 = vcmp.lt.s32.totalorder %v294_v12, 7  ;;  %vm10108_vm9 = vcmp.lt.s32.totalorder %v295_v13, 7  ;;  %v11639_v13 = vmov 0 }
 0x10f   :  { %v463_v15 = vsel %vm10001_vm10, %v10005_v0, 0.0  ;;  %v464_v16 = vsel %vm10013_vm11, %v10017_v9, 0.0  ;;  %v10037_v18 = vld [vmem:[#allocation2 + $0x5f] sm:$0xff]  ;;  %vm10045_vm13 = vcmp.ge.s32.totalorder %v11506_v10, 1  ;;  %v10049_v25 = vld [vmem:[#allocation2 + $0x67] sm:$0xff]  ;;  %vm10087_vm0 = vcmp.ge.s32.totalorder %v11501_v41, 1 }
 0x110   :  { %7945 = vmatmul.mubr.msk.f32.gmra.mrb[2].mxu0 %vm11504_vm2, %v457_v45  ;;  %v11628_v24 = vsel %vm10045_vm13, 4294967295, %v11627_v24  ;;  %v465_v28 = vsel %vm10033_vm12, %v10037_v18, 0.0  ;;  %v466_v31 = vsel %vm10045_vm13, %v10049_v25, 0.0  ;;  %v10066_v39 = vld [vmem:[#allocation2 + $0x6f] sm:$0xff]  ;;  %v11631_v45 = vmov 0  ;;  %v10191_v21 = vld [vmem:[#allocation2 + $0x41] sm:$0xff] }
 0x111   :  { %7947 = vmatprep.mubr.msk.f32.mxu0 %vm11504_vm2, %v458_v46  ;;  %v11632_v45 = vsel %vm10071_vm15, 4294967295, %v11631_v45  ;;  %v10075_v46 = vld [vmem:[#allocation2 + $0x77] sm:$0xff]  ;;  %v11637_v41 = vmov 0  ;;  %v10138_v10 = vld [vmem:[#allocation3 + $0xc] sm:$0x7]  ;;  %vm11647_vm5 = vcmask 1042432  }
 0x112   :  { %v11638_v41 = vsel %vm10108_vm9, 4294967295, %v11637_v41  ;;  %vm10152_vm4 = vcmp.lt.s32.totalorder %v298_v36, 7  ;;  %v10210_v60 = vld [vmem:[#allocation2 + $0x51] sm:$0xff]  ;;  %v10218_v36 = vld [vmem:[#allocation2 + $0x59] sm:$0xff]  ;;  %v10246_v50 = vld [vmem:[#allocation2 + $0x61] sm:$0xff]  ;;  %v11675_v4 = vand.u32 7, %v9992_v61 }
 0x113   :  { %11661 = vst [vmem:[#allocation40_spill] sm:$0xff] %v10210_v60  ;;  %v11818_v42 = vsel %vm10013_vm11, %v10049_v25, 0.0  ;;  %s11960_s20 = sld [smem:[#allocation59_spill]]  ;;  %s9450_s29 = smov [#allocation23]  }
 0x114   :  { %7948 = vmatmul.mubr.msk.f32.gmra.mrb[4].mxu0 %vm11504_vm2, %v459_v54  ;;  %v467_v54 = vsel %vm10062_vm14, %v10066_v39, 0.0  ;;  %vm11704_vm14 = vcmask 1042432   ;;  %s7235_s26 = sshll.u32 %s9450_s29, 4  ;;  %s7236_s26 = int_to_ptr.vmem [resolvable:$true] %s7235_s26 }
 0x115   :  { %7950 = vmatprep.mubr.msk.f32.mxu0 %vm11504_vm2, %v460_v55  ;;  %v468_v55 = vsel %vm10071_vm15, %v10075_v46, 0.0  ;;  %vm11701_vm15 = vnez %v11610_v30  ;;  %p9400_p13 = scmp.lt.s32.totalorder %s7236_s26, %s7236_s26 }
 0x118   :  { %7951 = vmatmul.mubr.msk.f32.gmra.mrb[6].mxu0 %vm11504_vm2, %v461_v62  ;;  %v11633_v62 = vmov 0 }
 0x119   :  { %7953 = vmatprep.mubr.f32.mxu0 %v11518_v1  ;;  %v11634_v62 = vsel %vm10087_vm0, 4294967295, %v11633_v62 }
 0x11c   :  { %7954 = vmatmul.mubr.msk.f32.gmra.mrb[8].mxu0 %vm11504_vm2, %v463_v15  ;;  %v10091_v15 = vld [vmem:[#allocation2 + $0x7f] sm:$0xff] }
 0x11d   :  { %7956 = vmatprep.mubr.msk.f32.mxu0 %vm11504_vm2, %v464_v16  ;;  %v469_v16 = vsel %vm10087_vm0, %v10091_v15, 0.0  ;;  %vm10124_vm0 = vcmp.lt.s32.totalorder %v296_v20, 7 }
 0x11e   :  { %v11640_v13 = vsel %vm10124_vm0, 4294967295, %v11639_v13  ;;  %v996_v20 = vsel %vm10124_vm0, %v10128_v27, 0.0 }
 0x11f   :  { %11641 = vst [vmem:[#allocation36_spill] sm:$0xff] %v11640_v13 }
 0x120   :  { %7957 = vmatmul.mubr.msk.f32.gmra.mrb[10].mxu0 %vm11504_vm2, %v465_v28  ;;  %v11635_v28 = vmov 0 }
 0x121   :  { %7959 = vmatprep.mubr.msk.f32.mxu0 %vm11504_vm2, %v466_v31  ;;  %v11636_v28 = vsel %vm10100_vm1, 4294967295, %v11635_v28  ;;  %v10104_v31 = vld [vmem:[#allocation2 + $0x11] sm:$0xff] }
 0x122   :  { %v994_v12 = vsel %vm10100_vm1, %v10104_v31, 0.0  ;;  %vm11645_vm1 = vcmask 23552  }
 0x124   :  { %7960 = vmatmul.mubr.msk.f32.gmra.mrb[12].mxu0 %vm11504_vm2, %v467_v54  ;;  %v10112_v54 = vld [vmem:[#allocation2 + $0x19] sm:$0xff] }
 0x125   :  { %7962 = vmatprep.mubr.msk.f32.mxu0 %vm11504_vm2, %v468_v55  ;;  %v995_v55 = vsel %vm10108_vm9, %v10112_v54, 0.0  ;;  %vm11646_vm9 = vmmov %vm11645_vm1 }
 0x128   :  { %7963 = vmatmul.mubr.msk.f32.gmra.mrb[14].mxu0 %vm11504_vm2, %v469_v16  ;;  %vm10132_vm2 = vcmp.lt.s32.totalorder %v297_v26, 7  ;;  %v11642_v16 = vmov 0  ;;  %v11648_v26 = vmov 0 }
 0x129   :  { %7967 = vmatprep.mubr.f32.mxu0 %v11518_v1  ;;  %v11643_v16 = vsel %vm10132_vm2, 4294967295, %v11642_v16  ;;  %v997_v11 = vsel %vm10132_vm2, %v10136_v19, 0.0  ;;  %v11649_v26 = vsel %vm10152_vm4, 4294967295, %v11648_v26  ;;  %vm11654_vm2 = vmmov %vm11646_vm9  ;;  %v11663_v1 = vmov 0 }
 0x12a   :  { %11644 = vst [vmem:[#allocation37_spill] sm:$0xff] %v11643_v16 }
 0x12c   :  { %7968 = vmatmul.mubr.msk.f32.vlgmr.msra.gmra.mrb[0].mxu0 %vm11645_vm1, %v994_v12  ;;  %v10156_v12 = vld [vmem:[#allocation2 + $0x31] sm:$0xff]  ;;  %vm11650_vm1 = vmmov %vm11647_vm5 }
 0x12d   :  { %7970 = vmatprep.mubr.msk.f32.mxu0 %vm11646_vm9, %v995_v55  ;;  %7992 = vmatpush3.msk.msra.mxu0 %vm11647_vm5, %v9932_v43  ;;  %vm10162_vm5 = vcmp.lt.s32.totalorder %v299_v37, 7  ;;  %v11651_v43 = vmov 0  ;;  %v10166_v55 = vld [vmem:[#allocation2 + $0x39] sm:$0xff]  ;;  %v998_v22 = vsel %vm10152_vm4, %v10156_v12, 0.0  ;;  %vm10250_vm4 = vcmp.lt.s32.totalorder %v11675_v4, 7 }
 0x12e   :  { %8017 = vmatprep.subr.msk.mxu0 %vm11650_vm1, %v10138_v10  ;;  %v11652_v43 = vsel %vm10162_vm5, 4294967295, %v11651_v43  ;;  %v999_v37 = vsel %vm10162_vm5, %v10166_v55, 0.0  ;;  %vm10187_vm1 = vcmp.lt.s32.totalorder %v300_v49, 7  ;;  %vm10206_vm5 = vcmp.lt.s32.totalorder %v302_v58, 7 }
 0x12f   :  { %11653 = vst [vmem:[#allocation38_spill] sm:$0xff] %v11652_v43  ;;  %v1000_v38 = vsel %vm10187_vm1, %v10191_v21, 0.0  ;;  %v11658_v49 = vmov 0  ;;  %v11670_v58 = vmov 0.0   ;;  %v11692_v4 = vmov 0 }
 0x130   :  { %7971 = vmatmul.mubr.msk.f32.gmra.mrb[2].mxu0 %vm11646_vm9, %v996_v20  ;;  %v11655_v20 = vmov 0  ;;  %vm11657_vm9 = vmmov %vm11654_vm2  ;;  %v11659_v49 = vsel %vm10206_vm5, 4294967295, %v11658_v49 }
 0x131   :  { %7973 = vmatprep.mubr.msk.f32.mxu0 %vm11654_vm2, %v997_v11  ;;  %v11656_v20 = vsel %vm10187_vm1, 4294967295, %v11655_v20  ;;  %v10193_v11 = vld [vmem:[#allocation2 + $0x47] sm:$0xff]  ;;  %11660 = vst [vmem:[#allocation39_spill] sm:$0xff] %v11659_v49  ;;  %vm11669_vm1 = vcmask 23552   ;;  %v11676_v49 = vmov 0 }
 0x132   :  { %v11677_v49 = vsel %vm10250_vm4, 4294967295, %v11676_v49 }
 0x133   :  { %11678 = vst [vmem:[#allocation43_spill] sm:$0xff] %v11677_v49  ;;  %v10315_v49 = vld [vmem:[#allocation2 + $0x87] sm:$0xff] }
 0x134   :  { %7974 = vmatmul.mubr.msk.f32.gmra.mrb[4].mxu0 %vm11654_vm2, %v998_v22  ;;  %v11662_v22 = vand.u32 7, %v9968_v53  ;;  %v1002_v53 = vsel %vm10206_vm5, %v10210_v60, 0.0  ;;  %v10254_v60 = vld [vmem:[#allocation2 + $0x69] sm:$0xff]  ;;  %vm11679_vm5 = vcmask 23552  }
 0x135   :  { %7976 = vmatprep.mubr.msk.f32.mxu0 %vm11657_vm9, %v999_v37  ;;  %v11666_v37 = vand.u32 7, %v10169_v5  ;;  %v1005_v61 = vsel %vm10250_vm4, %v10254_v60, 0.0 }
 0x136   :  { %vm10214_vm2 = vcmp.lt.s32.totalorder %v11662_v22, 7  ;;  %v11682_v22 = vmov 0 }
 0x137   :  { %v11664_v1 = vsel %vm10214_vm2, 4294967295, %v11663_v1  ;;  %vm10222_vm9 = vcmp.ge.s32.totalorder %v11666_v37, 1  ;;  %v1003_v37 = vsel %vm10214_vm2, %v10218_v36, 0.0  ;;  %vm11680_vm2 = vmmov %vm11679_vm5 }
 0x138   :  { %11665 = vst [vmem:[#allocation41_spill] sm:$0xff] %v11664_v1  ;;  %7977 = vmatmul.mubr.msk.f32.gmra.mrb[6].mxu0 %vm11669_vm1, %v1000_v38  ;;  %v11671_v38 = vand.u32 7, %v9988_v59  ;;  %v10276_v59 = vld [vmem:[#allocation2 + $0x71] sm:$0xff]  ;;  %v10284_v1 = vld [vmem:[#allocation2 + $0x79] sm:$0xff] }
 0x139   :  { %7979 = vmatprep.mubr.f32.mxu0 %v11670_v58 }
 0x13a   :  { %vm10242_vm1 = vcmp.lt.s32.totalorder %v11671_v38, 7 }
 0x13b   :  { %v11673_v3 = vsel %vm10242_vm1, 4294967295, %v11672_v3  ;;  %v1004_v38 = vsel %vm10242_vm1, %v10246_v50, 0.0  ;;  %vm11689_vm1 = vcmask 23552  }
 0x13c   :  { %11674 = vst [vmem:[#allocation42_spill] sm:$0xff] %v11673_v3  ;;  %7980 = vmatmul.mubr.msk.f32.gmra.mrb[8].mxu0 %vm11679_vm5, %v1002_v53  ;;  %v11681_v53 = vand.u32 7, %v10009_v6  ;;  %v11686_v3 = vmov 0  ;;  %vm11690_vm4 = vmmov %vm11689_vm1  ;;  %v10307_v6 = vld [vmem:[#allocation2 + $0x81] sm:$0xff] }
 0x13d   :  { %7982 = vmatprep.mubr.msk.f32.mxu0 %vm11680_vm2, %v1003_v37  ;;  %v11685_v37 = vand.u32 7, %v10021_v14 }
 0x13e   :  { %vm10272_vm5 = vcmp.lt.s32.totalorder %v11681_v53, 7  ;;  %v10443_v53 = vld [vmem:[#allocation2 + $0x60] sm:$0xff] }
 0x13f   :  { %v11683_v22 = vsel %vm10272_vm5, 4294967295, %v11682_v22  ;;  %vm10280_vm2 = vcmp.lt.s32.totalorder %v11685_v37, 7  ;;  %v1006_v14 = vsel %vm10272_vm5, %v10276_v59, 0.0  ;;  %vm11697_vm5 = vcmask 23552  }
 0x140   :  { %11684 = vst [vmem:[#allocation44_spill] sm:$0xff] %v11683_v22  ;;  %v11687_v3 = vsel %vm10280_vm2, 4294967295, %v11686_v3  ;;  %7983 = vmatmul.mubr.msk.f32.gmra.mrb[10].mxu0 %vm11689_vm1, %v1004_v38  ;;  %v1007_v37 = vsel %vm10280_vm2, %v10284_v1, 0.0  ;;  %v11691_v38 = vand.u32 7, %v10041_v23  ;;  %vm11698_vm2 = vmmov %vm11697_vm5  ;;  %v1792_v23 = vld [vmem:[#allocation3 + $0xf] sm:$0x7] }
 0x141   :  { %11688 = vst [vmem:[#allocation45_spill] sm:$0xff] %v11687_v3  ;;  %7985 = vmatprep.mubr.msk.f32.mxu0 %vm11690_vm4, %v1005_v61  ;;  %v11694_v61 = vand.u32 7, %v9800_v2  ;;  %vm11699_vm0 = vmmov %vm11698_vm2 }
 0x142   :  { %vm10303_vm1 = vcmp.lt.s32.totalorder %v11691_v38, 7 }
 0x143   :  { %v11693_v4 = vsel %vm10303_vm1, 4294967295, %v11692_v4  ;;  %vm10311_vm4 = vcmp.ge.s32.totalorder %v11694_v61, 1  ;;  %v1008_v38 = vsel %vm10303_vm1, %v10307_v6, 0.0  ;;  %vm11703_vm1 = vmmov %vm11699_vm0 }
 0x144   :  { %7986 = vmatmul.mubr.msk.f32.gmra.mrb[12].mxu0 %vm11697_vm5, %v1006_v14  ;;  %v1270_v61 = vsel %vm10311_vm4, %v9903_v33, 0.0  ;;  %v1271_v14 = vsel %vm9883_vm3, %v9905_v34, 0.0  ;;  %vm11700_vm5 = vmmov %vm11699_vm0 }
 0x145   :  { %7988 = vmatprep.mubr.msk.f32.mxu0 %vm11698_vm2, %v1007_v37  ;;  %v1272_v37 = vsel %vm11701_vm15, %v9921_v40, 0.0  ;;  %vm11702_vm2 = vmmov %vm11699_vm0 }
 0x146   :  { %vm11707_vm3 = vmmov %vm11703_vm1 }
 0x147   :  { %vm11708_vm15 = vmmov %vm11703_vm1 }
 0x148   :  { %7989 = vmatmul.mubr.msk.f32.gmra.mrb[14].mxu0 %vm11699_vm0, %v1008_v38  ;;  %vm11705_vm0 = vnez %v11612_v35  ;;  %v1274_v38 = vsel %vm9928_vm6, %v9951_v48, 0.0  ;;  %v11814_v35 = vsel %vm10222_vm9, %v10017_v9, 0.0 }
 0x149   :  { %7993 = vmatprep.mubr.msk.f32.mxu0 %vm11700_vm5, %v1270_v61  ;;  %v1273_v33 = vsel %vm11705_vm0, %v9935_v44, 0.0  ;;  %vm11706_vm5 = vmmov %vm11704_vm14  ;;  %v1275_v61 = vsel %vm9947_vm7, %v9965_v52, 0.0 }
 0x14c   :  { %7994 = vmatmul.mubr.msk.f32.vlgmr.msra.gmra.mrb[0].mxu0 %vm11702_vm2, %v1271_v14  ;;  %vm11710_vm2 = vnez %v11620_v56  ;;  %v1281_v56 = vsel %vm10033_vm12, %v10049_v25, 0.0  ;;  %vm11720_vm12 = vnez %v11634_v62  ;;  %v10408_v62 = vld [vmem:[#allocation2 + $0x28] sm:$0xff] }
 0x14d   :  { %7996 = vmatprep.mubr.msk.f32.mxu0 %vm11703_vm1, %v1272_v37  ;;  %8018 = vmatpush3.msk.msra.mxu0 %vm11704_vm14, %v10138_v10  ;;  %v1276_v10 = vsel %vm9961_vm8, %v9984_v57, 0.0  ;;  %vm11709_vm14 = vmmov %vm11703_vm1  ;;  %v1277_v14 = vsel %vm11710_vm2, %v10193_v11, 0.0  ;;  %v1278_v37 = vsel %vm10222_vm9, %v10005_v0, 0.0  ;;  %v1282_v0 = vsel %vm10045_vm13, %v10066_v39, 0.0 }
 0x14e   :  { %8043 = vmatprep.subr.msk.mxu0 %vm11706_vm5, %v1792_v23  ;;  %vm11713_vm5 = vmmov %vm11703_vm1  ;;  %vm11766_vm13 = vcmask 1042432   ;;  %vm11823_vm9 = vnez %v11628_v24 }
 0x14f   :  { %vm11715_vm2 = vmmov %vm11703_vm1 }
 0x150   :  { %7997 = vmatmul.mubr.msk.f32.gmra.mrb[2].mxu0 %vm11707_vm3, %v1273_v33  ;;  %vm11711_vm3 = vmmov %vm11703_vm1  ;;  %v1279_v33 = vsel %vm10001_vm10, %v10017_v9, 0.0 }
 0x151   :  { %7999 = vmatprep.mubr.msk.f32.mxu0 %vm11708_vm15, %v1274_v38  ;;  %vm11712_vm15 = vmmov %vm11703_vm1  ;;  %v1280_v38 = vsel %vm10013_vm11, %v10037_v18, 0.0  ;;  %vm11829_vm11 = vnez %v11632_v45 }
 0x154   :  { %8000 = vmatmul.mubr.msk.f32.gmra.mrb[4].mxu0 %vm11709_vm14, %v1275_v61  ;;  %vm11714_vm14 = vmmov %vm11703_vm1 }
 0x155   :  { %8002 = vmatprep.mubr.msk.f32.mxu0 %vm11703_vm1, %v1276_v10 }
 0x158   :  { %8003 = vmatmul.mubr.msk.f32.gmra.mrb[6].mxu0 %vm11711_vm3, %v1277_v14  ;;  %vm11716_vm3 = vnez %v11630_v32  ;;  %v1285_v14 = vsel %vm11720_vm12, %v10315_v49, 0.0  ;;  %vm11726_vm12 = vmmov %vm11703_vm1 }
 0x159   :  { %8005 = vmatprep.mubr.msk.f32.mxu0 %vm11712_vm15, %v1278_v37  ;;  %v1283_v61 = vsel %vm11716_vm3, %v10075_v46, 0.0  ;;  %vm11717_vm15 = vnez %v11632_v45  ;;  %v1499_v37 = vld [vmem:[#allocation2 + $0x10] sm:$0xff]  ;;  %vm11722_vm3 = vcmask 1042432  }
 0x15a   :  { %v1284_v10 = vsel %vm11717_vm15, %v10091_v15, 0.0  ;;  %vm11723_vm15 = vmmov %vm11722_vm3 }
 0x15c   :  { %8006 = vmatmul.mubr.msk.f32.gmra.mrb[8].mxu0 %vm11713_vm5, %v1279_v33  ;;  %vm11718_vm5 = vmmov %vm11703_vm1  ;;  %v535_v33 = vld [vmem:[#allocation3 + $0x3] sm:$0x7] }
 0x15d   :  { %8008 = vmatprep.mubr.msk.f32.mxu0 %vm11714_vm14, %v1280_v38  ;;  %vm11719_vm14 = vmmov %vm11703_vm1  ;;  %v10394_v38 = vld [vmem:[#allocation2 + $0x18] sm:$0xff]  ;;  %7913 = vmatprep.subr.msk.mxu1 %vm11722_vm3, %v535_v33 }
 0x15e   :  { %7914 = vmatpush3.msk.msra.mxu1 %vm11723_vm15, %v535_v33  ;;  %vm11730_vm15 = vmmov %vm11703_vm1  ;;  %v10441_v33 = vld [vmem:[#allocation2 + $0x58] sm:$0xff] }
 0x15f   :  { %11743 = vst [vmem:[#allocation50_spill] sm:$0xff] %v10441_v33 }
 0x160   :  { %8009 = vmatmul.mubr.msk.f32.gmra.mrb[10].mxu0 %vm11703_vm1, %v1281_v56  ;;  %v10397_v56 = vld [vmem:[#allocation2 + $0x20] sm:$0xff] }
 0x161   :  { %8011 = vmatprep.mubr.msk.f32.mxu0 %vm11715_vm2, %v1282_v0  ;;  %vm11721_vm2 = vmmov %vm11703_vm1  ;;  %v2085_v0 = vld [vmem:[#allocation3 + $0x12] sm:$0x7] }
 0x164   :  { %8012 = vmatmul.mubr.msk.f32.gmra.mrb[12].mxu0 %vm11718_vm5, %v1283_v61  ;;  %vm11724_vm5 = vmmov %vm11703_vm1  ;;  %v10410_v61 = vld [vmem:[#allocation2 + $0x30] sm:$0xff] }
 0x165   :  { %8014 = vmatprep.mubr.msk.f32.mxu0 %vm11719_vm14, %v1284_v10  ;;  %7916 = vmatmul.mubr.msk.f32.vlgmr.msra.gmra.mrb[0].mxu1 %vm11724_vm5, %v1499_v37  ;;  %vm11725_vm14 = vmmov %vm11703_vm1  ;;  %11728 = vst [vmem:[#allocation46_spill] sm:$0xff] %v10410_v61  ;;  %v10421_v10 = vld [vmem:[#allocation2 + $0x38] sm:$0xff] }
 0x166   :  { %7918 = vmatprep.mubr.msk.f32.mxu1 %vm11726_vm12, %v10394_v38  ;;  %vm11731_vm5 = vmmov %vm11703_vm1  ;;  %11734 = vst [vmem:[#allocation47_spill] sm:$0xff] %v10421_v10  ;;  %v11844_v7 = vld [vmem:[#allocation50_spill] sm:$0xff] }
 0x167   :  { %vm11733_vm12 = vmmov %vm11703_vm1 }
 0x168   :  { %8015 = vmatmul.mubr.msk.f32.gmra.mrb[14].mxu0 %vm11703_vm1, %v1285_v14  ;;  %v10433_v14 = vld [vmem:[#allocation2 + $0x48] sm:$0xff] }
 0x169   :  { %8019 = vmatprep.mubr.msk.f32.mxu0 %vm11721_vm2, %v1499_v37  ;;  %vm11727_vm2 = vmmov %vm11722_vm3  ;;  %7919 = vmatmul.mubr.msk.f32.gmra.mrb[2].mxu1 %vm11730_vm15, %v10397_v56  ;;  %11739 = vst [vmem:[#allocation49_spill] sm:$0xff] %v10433_v14  ;;  %v1507_v37 = vld [vmem:[#allocation2 + $0x50] sm:$0xff] }
 0x16a   :  { %vm11729_vm3 = vmmov %vm11727_vm2 }
 0x16b   :  { %vm11738_vm15 = vmmov %vm11703_vm1 }
 0x16c   :  { %8020 = vmatmul.mubr.msk.f32.vlgmr.msra.gmra.mrb[0].mxu0 %vm11725_vm14, %v10394_v38  ;;  %vm11732_vm14 = vmmov %vm11703_vm1  ;;  %v11836_v51 = vld [vmem:[#allocation46_spill] sm:$0xff] }
 0x16d   :  { %8022 = vmatprep.mubr.msk.f32.mxu0 %vm11703_vm1, %v10397_v56  ;;  %8044 = vmatpush3.msk.msra.mxu0 %vm11727_vm2, %v1792_v23  ;;  %v10423_v23 = vld [vmem:[#allocation2 + $0x40] sm:$0xff]  ;;  %vm11736_vm2 = vmmov %vm11703_vm1 }
 0x16e   :  { %8069 = vmatprep.subr.msk.mxu0 %vm11729_vm3, %v2085_v0  ;;  %7921 = vmatprep.mubr.msk.f32.mxu1 %vm11732_vm14, %v10408_v62  ;;  %11735 = vst [vmem:[#allocation48_spill] sm:$0xff] %v10423_v23  ;;  %vm11737_vm3 = vmmov %vm11703_vm1 }
 0x16f   :  { %7922 = vmatmul.mubr.msk.f32.gmra.mrb[4].mxu1 %vm11703_vm1, %v10410_v61  ;;  %vm11741_vm14 = vmmov %vm11703_vm1 }
 0x170   :  { %8023 = vmatmul.mubr.msk.f32.gmra.mrb[2].mxu0 %vm11731_vm5, %v10408_v62  ;;  %7924 = vmatprep.mubr.msk.f32.mxu1 %vm11737_vm3, %v10421_v10  ;;  %vm11740_vm5 = vmmov %vm11703_vm1  ;;  %v11842_v63 = vld [vmem:[#allocation49_spill] sm:$0xff] }
 0x171   :  { %8025 = vmatprep.mubr.msk.f32.mxu0 %vm11733_vm12, %v10410_v61  ;;  %vm11742_vm12 = vmmov %vm11703_vm1  ;;  %v11754_v61 = vmov 0 }
 0x172   :  { %vm11745_vm3 = vmmov %vm11703_vm1 }
 0x173   :  { %7925 = vmatmul.mubr.msk.f32.gmra.mrb[6].mxu1 %vm11740_vm5, %v10423_v23  ;;  %vm11749_vm5 = vmmov %vm11703_vm1 }
 0x174   :  { %8026 = vmatmul.mubr.msk.f32.gmra.mrb[4].mxu0 %vm11736_vm2, %v10421_v10  ;;  %7927 = vmatprep.mubr.f32.mxu1 %v11670_v58  ;;  %vm11744_vm2 = vmmov %vm11703_vm1  ;;  %v11753_v10 = vand.u32 7, %v9800_v2 }
 0x175   :  { %8028 = vmatprep.mubr.msk.f32.mxu0 %vm11738_vm15, %v10423_v23  ;;  %vm11746_vm15 = vmmov %vm11703_vm1  ;;  %v10454_v23 = vld [vmem:[#allocation2 + $0x70] sm:$0xff] }
 0x176   :  { %11748 = vst [vmem:[#allocation52_spill] sm:$0xff] %v10454_v23 }
 0x177   :  { %7928 = vmatmul.mubr.msk.f32.gmra.mrb[8].mxu1 %vm11703_vm1, %v1507_v37 }
 0x178   :  { %8029 = vmatmul.mubr.msk.f32.gmra.mrb[6].mxu0 %vm11741_vm14, %v10433_v14  ;;  %7930 = vmatprep.mubr.msk.f32.mxu1 %vm11745_vm3, %v10441_v33  ;;  %v10452_v14 = vld [vmem:[#allocation2 + $0x68] sm:$0xff]  ;;  %vm11750_vm14 = vmmov %vm11703_vm1 }
 0x179   :  { %8031 = vmatprep.mubr.msk.f32.mxu0 %vm11742_vm12, %v1507_v37  ;;  %11747 = vst [vmem:[#allocation51_spill] sm:$0xff] %v10452_v14  ;;  %vm11751_vm12 = vmmov %vm11703_vm1  ;;  %v10464_v37 = vld [vmem:[#allocation2 + $0x78] sm:$0xff] }
 0x17a   :  { %11752 = vst [vmem:[#allocation53_spill] sm:$0xff] %v10464_v37  ;;  %vm11756_vm3 = vmmov %vm11703_vm1 }
 0x17b   :  { %7931 = vmatmul.mubr.msk.f32.gmra.mrb[10].mxu1 %vm11749_vm5, %v10443_v53  ;;  %vm11758_vm5 = vmmov %vm11703_vm1 }
 0x17c   :  { %8032 = vmatmul.mubr.msk.f32.gmra.mrb[8].mxu0 %vm11744_vm2, %v10441_v33  ;;  %7933 = vmatprep.mubr.msk.f32.mxu1 %vm11751_vm12, %v10452_v14  ;;  %v10466_v33 = vld [vmem:[#allocation2 + $0x80] sm:$0xff]  ;;  %vm10470_vm2 = vcmp.lt.s32.totalorder %v11753_v10, 7  ;;  %vm11760_vm12 = vmmov %vm11703_vm1 }
 0x17d   :  { %8034 = vmatprep.mubr.msk.f32.mxu0 %vm11746_vm15, %v10443_v53  ;;  %v11755_v61 = vsel %vm10470_vm2, 4294967295, %v11754_v61  ;;  %vm11757_vm15 = vmmov %vm11703_vm1  ;;  %v1776_v10 = vsel %vm10470_vm2, %v10104_v31, 0.0 }
 0x17e   :  { %vm11765_vm2 = vmmov %vm11703_vm1 }
 0x17f   :  { %7934 = vmatmul.mubr.msk.f32.gmra.mrb[12].mxu1 %vm11756_vm3, %v10454_v23  ;;  %vm11761_vm3 = vmmov %vm11703_vm1 }
 0x180   :  { %8035 = vmatmul.mubr.msk.f32.gmra.mrb[10].mxu0 %vm11750_vm14, %v10452_v14  ;;  %7936 = vmatprep.mubr.msk.f32.mxu1 %vm11758_vm5, %v10464_v37  ;;  %vm11759_vm14 = vmmov %vm11703_vm1  ;;  %v10482_v14 = vld [vmem:[#allocation2 + $0x88] sm:$0xff]  ;;  %vm11763_vm5 = vnez %v11638_v41 }
 0x181   :  { %8037 = vmatprep.mubr.msk.f32.mxu0 %vm11703_vm1, %v10454_v23  ;;  %v2362_v23 = vld [vmem:[#allocation3 + $0x15] sm:$0x7]  ;;  %v11847_v9 = vld [vmem:[#allocation51_spill] sm:$0xff] }
 0x183   :  { %7937 = vmatmul.mubr.msk.f32.gmra.mrb[14].mxu1 %vm11760_vm12, %v10466_v33  ;;  %vm11767_vm12 = vnez %v11640_v13  ;;  %v11774_v13 = vand.u32 7, %v10169_v5  ;;  %v11783_v5 = vld [vmem:[#allocation39_spill] sm:$0xff] }
 0x184   :  { %8038 = vmatmul.mubr.msk.f32.gmra.mrb[12].mxu0 %vm11757_vm15, %v10464_v37  ;;  %vm11762_vm15 = vnez %v11636_v28  ;;  %v1778_v37 = vsel %vm11763_vm5, %v10128_v27, 0.0  ;;  %v1779_v31 = vsel %vm11767_vm12, %v10136_v19, 0.0  ;;  %vm11771_vm5 = vmmov %vm11765_vm2 }
 0x185   :  { %8040 = vmatprep.mubr.msk.f32.mxu0 %vm11759_vm14, %v10466_v33  ;;  %v1777_v2 = vsel %vm11762_vm15, %v10112_v54, 0.0  ;;  %vm11764_vm14 = vmmov %vm11703_vm1 }
 0x186   :  { %vm11770_vm15 = vmmov %vm11765_vm2 }
 0x188   :  { %8041 = vmatmul.mubr.msk.f32.gmra.mrb[14].mxu0 %vm11703_vm1, %v10482_v14  ;;  %vm11768_vm1 = vnez %v11643_v16  ;;  %v11775_v16 = vmov 0 }
 0x189   :  { %8045 = vmatprep.mubr.msk.f32.mxu0 %vm11761_vm3, %v1776_v10  ;;  %v1780_v10 = vsel %vm11768_vm1, %v10156_v12, 0.0  ;;  %vm11769_vm3 = vmmov %vm11766_vm13  ;;  %vm11784_vm1 = vnez %v11783_v5  ;;  %v11795_v5 = vld [vmem:[#allocation44_spill] sm:$0xff] }
 0x18c   :  { %8046 = vmatmul.mubr.msk.f32.vlgmr.msra.gmra.mrb[0].mxu0 %vm11764_vm14, %v1777_v2  ;;  %vm11772_vm14 = vnez %v11649_v26 }
 0x18d   :  { %8048 = vmatprep.mubr.msk.f32.mxu0 %vm11765_vm2, %v1778_v37  ;;  %8070 = vmatpush3.msk.msra.mxu0 %vm11766_vm13, %v2085_v0  ;;  %v1781_v2 = vsel %vm11772_vm14, %v10166_v55, 0.0  ;;  %vm11773_vm13 = vnez %v11652_v43  ;;  %v10516_v37 = vld [vmem:[#allocation2 + $0x49] sm:$0xff]  ;;  %vm10520_vm2 = vcmp.lt.s32.totalorder %v11774_v13, 7  ;;  %v1785_v13 = vsel %vm11784_vm1, %v10218_v36, 0.0 }
 0x18e   :  { %8095 = vmatprep.subr.msk.mxu0 %vm11769_vm3, %v2362_v23  ;;  %v1782_v0 = vsel %vm11773_vm13, %v10191_v21, 0.0  ;;  %v11776_v16 = vsel %vm10520_vm2, 4294967295, %v11775_v16  ;;  %vm11777_vm3 = vmmov %vm11771_vm5  ;;  %vm11796_vm1 = vnez %v11795_v5 }
 0x18f   :  { %vm11781_vm13 = vmmov %vm11777_vm3 }
 0x190   :  { %8049 = vmatmul.mubr.msk.f32.gmra.mrb[2].mxu0 %vm11770_vm15, %v1779_v31  ;;  %vm11778_vm15 = vmmov %vm11777_vm3 }
 0x191   :  { %8051 = vmatprep.mubr.msk.f32.mxu0 %vm11771_vm5, %v1780_v10  ;;  %vm11779_vm5 = vnez %v11656_v20  ;;  %v11780_v10 = vld [vmem:[#allocation40_spill] sm:$0xff]  ;;  %vm11782_vm14 = vmmov %vm11777_vm3  ;;  %v11789_v20 = vld [vmem:[#allocation42_spill] sm:$0xff] }
 0x192   :  { %v1783_v31 = vsel %vm11779_vm5, %v10516_v37, 0.0  ;;  %v1784_v43 = vsel %vm10520_vm2, %v11780_v10, 0.0  ;;  %vm11788_vm12 = vmmov %vm11781_vm13  ;;  %vm11790_vm5 = vnez %v11789_v20 }
 0x193   :  { %v1787_v10 = vsel %vm11790_vm5, %v10254_v60, 0.0  ;;  %vm11794_vm2 = vmmov %vm11788_vm12 }
 0x194   :  { %8052 = vmatmul.mubr.msk.f32.gmra.mrb[4].mxu0 %vm11777_vm3, %v1781_v2  ;;  %v11785_v2 = vld [vmem:[#allocation41_spill] sm:$0xff]  ;;  %vm11799_vm5 = vmmov %vm11794_vm2 }
 0x195   :  { %8054 = vmatprep.mubr.msk.f32.mxu0 %vm11778_vm15, %v1782_v0  ;;  %vm11786_vm3 = vnez %v11785_v2  ;;  %vm11787_vm15 = vmmov %vm11781_vm13  ;;  %v1789_v2 = vsel %vm11796_vm1, %v10284_v1, 0.0  ;;  %vm11806_vm1 = vcmask 1042432  }
 0x196   :  { %v1786_v0 = vsel %vm11786_vm3, %v10246_v50, 0.0 }
 0x198   :  { %8055 = vmatmul.mubr.msk.f32.gmra.mrb[6].mxu0 %vm11781_vm13, %v1783_v31  ;;  %v11791_v31 = vld [vmem:[#allocation43_spill] sm:$0xff] }
 0x199   :  { %8057 = vmatprep.mubr.msk.f32.mxu0 %vm11782_vm14, %v1784_v43  ;;  %vm11792_vm13 = vnez %v11791_v31  ;;  %vm11793_vm14 = vmmov %vm11788_vm12 }
 0x19a   :  { %v1788_v43 = vsel %vm11792_vm13, %v10276_v59, 0.0  ;;  %vm11800_vm13 = vnez %v11693_v4 }
 0x19c   :  { %8058 = vmatmul.mubr.msk.f32.gmra.mrb[8].mxu0 %vm11787_vm15, %v1785_v13  ;;  %vm11797_vm15 = vnez %v11687_v3 }
 0x19d   :  { %8060 = vmatprep.mubr.msk.f32.mxu0 %vm11788_vm12, %v1786_v0  ;;  %v1790_v13 = vsel %vm11797_vm15, %v10307_v6, 0.0  ;;  %v10556_v0 = vld [vmem:[#allocation2 + $0x89] sm:$0xff]  ;;  %vm11798_vm12 = vmmov %vm11794_vm2 }
 0x19e   :  { %vm11802_vm15 = vmmov %vm11794_vm2 }
 0x1a0   :  { %8061 = vmatmul.mubr.msk.f32.gmra.mrb[10].mxu0 %vm11793_vm14, %v1787_v10  ;;  %v1791_v10 = vsel %vm11800_vm13, %v10556_v0, 0.0  ;;  %vm11801_vm14 = vnez %v11608_v29  ;;  %vm11805_vm13 = vmmov %vm11794_vm2  ;;  %v11808_v29 = vsel %vm9928_vm6, %v9965_v52, 0.0  ;;  %v11838_v52 = vld [vmem:[#allocation47_spill] sm:$0xff] }
 0x1a1   :  { %8063 = vmatprep.mubr.msk.f32.mxu0 %vm11794_vm2, %v1788_v43  ;;  %v2069_v43 = vsel %vm10311_vm4, %v9905_v34, 0.0  ;;  %v2070_v3 = vsel %vm11801_vm14, %v9921_v40, 0.0  ;;  %v2072_v34 = vsel %vm11705_vm0, %v9951_v48, 0.0  ;;  %vm11807_vm4 = vmmov %vm11806_vm1  ;;  %v11816_v40 = vsel %vm10001_vm10, %v10037_v18, 0.0  ;;  %v11851_v18 = vld [vmem:[#allocation53_spill] sm:$0xff] }
 0x1a2   :  { %vm11811_vm14 = vmmov %vm11794_vm2  ;;  %vm11826_vm10 = vnez %v11630_v32  ;;  %v11830_v48 = vsel %vm11829_vm11, %v10315_v49, 0.0 }
 0x1a3   :  { %vm11813_vm0 = vmmov %vm11794_vm2  ;;  %v11827_v47 = vsel %vm11826_vm10, %v10091_v15, 0.0 }
 0x1a4   :  { %8064 = vmatmul.mubr.msk.f32.gmra.mrb[12].mxu0 %vm11798_vm12, %v1789_v2  ;;  %vm11803_vm12 = vnez %v11610_v30  ;;  %v11812_v30 = vsel %vm9961_vm8, %v10193_v11, 0.0  ;;  %vm11815_vm6 = vmmov %vm11813_vm0 }
 0x1a5   :  { %8066 = vmatprep.mubr.msk.f32.mxu0 %vm11799_vm5, %v1790_v13  ;;  %v2071_v2 = vsel %vm11803_vm12, %v9935_v44, 0.0  ;;  %v2655_v13 = vld [vmem:[#allocation3 + $0x18] sm:$0x7]  ;;  %vm11804_vm5 = vmmov %vm11794_vm2  ;;  %v11824_v44 = vsel %vm11823_vm9, %v10075_v46, 0.0 }
 0x1a6   :  { %vm11819_vm8 = vmmov %vm11813_vm0  ;;  %v11863_v46 = vld [vmem:[#allocation37_spill] sm:$0xff] }
 0x1a7   :  { %vm11822_vm12 = vmmov %vm11813_vm0 }
 0x1a8   :  { %8067 = vmatmul.mubr.msk.f32.gmra.mrb[14].mxu0 %vm11794_vm2, %v1791_v10 }
 0x1a9   :  { %8071 = vmatprep.mubr.msk.f32.mxu0 %vm11802_vm15, %v2069_v43  ;;  %vm11809_vm15 = vmmov %vm11794_vm2 }
 0x1ac   :  { %8072 = vmatmul.mubr.msk.f32.vlgmr.msra.gmra.mrb[0].mxu0 %vm11804_vm5, %v2070_v3  ;;  %v11810_v3 = vsel %vm9947_vm7, %v9984_v57, 0.0  ;;  %vm11817_vm7 = vmmov %vm11813_vm0  ;;  %v11840_v57 = vld [vmem:[#allocation48_spill] sm:$0xff] }
 0x1ad   :  { %8074 = vmatprep.mubr.msk.f32.mxu0 %vm11805_vm13, %v2071_v2  ;;  %8096 = vmatpush3.msk.msra.mxu0 %vm11806_vm1, %v2362_v23  ;;  %vm11820_vm1 = vnez %v11626_v17  ;;  %vm11825_vm5 = vmmov %vm11813_vm0  ;;  %v11849_v17 = vld [vmem:[#allocation52_spill] sm:$0xff] }
 0x1ae   :  { %8121 = vmatprep.subr.msk.mxu0 %vm11807_vm4, %v2655_v13  ;;  %v11821_v8 = vsel %vm11820_vm1, %v10066_v39, 0.0  ;;  %vm11828_vm13 = vmmov %vm11813_vm0  ;;  %v11861_v39 = vld [vmem:[#allocation36_spill] sm:$0xff] }
 0x1af   :  { %vm11831_vm4 = vmmov %vm11813_vm0 }
 0x1b0   :  { %8075 = vmatmul.mubr.msk.f32.gmra.mrb[2].mxu0 %vm11794_vm2, %v2072_v34  ;;  %vm11832_vm2 = vmmov %vm11813_vm0 }
 0x1b1   :  { %8077 = vmatprep.mubr.msk.f32.mxu0 %vm11809_vm15, %v11808_v29  ;;  %vm11833_vm15 = vmmov %vm11813_vm0 }
 0x1b2   :  { %vm11843_vm1 = vmmov %vm11832_vm2 }
 0x1b3   :  { %vm11846_vm9 = vmmov %vm11843_vm1 }
 0x1b4   :  { %8078 = vmatmul.mubr.msk.f32.gmra.mrb[4].mxu0 %vm11811_vm14, %v11810_v3  ;;  %vm11834_vm14 = vmmov %vm11813_vm0 }
 0x1b5   :  { %8080 = vmatprep.mubr.msk.f32.mxu0 %vm11813_vm0, %v11812_v30  ;;  %vm11835_vm0 = vcmask 1042432   ;;  %vm11850_vm10 = vmmov %vm11843_vm1 }
 0x1b6   :  { %vm11853_vm11 = vmmov %vm11843_vm1 }
 0x1b8   :  { %8081 = vmatmul.mubr.f32.gmra.mrb[6].mxu0 %v11670_v58 }
 0x1b9   :  { %8083 = vmatprep.mubr.msk.f32.mxu0 %vm11815_vm6, %v11814_v35  ;;  %vm11837_vm6 = vmmov %vm11832_vm2 }
 0x1bc   :  { %8084 = vmatmul.mubr.msk.f32.gmra.mrb[8].mxu0 %vm11817_vm7, %v11816_v40  ;;  %vm11839_vm7 = vmmov %vm11832_vm2 }
 0x1bd   :  { %8086 = vmatprep.mubr.msk.f32.mxu0 %vm11819_vm8, %v11818_v42  ;;  %vm11841_vm8 = vmmov %vm11832_vm2 }
 0x1c0   :  { %8087 = vmatmul.mubr.msk.f32.gmra.mrb[10].mxu0 %vm11822_vm12, %v11821_v8  ;;  %vm11845_vm12 = vmmov %vm11843_vm1 }
 0x1c1   :  { %8089 = vmatprep.mubr.msk.f32.mxu0 %vm11825_vm5, %v11824_v44  ;;  %vm11848_vm5 = vmmov %vm11843_vm1 }
 0x1c4   :  { %8090 = vmatmul.mubr.msk.f32.gmra.mrb[12].mxu0 %vm11828_vm13, %v11827_v47  ;;  %vm11852_vm13 = vmmov %vm11843_vm1 }
 0x1c5   :  { %8092 = vmatprep.mubr.msk.f32.mxu0 %vm11831_vm4, %v11830_v48  ;;  %vm11854_vm4 = vmmov %vm11843_vm1 }
 0x1c8   :  { %8093 = vmatmul.mubr.f32.gmra.mrb[14].mxu0 %v11670_v58 }
 0x1c9   :  { %8097 = vmatprep.mubr.msk.f32.mxu0 %vm11832_vm2, %v10394_v38  ;;  %vm11855_vm2 = vnez %v11755_v61 }
 0x1ca   :  { %v2639_v24 = vsel %vm11855_vm2, %v10112_v54, 0.0  ;;  %v11874_v54 = vld [vmem:[#allocation39_spill] sm:$0xff] }
 0x1cc   :  { %8098 = vmatmul.mubr.msk.f32.vlgmr.msra.gmra.mrb[0].mxu0 %vm11833_vm15, %v10397_v56  ;;  %vm11856_vm15 = vmmov %vm11843_vm1 }
 0x1cd   :  { %8100 = vmatprep.mubr.msk.f32.mxu0 %vm11834_vm14, %v10408_v62  ;;  %8122 = vmatpush3.msk.msra.mxu0 %vm11835_vm0, %v2655_v13  ;;  %vm11857_vm14 = vnez %v11636_v28  ;;  %vm11858_vm0 = vnez %v11638_v41 }
 0x1ce   :  { %v2640_v25 = vsel %vm11857_vm14, %v10128_v27, 0.0  ;;  %v2641_v32 = vsel %vm11858_vm0, %v10136_v19, 0.0  ;;  %v11868_v27 = vld [vmem:[#allocation38_spill] sm:$0xff] }
 0x1d0   :  { %8101 = vmatmul.mubr.msk.f32.gmra.mrb[2].mxu0 %vm11837_vm6, %v11836_v51  ;;  %vm11859_vm6 = vmmov %vm11843_vm1 }
 0x1d1   :  { %8103 = vmatprep.mubr.msk.f32.mxu0 %vm11839_vm7, %v11838_v52  ;;  %vm11860_vm7 = vmmov %vm11843_vm1 }
 0x1d2   :  { %vm11873_vm2 = vmmov %vm11859_vm6 }
 0x1d3   :  { %vm11877_vm14 = vmmov %vm11873_vm2 }
 0x1d4   :  { %8104 = vmatmul.mubr.msk.f32.gmra.mrb[4].mxu0 %vm11841_vm8, %v11840_v57  ;;  %vm11862_vm8 = vnez %v11861_v39  ;;  %vm11878_vm0 = vmmov %vm11873_vm2 }
 0x1d5   :  { %8106 = vmatprep.mubr.msk.f32.mxu0 %vm11843_vm1, %v11842_v63  ;;  %v2642_v45 = vsel %vm11862_vm8, %v10156_v12, 0.0  ;;  %vm11864_vm1 = vnez %v11863_v46  ;;  %vm11881_vm8 = vmmov %vm11878_vm0 }
 0x1d6   :  { %v2643_v15 = vsel %vm11864_vm1, %v10166_v55, 0.0  ;;  %v2649_v55 = vsel %vm11786_vm3, %v10254_v60, 0.0  ;;  %vm11882_vm1 = vmmov %vm11878_vm0 }
 0x1d8   :  { %8107 = vmatmul.mubr.f32.gmra.mrb[6].mxu0 %v11670_v58 }
 0x1d9   :  { %8109 = vmatprep.mubr.msk.f32.mxu0 %vm11845_vm12, %v11844_v7  ;;  %vm11865_vm12 = vmmov %vm11854_vm4 }
 0x1dc   :  { %8110 = vmatmul.mubr.msk.f32.gmra.mrb[8].mxu0 %vm11846_vm9, %v10443_v53  ;;  %vm11866_vm9 = vmmov %vm11854_vm4 }
 0x1dd   :  { %8112 = vmatprep.mubr.msk.f32.mxu0 %vm11848_vm5, %v11847_v9  ;;  %vm11867_vm5 = vnez %v11649_v26 }
 0x1de   :  { %v2644_v19 = vsel %vm11867_vm5, %v10191_v21, 0.0  ;;  %vm11887_vm5 = vmmov %vm11878_vm0 }
 0x1e0   :  { %8113 = vmatmul.mubr.msk.f32.gmra.mrb[10].mxu0 %vm11850_vm10, %v11849_v17  ;;  %vm11869_vm10 = vnez %v11868_v27 }
 0x1e1   :  { %8115 = vmatprep.mubr.msk.f32.mxu0 %vm11852_vm13, %v11851_v18  ;;  %v2645_v41 = vsel %vm11869_vm10, %v10516_v37, 0.0  ;;  %vm11870_vm13 = vmmov %vm11854_vm4 }
 0x1e4   :  { %8116 = vmatmul.mubr.msk.f32.gmra.mrb[12].mxu0 %vm11853_vm11, %v10466_v33  ;;  %vm11871_vm11 = vmmov %vm11854_vm4 }
 0x1e5   :  { %8118 = vmatprep.mubr.msk.f32.mxu0 %vm11854_vm4, %v10482_v14  ;;  %vm11872_vm4 = vnez %v11776_v16 }
 0x1e6   :  { %v2647_v28 = vsel %vm11872_vm4, %v10218_v36, 0.0  ;;  %v11884_v36 = vld [vmem:[#allocation45_spill] sm:$0xff] }
 0x1e7   :  { %vm11885_vm3 = vnez %v11884_v36 }
 0x1e8   :  { %8119 = vmatmul.mubr.f32.gmra.mrb[14].mxu0 %v11670_v58  ;;  %v2653_v11 = vsel %vm11885_vm3, %v10556_v0, 0.0 }
 0x1e9   :  { %8123 = vmatprep.mubr.msk.f32.mxu0 %vm11856_vm15, %v2639_v24  ;;  %vm11875_vm15 = vnez %v11874_v54 }
 0x1ea   :  { %v2648_v26 = vsel %vm11875_vm15, %v10246_v50, 0.0 }
 0x1ec   :  { %8124 = vmatmul.mubr.msk.f32.vlgmr.msra.gmra.mrb[0].mxu0 %vm11859_vm6, %v2640_v25  ;;  %vm11879_vm6 = vnez %v11789_v20  ;;  %v3029_v20 = vld [vmem:[#allocation8] sm:$0xff] }
 0x1ed   :  { %8126 = vmatprep.mubr.msk.f32.mxu0 %vm11860_vm7, %v2641_v32  ;;  %v2650_v16 = vsel %vm11879_vm6, %v10276_v59, 0.0  ;;  %vm11880_vm7 = vnez %v11791_v31  ;;  %v3030_v31 = vld [vmem:[#allocation8 + $0x8] sm:$0xff] }
 0x1ee   :  { %v2651_v21 = vsel %vm11880_vm7, %v10284_v1, 0.0  ;;  %v8689_v0 = vpack.c.bf16 %v3030_v31, %v3029_v20 }
 0x1f0   :  { %8127 = vmatmul.mubr.msk.f32.gmra.mrb[2].mxu0 %vm11865_vm12, %v2642_v45  ;;  %vm11883_vm12 = vnez %v11795_v5  ;;  %v2916_v5 = vld [vmem:[#allocation6] sm:$0xff]  ;;  %8690 = vmatprep.subr.bf16.mxu1 %v8689_v0 }
 0x1f1   :  { %8129 = vmatprep.mubr.msk.f32.mxu0 %vm11866_vm9, %v2643_v15  ;;  %v2652_v60 = vsel %vm11883_vm12, %v10307_v6, 0.0  ;;  %vm11886_vm9 = vmmov %vm11878_vm0  ;;  %8692 = vmatpush3.bf16.msra.mxu1 %v8689_v0 }
 0x1f4   :  { %8130 = vmatmul.mubr.msk.f32.gmra.mrb[4].mxu0 %vm11870_vm13, %v2644_v19 }
 0x1f5   :  { %8132 = vmatprep.mubr.msk.f32.mxu0 %vm11871_vm11, %v2645_v41 }
 0x1f8   :  { %8133 = vmatmul.mubr.f32.gmra.mrb[6].mxu0 %v11670_v58 }
 0x1f9   :  { %8135 = vmatprep.mubr.msk.f32.mxu0 %vm11873_vm2, %v2647_v28 }
 0x1fc   :  { %8136 = vmatmul.mubr.msk.f32.gmra.mrb[8].mxu0 %vm11877_vm14, %v2648_v26 }
 0x1fd   :  { %8138 = vmatprep.mubr.msk.f32.mxu0 %vm11878_vm0, %v2649_v55 }
 0x200   :  { %8139 = vmatmul.mubr.msk.f32.gmra.mrb[10].mxu0 %vm11881_vm8, %v2650_v16 }
 0x201   :  { %8141 = vmatprep.mubr.msk.f32.mxu0 %vm11882_vm1, %v2651_v21 }
 0x204   :  { %8142 = vmatmul.mubr.msk.f32.gmra.mrb[12].mxu0 %vm11886_vm9, %v2652_v60 }
 0x205   :  { %8144 = vmatprep.mubr.msk.f32.mxu0 %vm11887_vm5, %v2653_v11 }
 0x208   :  { %8145 = vmatmul.mubr.f32.gmra.mrb[14].mxu0 %v11670_v58 }
 0x209   :  { %8179 = vmatprep.mubr.f32.mxu0 %v2916_v5 }
 0x238   :  { %v7917_v49 = vpop.f32.mrb[0].mxu1 }
 0x239   :  { %v654_v1 = vpop.f32.mrb[1].mxu1 }
 0x23c   :  { %v7920_v50 = vpop.f32.mrb[2].mxu1 }
 0x23d   :  { %v664_v22 = vpop.f32.mrb[3].mxu1 }
 0x242   :  { %v7923_v59 = vpop.f32.mrb[4].mxu1 }
 0x243   :  { %v674_v4 = vpop.f32.mrb[5].mxu1 }
 0x246   :  { %v7926_v53 = vpop.f32.mrb[6].mxu1 }
 0x247   :  { %v684_v38 = vpop.f32.mrb[7].mxu1 }
 0x24a   :  { %v7929_v56 = vpop.f32.mrb[8].mxu1 }
 0x24b   :  { %v10723_v6 = vpop.f32.mrb[9].mxu1 }
 0x24e   :  { %v10725_v62 = vpop.f32.mrb[10].mxu1 }
 0x24f   :  { %v10727_v61 = vpop.f32.mrb[11].mxu1 }
 0x252   :  { %v10729_v23 = vpop.f32.mrb[12].mxu1 }
 0x253   :  { %v10731_v14 = vpop.f32.mrb[13].mxu1 }
 0x256   :  { %v10733_v33 = vpop.f32.mrb[14].mxu1 }
 0x257   :  { %v10735_v37 = vpop.f32.mrb[15].mxu1 }
 0x2bf   :  { %v8125_v10 = vpop.f32.mrb[0].mxu0 }
 0x2c0   :  { %v8921_v43 = vadd.f32 %v8125_v10, %v7917_v49  ;;  %v2773_v2 = vpop.f32.mrb[1].mxu0 }
 0x2c1   :  { %v8922_v13 = vadd.f32 %v2773_v2, %v654_v1 }
 0x2c2   :  { %vm2869_vm10 = vcmp.gt.f32.partialorder %v8921_v43, 0.0  ;;  %v2885_v34 = vmul.f32 0.2, %v8921_v43 }
 0x2c3   :  { %vm2868_vm13 = vcmp.gt.f32.partialorder %v8922_v13, 0.0  ;;  %v2884_v29 = vmul.f32 0.2, %v8922_v13  ;;  %v8128_v3 = vpop.f32.mrb[2].mxu0 }
 0x2c4   :  { %v8923_v30 = vadd.f32 %v8128_v3, %v7920_v50  ;;  %v2783_v35 = vpop.f32.mrb[3].mxu0  ;;  %v2901_v40 = vsel %vm2869_vm10, %v8921_v43, %v2885_v34  ;;  %vm3031_vm10 = vcmask 130048  }
 0x2c5   :  { %v8924_v42 = vadd.f32 %v2783_v35, %v664_v22  ;;  %v2900_v8 = vsel %vm2868_vm13, %v8922_v13, %v2884_v29 }
 0x2c6   :  { %vm2871_vm11 = vcmp.gt.f32.partialorder %v8923_v30, 0.0  ;;  %v2887_v44 = vmul.f32 0.2, %v8923_v30  ;;  %v8657_v47 = vpack.c.bf16 %v2901_v40, %v2900_v8  ;;  %v2918_v8 = vld [vmem:[#allocation6 + $0x10] sm:$0xff] }
 0x2c7   :  { %vm2870_vm4 = vcmp.gt.f32.partialorder %v8924_v42, 0.0  ;;  %v2886_v48 = vmul.f32 0.2, %v8924_v42  ;;  %v8131_v51 = vpop.f32.mrb[4].mxu0 }
 0x2c8   :  { %v8925_v52 = vadd.f32 %v8131_v51, %v7923_v59  ;;  %v2793_v57 = vpop.f32.mrb[5].mxu0  ;;  %8658 = vmatprep.subr.bf16.mxu0 %v8657_v47  ;;  %v2903_v63 = vsel %vm2871_vm11, %v8923_v30, %v2887_v44  ;;  %v2919_v44 = vld [vmem:[#allocation6 + $0x18] sm:$0xff]  ;;  %v3165_v51 = vld [vmem:[#allocation9] sm:$0xff] }
 0x2c9   :  { %v8926_v7 = vadd.f32 %v2793_v57, %v674_v4  ;;  %8660 = vmatpush3.bf16.msra.mxu0 %v8657_v47  ;;  %v2902_v9 = vsel %vm2870_vm4, %v8924_v42, %v2886_v48  ;;  %v3184_v47 = vld [vmem:[#allocation9 + $0x18] sm:$0xff] }
 0x2ca   :  { %vm2873_vm2 = vcmp.gt.f32.partialorder %v8925_v52, 0.0  ;;  %v2889_v17 = vmul.f32 0.2, %v8925_v52  ;;  %v8661_v18 = vpack.c.bf16 %v2903_v63, %v2902_v9  ;;  %v11888_v9 = vld [vmem:[#allocation32_spill] sm:$0xff] }
 0x2cb   :  { %vm2872_vm15 = vcmp.gt.f32.partialorder %v8926_v7, 0.0  ;;  %v2888_v24 = vmul.f32 0.2, %v8926_v7  ;;  %v8134_v25 = vpop.f32.mrb[6].mxu0 }
 0x2cc   :  { %v8927_v32 = vadd.f32 %v8134_v25, %v7926_v53  ;;  %v2803_v39 = vpop.f32.mrb[7].mxu0  ;;  %8662 = vmatprep.subr.bf16.mxu0 %v8661_v18  ;;  %v2905_v45 = vsel %vm2873_vm2, %v8925_v52, %v2889_v17  ;;  %v3166_v52 = vld [vmem:[#allocation9 + $0x8] sm:$0xff]  ;;  %v3005_v17 = vand.u32 15, %v11888_v9  ;;  %v10753_v25 = vand.u32 3, %v11888_v9 }
 0x2cd   :  { %v8928_v46 = vadd.f32 %v2803_v39, %v684_v38  ;;  %8664 = vmatpush3.bf16.msra.mxu0 %v8661_v18  ;;  %v2904_v15 = vsel %vm2872_vm15, %v8926_v7, %v2888_v24  ;;  %v8697_v7 = vpack.c.bf16 %v3166_v52, %v3165_v51  ;;  %v11891_v39 = vld [vmem:[#allocation34_spill] sm:$0xff] }
 0x2ce   :  { %vm2875_vm14 = vcmp.gt.f32.partialorder %v8927_v32, 0.0  ;;  %v2891_v19 = vmul.f32 0.2, %v8927_v32  ;;  %v8665_v27 = vpack.c.bf16 %v2905_v45, %v2904_v15  ;;  %vm10756_vm13 = vcmp.ge.s32.totalorder %v3005_v17, 4  ;;  %v3400_v15 = vld [vmem:[#allocation9 + $0x28] sm:$0xff] }
 0x2cf   :  { %vm2874_vm0 = vcmp.gt.f32.partialorder %v8928_v46, 0.0  ;;  %v2890_v41 = vmul.f32 0.2, %v8928_v46  ;;  %v8137_v28 = vpop.f32.mrb[8].mxu0  ;;  %v3007_v45 = vand.u32 15, %v11891_v39  ;;  %vm11583_vm11 = vcmp.ge.s32.totalorder %v10753_v25, 1 }
 0x2d0   :  { %v8929_v54 = vadd.f32 %v8137_v28, %v7929_v56  ;;  %v2813_v26 = vpop.f32.mrb[9].mxu0  ;;  %8666 = vmatprep.subr.bf16.mxu0 %v8665_v27  ;;  %v2907_v12 = vsel %vm2875_vm14, %v8927_v32, %v2891_v19  ;;  %vm10781_vm2 = vmand %vm10756_vm13, %vm11583_vm11 }
 0x2d1   :  { %v8930_v55 = vadd.f32 %v2813_v26, %v10723_v6  ;;  %8668 = vmatpush3.bf16.msra.mxu0 %v8665_v27  ;;  %v2906_v16 = vsel %vm2874_vm0, %v8928_v46, %v2890_v41  ;;  %v3399_v46 = vld [vmem:[#allocation9 + $0x20] sm:$0xff]  ;;  %v3011_v41 = vand.u32 3, %v11891_v39  ;;  %vm10768_vm4 = vcmp.ge.s32.totalorder %v3007_v45, 4  ;;  %v4791_v26 = vld [vmem:[%s11477_s6 + $0x58] sm:$0xff] }
 0x2d2   :  { %vm2877_vm6 = vcmp.gt.f32.partialorder %v8929_v54, 0.0  ;;  %v2893_v21 = vmul.f32 0.2, %v8929_v54  ;;  %v8669_v60 = vpack.c.bf16 %v2907_v12, %v2906_v16  ;;  %v8701_v28 = vpack.c.bf16 %v3400_v15, %v3399_v46  ;;  %v11894_v12 = vld [vmem:[#allocation33_spill] sm:$0xff] }
 0x2d3   :  { %vm2876_vm7 = vcmp.gt.f32.partialorder %v8930_v55, 0.0  ;;  %v2892_v36 = vmul.f32 0.2, %v8930_v55  ;;  %v8140_v11 = vpop.f32.mrb[10].mxu0  ;;  %vm10788_vm15 = vcmp.ge.s32.totalorder %v3011_v41, 1 }
 0x2d4   :  { %v8931_v49 = vadd.f32 %v8140_v11, %v10725_v62  ;;  %v2823_v1 = vpop.f32.mrb[11].mxu0  ;;  %8670 = vmatprep.subr.bf16.mxu0 %v8669_v60  ;;  %v2909_v50 = vsel %vm2877_vm6, %v8929_v54, %v2893_v21  ;;  %vm11582_vm0 = vmand %vm10768_vm4, %vm10788_vm15  ;;  %vm11588_vm6 = vcmp.lt.s32.totalorder %v10753_v25, 3 }
 0x2d5   :  { %v8932_v22 = vadd.f32 %v2823_v1, %v10727_v61  ;;  %8672 = vmatpush3.bf16.msra.mxu0 %v8669_v60  ;;  %v2908_v59 = vsel %vm2876_vm7, %v8930_v55, %v2892_v36  ;;  %v3010_v55 = vand.u32 3, %v11894_v12  ;;  %v3518_v1 = vld [vmem:[#allocation9 + $0x30] sm:$0xff]  ;;  %vm10831_vm7 = vmand %vm10756_vm13, %vm11588_vm6 }
 0x2d6   :  { %vm2879_vm8 = vcmp.gt.f32.partialorder %v8931_v49, 0.0  ;;  %v2895_v4 = vmul.f32 0.2, %v8931_v49  ;;  %v8673_v53 = vpack.c.bf16 %v2909_v50, %v2908_v59  ;;  %v3519_v50 = vld [vmem:[#allocation9 + $0x38] sm:$0xff] }
 0x2d7   :  { %vm2878_vm1 = vcmp.gt.f32.partialorder %v8932_v22, 0.0  ;;  %v2894_v38 = vmul.f32 0.2, %v8932_v22  ;;  %v8143_v56 = vpop.f32.mrb[12].mxu0  ;;  %vm10799_vm14 = vcmp.ge.s32.totalorder %v3010_v55, 1 }
 0x2d8   :  { %v8933_v6 = vadd.f32 %v8143_v56, %v10729_v23  ;;  %v2833_v5 = vpop.f32.mrb[13].mxu0  ;;  %8674 = vmatprep.subr.bf16.mxu0 %v8673_v53  ;;  %v2911_v20 = vsel %vm2879_vm8, %v8931_v49, %v2895_v4 }
 0x2d9   :  { %v8934_v62 = vadd.f32 %v2833_v5, %v10731_v14  ;;  %8676 = vmatpush3.bf16.msra.mxu0 %v8673_v53  ;;  %v2910_v31 = vsel %vm2878_vm1, %v8932_v22, %v2894_v38  ;;  %v11901_v38 = vld [vmem:[#allocation35_spill] sm:$0xff]  ;;  %vm10839_vm1 = vcmp.lt.s32.totalorder %v3011_v41, 3 }
 0x2da   :  { %vm2881_vm12 = vcmp.gt.f32.partialorder %v8933_v6, 0.0  ;;  %v2897_v0 = vmul.f32 0.2, %v8933_v6  ;;  %v8677_v61 = vpack.c.bf16 %v2911_v20, %v2910_v31  ;;  %v3012_v56 = vand.u32 3, %v11901_v38  ;;  %v3986_v41 = vld [vmem:[#allocation9 + $0x70] sm:$0xff] }
 0x2db   :  { %vm2880_vm3 = vcmp.gt.f32.partialorder %v8934_v62, 0.0  ;;  %v2896_v10 = vmul.f32 0.2, %v8934_v62  ;;  %v8146_v43 = vpop.f32.mrb[14].mxu0 }
 0x2dc   :  { %v8935_v2 = vadd.f32 %v8146_v43, %v10733_v33  ;;  %v2843_v13 = vpop.f32.mrb[15].mxu0  ;;  %8678 = vmatprep.subr.bf16.mxu0 %v8677_v61  ;;  %v2913_v34 = vsel %vm2881_vm12, %v8933_v6, %v2897_v0  ;;  %v2917_v33 = vld [vmem:[#allocation6 + $0x8] sm:$0xff]  ;;  %v8705_v6 = vpack.c.bf16 %v3519_v50, %v3518_v1  ;;  %vm10835_vm8 = vcmp.ge.s32.totalorder %v3012_v56, 1 }
 0x2dd   :  { %v8936_v23 = vadd.f32 %v2843_v13, %v10735_v37  ;;  %8680 = vmatpush3.bf16.msra.mxu0 %v8677_v61  ;;  %v2912_v29 = vsel %vm2880_vm3, %v8934_v62, %v2896_v10  ;;  %v3183_v37 = vld [vmem:[#allocation9 + $0x10] sm:$0xff]  ;;  %v3626_v13 = vld [vmem:[#allocation9 + $0x48] sm:$0xff]  ;;  %vm10849_vm12 = vcmp.lt.s32.totalorder %v3010_v55, 3  ;;  %vm11581_vm3 = vmand %vm10768_vm4, %vm10839_vm1  ;;  %v3006_v1 = vand.u32 15, %v11894_v12 }
 0x2de   :  { %vm2883_vm9 = vcmp.gt.f32.partialorder %v8935_v2, 0.0  ;;  %v2899_v3 = vmul.f32 0.2, %v8935_v2  ;;  %v8681_v14 = vpack.c.bf16 %v2913_v34, %v2912_v29  ;;  %v8693_v48 = vpack.c.bf16 %v3184_v47, %v3183_v37  ;;  %v3745_v37 = vld [vmem:[#allocation9 + $0x58] sm:$0xff]  ;;  %v7468_v10 = vld [vmem:[#allocation12] ss:$0 sm:$0xff] }
 0x2df   :  { %vm2882_vm5 = vcmp.gt.f32.partialorder %v8936_v23, 0.0  ;;  %v2898_v30 = vmul.f32 0.2, %v8936_v23 }
 0x2e0   :  { %8682 = vmatprep.subr.bf16.mxu0 %v8681_v14  ;;  %v2915_v35 = vsel %vm2883_vm9, %v8935_v2, %v2899_v3  ;;  %8694 = vmatprep.subr.bf16.mxu1 %v8693_v48  ;;  %v3625_v2 = vld [vmem:[#allocation9 + $0x40] sm:$0xff]  ;;  %vm10875_vm9 = vcmp.lt.s32.totalorder %v3012_v56, 3 }
 0x2e1   :  { %8684 = vmatpush3.bf16.msra.mxu0 %v8681_v14  ;;  %v2914_v40 = vsel %vm2882_vm5, %v8936_v23, %v2898_v30  ;;  %v8709_v14 = vpack.c.bf16 %v3626_v13, %v3625_v2  ;;  %vm10909_vm5 = vcmp.lt.s32.totalorder %v3006_v1, 12  ;;  %v9448_v23 = vmov 0.0|0.0  }
 0x2e2   :  { %v8685_v42 = vpack.c.bf16 %v2915_v35, %v2914_v40 }
 0x2e4   :  { %8686 = vmatprep.subr.bf16.mxu0 %v8685_v42 }
 0x2e5   :  { %8688 = vmatpush3.bf16.msra.mxu0 %v8685_v42 }
 0x2e6   :  { %8843 = vmatprep.subr.bf16.mxu0 %v9448_v23 }
 0x2e8   :  { %8180 = vmatmul.mubr.f32.vlgmr.msra.gmra.mrb[16].mxu0 %v2917_v33 }
 0x2e9   :  { %8182 = vmatprep.mubr.f32.mxu0 %v2918_v8 }
 0x2ec   :  { %8183 = vmatmul.mubr.f32.gmra.mrb[18].mxu0 %v2919_v44  ;;  %v3744_v44 = vld [vmem:[#allocation9 + $0x50] sm:$0xff] }
 0x2ed   :  { %v8713_v52 = vpack.c.bf16 %v3745_v37, %v3744_v44  ;;  %v4247_v44 = vld [vmem:[%s11477_s6] sm:$0xff]  ;;  %v4248_v37 = vld [vmem:[%s11477_s6 + $0x8] sm:$0xff] }
 0x3bb   :  { %v8181_v57 = vpop.f32.mrb[16].mxu0 }
 0x3bc   :  { %v2986_v63 = vpop.f32.mrb[17].mxu0  ;;  %3142 = vst.msk [vmem:[#allocation2 + $0x18] sm:$0xff] %vm3031_vm10, %v8181_v57 }
 0x3bd   :  { %8189 = vmatprep.mubr.msk.f32.mxu1 %vm3031_vm10, %v2986_v63  ;;  %3141 = vst.msk [vmem:[#allocation2 + $0x10] sm:$0xff] %vm3031_vm10, %v2986_v63 }
 0x3be   :  { %8190 = vmatmul.mubr.msk.f32.vlgmr.msra.gmra.mrb[16].mxu1 %vm3031_vm10, %v8181_v57 }
 0x3bf   :  { %v8184_v18 = vpop.f32.mrb[18].mxu0  ;;  %8696 = vmatpush3.bf16.msra.mxu1 %v8693_v48 }
 0x3c0   :  { %3144 = vst.msk [vmem:[#allocation2 + $0x28] sm:$0xff] %vm3031_vm10, %v8184_v18  ;;  %v2996_v24 = vpop.f32.mrb[19].mxu0  ;;  %8698 = vmatprep.subr.bf16.mxu1 %v8697_v7 }
 0x3c1   :  { %3143 = vst.msk [vmem:[#allocation2 + $0x20] sm:$0xff] %vm3031_vm10, %v2996_v24  ;;  %8192 = vmatprep.mubr.msk.f32.mxu1 %vm3031_vm10, %v2996_v24  ;;  %v3868_v24 = vld [vmem:[#allocation9 + $0x68] sm:$0xff] }
 0x3c2   :  { %8193 = vmatmul.mubr.msk.f32.gmra.mrb[18].mxu1 %vm3031_vm10, %v8184_v18  ;;  %v3867_v18 = vld [vmem:[#allocation9 + $0x60] sm:$0xff] }
 0x3c3   :  { %v8717_v45 = vpack.c.bf16 %v3868_v24, %v3867_v18  ;;  %v3622_v46 = vld [vmem:[#allocation2 + $0x18] sm:$0xff] }
 0x3c4   :  { %v3167_v19 = vld [vmem:[#allocation2 + $0xc] sm:$0xff]  ;;  %v10766_v54 = vld [vmem:[#allocation2 + $0x14] sm:$0xff] }
 0x3c5   :  { %v3179_v27 = vsel %vm10756_vm13, %v3167_v19, 0.0  ;;  %v3145_v21 = vld [vmem:[#allocation2 + $0xb] sm:$0xff]  ;;  %v10803_v4 = vld [vmem:[#allocation2 + $0x13] sm:$0xff] }
 0x3c6   :  { %8199 = vmatprep.mubr.msk.f32.mxu1 %vm3031_vm10, %v3179_v27  ;;  %v3161_v22 = vsel %vm10781_vm2, %v3145_v21, 0.0  ;;  %v3162_v5 = vsel %vm10799_vm14, %v10803_v4, 0.0  ;;  %v3379_v31 = vld [vmem:[#allocation2 + $0xd] sm:$0xff]  ;;  %v10853_v29 = vld [vmem:[#allocation2 + $0x15] sm:$0xff]  ;;  %v3863_v2 = vsel %vm11583_vm11, %v10803_v4, 0.0 }
 0x3c7   :  { %8200 = vmatmul.mubr.msk.f32.vlgmr.msra.gmra.mrb[20].mxu1 %vm3031_vm10, %v10766_v54  ;;  %v3395_v34 = vsel %vm10831_vm7, %v3379_v31, 0.0  ;;  %v3396_v30 = vsel %vm10849_vm12, %v10853_v29, 0.0  ;;  %v3502_v42 = vld [vmem:[#allocation2 + $0xf] sm:$0xff]  ;;  %v3503_v48 = vld [vmem:[#allocation2 + $0x17] sm:$0xff] }
 0x3c8   :  { %v10775_v16 = vld [vmem:[#allocation2 + $0x1c] sm:$0xff]  ;;  %8700 = vmatpush3.bf16.msra.mxu1 %v8697_v7  ;;  %v10793_v49 = vld [vmem:[#allocation2 + $0x24] sm:$0xff]  ;;  %v3514_v47 = vsel %vm11583_vm11, %v3502_v42, 0.0  ;;  %v3515_v57 = vsel %vm10799_vm14, %v3503_v48, 0.0  ;;  %v3621_v39 = vld [vmem:[#allocation2 + $0x10] sm:$0xff] }
 0x3c9   :  { %v3181_v36 = vsel %vm10768_vm4, %v10775_v16, 0.0  ;;  %8702 = vmatprep.subr.bf16.mxu1 %v8701_v28  ;;  %v10806_v53 = vld [vmem:[#allocation2 + $0x1b] sm:$0xff]  ;;  %v10824_v62 = vld [vmem:[#allocation2 + $0x23] sm:$0xff]  ;;  %v3728_v19 = vld [vmem:[#allocation2 + $0x11] sm:$0xff] }
 0x3ca   :  { %8202 = vmatprep.mubr.msk.f32.mxu1 %vm3031_vm10, %v3181_v36  ;;  %v3163_v20 = vsel %vm11582_vm0, %v10806_v53, 0.0  ;;  %v3164_v43 = vsel %vm10835_vm8, %v10824_v62, 0.0  ;;  %v10856_v3 = vld [vmem:[#allocation2 + $0x1d] sm:$0xff]  ;;  %v10872_v40 = vld [vmem:[#allocation2 + $0x25] sm:$0xff]  ;;  %v3740_v55 = vsel %vm11588_vm6, %v3728_v19, 0.0  ;;  %v4109_v31 = vld [vmem:[#allocation9 + $0x80] sm:$0xff] }
 0x3cb   :  { %8203 = vmatmul.mubr.msk.f32.gmra.mrb[22].mxu1 %vm3031_vm10, %v10793_v49  ;;  %v3397_v35 = vsel %vm11581_vm3, %v10856_v3, 0.0  ;;  %v3398_v8 = vsel %vm10875_vm9, %v10872_v40, 0.0  ;;  %v3504_v51 = vld [vmem:[#allocation2 + $0x1f] sm:$0xff]  ;;  %v3505_v7 = vld [vmem:[#allocation2 + $0x27] sm:$0xff]  ;;  %vm11585_vm3 = vmand %vm10909_vm5, %vm10799_vm14  ;;  %v3865_v4 = vsel %vm10788_vm15, %v10824_v62, 0.0  ;;  %v3983_v62 = vsel %vm10909_vm5, %v10775_v16, 0.0 }
 0x3cc   :  { %8209 = vmatprep.mubr.msk.f32.mxu1 %vm3031_vm10, %v3161_v22  ;;  %v3516_v63 = vsel %vm10788_vm15, %v3504_v51, 0.0  ;;  %v3517_v17 = vsel %vm10835_vm8, %v3505_v7, 0.0  ;;  %v3623_v15 = vld [vmem:[#allocation2 + $0x20] sm:$0xff]  ;;  %v3624_v27 = vld [vmem:[#allocation2 + $0x28] sm:$0xff]  ;;  %v4258_v42 = vld [vmem:[%s11477_s6 + $0x18] sm:$0xff] }
 0x3cd   :  { %v3729_v21 = vld [vmem:[#allocation2 + $0x19] sm:$0xff]  ;;  %v3730_v36 = vld [vmem:[#allocation2 + $0x21] sm:$0xff] }
 0x3ce   :  { %v3741_v22 = vsel %vm10849_vm12, %v3729_v21, 0.0  ;;  %v3742_v56 = vsel %vm10839_vm1, %v3730_v36, 0.0 }
 0x3cf   :  { %8210 = vmatmul.mubr.msk.f32.vlgmr.msra.gmra.mrb[20].mxu1 %vm3031_vm10, %v3162_v5 }
 0x3d0   :  { %8212 = vmatprep.mubr.msk.f32.mxu1 %vm3031_vm10, %v3163_v20  ;;  %8704 = vmatpush3.bf16.msra.mxu1 %v8701_v28  ;;  %v3987_v28 = vld [vmem:[#allocation9 + $0x78] sm:$0xff]  ;;  %v3008_v20 = vand.u32 15, %v11901_v38  ;;  %v11914_v38 = vmov 0 }
 0x3d1   :  { %8706 = vmatprep.subr.bf16.mxu1 %v8705_v6  ;;  %v8721_v50 = vpack.c.bf16 %v3987_v28, %v3986_v41 }
 0x3d2   :  { %vm10925_vm0 = vcmp.lt.s32.totalorder %v3008_v20, 12 }
 0x3d3   :  { %8213 = vmatmul.mubr.msk.f32.gmra.mrb[22].mxu1 %vm3031_vm10, %v3164_v43  ;;  %v4110_v43 = vld [vmem:[#allocation9 + $0x88] sm:$0xff]  ;;  %v11915_v38 = vsel %vm10925_vm0, 4294967295, %v11914_v38  ;;  %vm11584_vm11 = vmand %vm10925_vm0, %vm10835_vm8 }
 0x3d4   :  { %8219 = vmatprep.mubr.msk.f32.mxu1 %vm3031_vm10, %v3395_v34  ;;  %v8725_v13 = vpack.c.bf16 %v4110_v43, %v4109_v31  ;;  %v3864_v34 = vsel %vm11585_vm3, %v10806_v53, 0.0  ;;  %vm11586_vm3 = vmand %vm10925_vm0, %vm10875_vm9 }
 0x3d7   :  { %8220 = vmatmul.mubr.msk.f32.vlgmr.msra.gmra.mrb[20].mxu1 %vm3031_vm10, %v3396_v30  ;;  %v3973_v30 = vld [vmem:[#allocation2 + $0x2c] sm:$0xff] }
 0x3d8   :  { %8222 = vmatprep.mubr.msk.f32.mxu1 %vm3031_vm10, %v3397_v35  ;;  %8708 = vmatpush3.bf16.msra.mxu1 %v8705_v6  ;;  %v3731_v6 = vld [vmem:[#allocation2 + $0x29] sm:$0xff]  ;;  %v3985_v35 = vsel %vm10925_vm0, %v3973_v30, 0.0 }
 0x3d9   :  { %8710 = vmatprep.subr.bf16.mxu1 %v8709_v14  ;;  %v3743_v12 = vsel %vm10875_vm9, %v3731_v6, 0.0 }
 0x3db   :  { %8223 = vmatmul.mubr.msk.f32.gmra.mrb[22].mxu1 %vm3031_vm10, %v3398_v8 }
 0x3dc   :  { %8229 = vmatprep.mubr.msk.f32.mxu1 %vm3031_vm10, %v3514_v47  ;;  %v8733_v47 = vpack.c.bf16 %v4248_v37, %v4247_v44 }
 0x3df   :  { %8230 = vmatmul.mubr.msk.f32.vlgmr.msra.gmra.mrb[20].mxu1 %vm3031_vm10, %v3515_v57 }
 0x3e0   :  { %8232 = vmatprep.mubr.msk.f32.mxu1 %vm3031_vm10, %v3516_v63  ;;  %8712 = vmatpush3.bf16.msra.mxu1 %v8709_v14  ;;  %v3850_v14 = vld [vmem:[#allocation2 + $0x2b] sm:$0xff]  ;;  %v7431_v63 = vld [vmem:[#allocation11] ss:$0 sm:$0xff] }
 0x3e1   :  { %8714 = vmatprep.subr.bf16.mxu1 %v8713_v52  ;;  %v3866_v53 = vsel %vm11584_vm11, %v3850_v14, 0.0  ;;  %vm11587_vm11 = vmand %vm10909_vm5, %vm10849_vm12 }
 0x3e2   :  { %v4106_v16 = vsel %vm11587_vm11, %v10856_v3, 0.0 }
 0x3e3   :  { %8233 = vmatmul.mubr.msk.f32.gmra.mrb[22].mxu1 %vm3031_vm10, %v3517_v17 }
 0x3e4   :  { %8239 = vmatprep.mubr.msk.f32.mxu1 %vm3031_vm10, %v3621_v39 }
 0x3e7   :  { %8240 = vmatmul.mubr.msk.f32.vlgmr.msra.gmra.mrb[20].mxu1 %vm3031_vm10, %v3622_v46 }
 0x3e8   :  { %8242 = vmatprep.mubr.msk.f32.mxu1 %vm3031_vm10, %v3623_v15  ;;  %8716 = vmatpush3.bf16.msra.mxu1 %v8713_v52 }
 0x3e9   :  { %8718 = vmatprep.subr.bf16.mxu1 %v8717_v45 }
 0x3eb   :  { %8243 = vmatmul.mubr.msk.f32.gmra.mrb[22].mxu1 %vm3031_vm10, %v3624_v27 }
 0x3ec   :  { %8249 = vmatprep.mubr.msk.f32.mxu1 %vm3031_vm10, %v3740_v55 }
 0x3ef   :  { %8250 = vmatmul.mubr.msk.f32.vlgmr.msra.gmra.mrb[20].mxu1 %vm3031_vm10, %v3741_v22  ;;  %v4462_v22 = vld [vmem:[%s11477_s6 + $0x28] sm:$0xff] }
 0x3f0   :  { %8252 = vmatprep.mubr.msk.f32.mxu1 %vm3031_vm10, %v3742_v56  ;;  %8720 = vmatpush3.bf16.msra.mxu1 %v8717_v45 }
 0x3f1   :  { %8722 = vmatprep.subr.bf16.mxu1 %v8721_v50 }
 0x3f3   :  { %8253 = vmatmul.mubr.msk.f32.gmra.mrb[22].mxu1 %vm3031_vm10, %v3743_v12 }
 0x3f4   :  { %8259 = vmatprep.mubr.msk.f32.mxu1 %vm3031_vm10, %v3863_v2 }
 0x3f7   :  { %8260 = vmatmul.mubr.msk.f32.vlgmr.msra.gmra.mrb[20].mxu1 %vm3031_vm10, %v3864_v34  ;;  %v4573_v34 = vld [vmem:[%s11477_s6 + $0x38] sm:$0xff] }
 0x3f8   :  { %8262 = vmatprep.mubr.msk.f32.mxu1 %vm3031_vm10, %v3865_v4  ;;  %8724 = vmatpush3.bf16.msra.mxu1 %v8721_v50  ;;  %v4461_v50 = vld [vmem:[%s11477_s6 + $0x20] sm:$0xff] }
 0x3f9   :  { %8726 = vmatprep.subr.bf16.mxu1 %v8725_v13  ;;  %v8737_v20 = vpack.c.bf16 %v4462_v22, %v4461_v50  ;;  %v5012_v22 = vld [vmem:[%s11477_s6 + $0x70] sm:$0xff] }
 0x3fb   :  { %8263 = vmatmul.mubr.msk.f32.gmra.mrb[22].mxu1 %vm3031_vm10, %v3866_v53 }
 0x3fc   :  { %8269 = vmatprep.mubr.msk.f32.mxu1 %vm3031_vm10, %v10766_v54  ;;  %v4105_v54 = vsel %vm11588_vm6, %v10853_v29, 0.0  ;;  %v4092_v29 = vld [vmem:[#allocation2 + $0x2d] sm:$0xff] }
 0x3fd   :  { %v4108_v3 = vsel %vm11586_vm3, %v4092_v29, 0.0  ;;  %v4680_v29 = vld [vmem:[%s11477_s6 + $0x48] sm:$0xff] }
 0x3ff   :  { %8270 = vmatmul.mubr.msk.f32.vlgmr.msra.gmra.mrb[20].mxu1 %vm3031_vm10, %v3983_v62 }
 0x400   :  { %8272 = vmatprep.mubr.msk.f32.mxu1 %vm3031_vm10, %v10793_v49  ;;  %8728 = vmatpush3.bf16.msra.mxu1 %v8725_v13  ;;  %v4107_v49 = vsel %vm10839_vm1, %v10872_v40, 0.0  ;;  %v4257_v40 = vld [vmem:[%s11477_s6 + $0x10] sm:$0xff] }
 0x401   :  { %v8729_v8 = vpack.c.bf16 %v4258_v42, %v4257_v40  ;;  %v4572_v13 = vld [vmem:[%s11477_s6 + $0x30] sm:$0xff] }
 0x402   :  { %v8741_v62 = vpack.c.bf16 %v4573_v34, %v4572_v13 }
 0x403   :  { %8273 = vmatmul.mubr.msk.f32.gmra.mrb[22].mxu1 %vm3031_vm10, %v3985_v35  ;;  %8730 = vmatprep.subr.bf16.mxu1 %v8729_v8 }
 0x404   :  { %8279 = vmatprep.mubr.msk.f32.mxu1 %vm3031_vm10, %v4105_v54 }
 0x407   :  { %8280 = vmatmul.mubr.msk.f32.vlgmr.msra.gmra.mrb[20].mxu1 %vm3031_vm10, %v4106_v16 }
 0x408   :  { %8282 = vmatprep.mubr.msk.f32.mxu1 %vm3031_vm10, %v4107_v49  ;;  %8732 = vmatpush3.bf16.msra.mxu1 %v8729_v8  ;;  %v4679_v49 = vld [vmem:[%s11477_s6 + $0x40] sm:$0xff] }
 0x409   :  { %8734 = vmatprep.subr.bf16.mxu1 %v8733_v47  ;;  %v8745_v8 = vpack.c.bf16 %v4680_v29, %v4679_v49 }
 0x40b   :  { %8283 = vmatmul.mubr.msk.f32.gmra.mrb[22].mxu1 %vm3031_vm10, %v4108_v3 }
 0x491   :  { %v11002_v48 = vpop.f32.mrb[16].mxu1 }
 0x492   :  { %v11004_v51 = vpop.f32.mrb[17].mxu1  ;;  %v3134_v5 = vmul.f32 0.2, %v11002_v48 }
 0x493   :  { %v3133_v33 = vmul.f32 0.2, %v11004_v51 }
 0x495   :  { %v11006_v52 = vpop.f32.mrb[18].mxu1 }
 0x496   :  { %v11008_v57 = vpop.f32.mrb[19].mxu1 }
 0x4da   :  { %v8281_v7 = vpop.f32.mrb[20].mxu1 }
 0x4db   :  { %v4220_v17 = vadd.f32 %v8281_v7, %v7431_v63  ;;  %v4189_v18 = vpop.f32.mrb[21].mxu1  ;;  %v4790_v7 = vld [vmem:[%s11477_s6 + $0x50] sm:$0xff] }
 0x4dc   :  { %v4219_v24 = vadd.f32 %v7431_v63, %v4189_v18 }
 0x4dd   :  { %vm4224_vm3 = vcmp.gt.f32.partialorder %v4220_v17, 0.0  ;;  %v4228_v39 = vmul.f32 0.2, %v4220_v17 }
 0x4de   :  { %vm4223_vm11 = vcmp.gt.f32.partialorder %v4219_v24, 0.0  ;;  %v4227_v45 = vmul.f32 0.2, %v4219_v24  ;;  %v8284_v46 = vpop.f32.mrb[22].mxu1 }
 0x4df   :  { %v4232_v15 = vsel %vm4224_vm3, %v4220_v17, %v4228_v39  ;;  %v4222_v19 = vadd.f32 %v8284_v46, %v7431_v63  ;;  %v4199_v27 = vpop.f32.mrb[23].mxu1  ;;  %v8749_v39 = vpack.c.bf16 %v4791_v26, %v4790_v7  ;;  %v3136_v7 = vmul.f32 0.2, %v11006_v52 }
 0x4e0   :  { %4236 = vst.msk [vmem:[#allocation2 + $0x18] sm:$0xff] %vm3031_vm10, %v4232_v15  ;;  %v4231_v41 = vsel %vm4223_vm11, %v4219_v24, %v4227_v45  ;;  %v4221_v28 = vadd.f32 %v7431_v63, %v4199_v27  ;;  %vm11917_vm11 = vmand %vm10768_vm4, %vm10839_vm1  ;;  %v4901_v27 = vld [vmem:[%s11477_s6 + $0x60] sm:$0xff] }
 0x4e1   :  { %4235 = vst.msk [vmem:[#allocation2 + $0x10] sm:$0xff] %vm3031_vm10, %v4231_v41  ;;  %vm4226_vm6 = vcmp.gt.f32.partialorder %v4222_v19, 0.0  ;;  %v4230_v55 = vmul.f32 0.2, %v4222_v19  ;;  %v4902_v41 = vld [vmem:[%s11477_s6 + $0x68] sm:$0xff] }
 0x4e2   :  { %vm4225_vm0 = vcmp.gt.f32.partialorder %v4221_v28, 0.0  ;;  %v4229_v21 = vmul.f32 0.2, %v4221_v28 }
 0x4e3   :  { %v4234_v36 = vsel %vm4226_vm6, %v4222_v19, %v4230_v55  ;;  %v8753_v55 = vpack.c.bf16 %v4902_v41, %v4901_v27  ;;  %vm11921_vm6 = vmand %vm10909_vm5, %vm10799_vm14 }
 0x4e4   :  { %4238 = vst.msk [vmem:[#allocation2 + $0x28] sm:$0xff] %vm3031_vm10, %v4234_v36  ;;  %v4233_v1 = vsel %vm4225_vm0, %v4221_v28, %v4229_v21 }
 0x4e5   :  { %4237 = vst.msk [vmem:[#allocation2 + $0x20] sm:$0xff] %vm3031_vm10, %v4233_v1 }
 0x4e7   :  { %v4676_v21 = vld [vmem:[#allocation2 + $0x18] sm:$0xff] }
 0x4e8   :  { %v4249_v56 = vld [vmem:[#allocation2 + $0xc] sm:$0xff]  ;;  %v11023_v12 = vld [vmem:[#allocation2 + $0x14] sm:$0xff] }
 0x4e9   :  { %v4253_v6 = vsel %vm10756_vm13, %v4249_v56, 0.0  ;;  %v4239_v43 = vld [vmem:[#allocation2 + $0xb] sm:$0xff]  ;;  %v11045_v14 = vld [vmem:[#allocation2 + $0x13] sm:$0xff]  ;;  %vm11916_vm13 = vmand %vm10768_vm4, %vm10788_vm15 }
 0x4ea   :  { %8289 = vmatprep.mubr.msk.f32.mxu1 %vm3031_vm10, %v4253_v6  ;;  %v4243_v4 = vsel %vm10781_vm2, %v4239_v43, 0.0  ;;  %v4244_v30 = vsel %vm10799_vm14, %v11045_v14, 0.0  ;;  %v4453_v54 = vld [vmem:[#allocation2 + $0xd] sm:$0xff]  ;;  %v11075_v40 = vld [vmem:[#allocation2 + $0x15] sm:$0xff]  ;;  %vm11919_vm2 = vcmp.lt.s32.totalorder %v10753_v25, 3 }
 0x4eb   :  { %8290 = vmatmul.mubr.msk.f32.vlgmr.msra.gmra.mrb[24].mxu1 %vm3031_vm10, %v11023_v12  ;;  %v4457_v3 = vsel %vm10831_vm7, %v4453_v54, 0.0  ;;  %v4458_v44 = vsel %vm10849_vm12, %v11075_v40, 0.0  ;;  %v4565_v18 = vld [vmem:[#allocation2 + $0x17] sm:$0xff]  ;;  %v4678_v50 = vld [vmem:[#allocation2 + $0x28] sm:$0xff]  ;;  %vm11922_vm7 = vnez %v11915_v38 }
 0x4ec   :  { %v11027_v31 = vld [vmem:[#allocation2 + $0x1c] sm:$0xff]  ;;  %8736 = vmatpush3.bf16.msra.mxu1 %v8733_v47  ;;  %v11033_v32 = vld [vmem:[#allocation2 + $0x24] sm:$0xff]  ;;  %v4564_v47 = vld [vmem:[#allocation2 + $0xf] sm:$0xff]  ;;  %v4569_v45 = vsel %vm10799_vm14, %v4565_v18, 0.0 }
 0x4ed   :  { %v4255_v2 = vsel %vm10768_vm4, %v11027_v31, 0.0  ;;  %8738 = vmatprep.subr.bf16.mxu1 %v8737_v20  ;;  %v11048_v53 = vld [vmem:[#allocation2 + $0x1b] sm:$0xff]  ;;  %v11060_v35 = vld [vmem:[#allocation2 + $0x23] sm:$0xff]  ;;  %vm11918_vm4 = vcmp.ge.s32.totalorder %v10753_v25, 1  ;;  %v4675_v28 = vld [vmem:[#allocation2 + $0x10] sm:$0xff]  ;;  %v5009_v11 = vsel %vm10909_vm5, %v11027_v31, 0.0 }
 0x4ee   :  { %8292 = vmatprep.mubr.msk.f32.mxu1 %vm3031_vm10, %v4255_v2  ;;  %v4245_v60 = vsel %vm11916_vm13, %v11048_v53, 0.0  ;;  %v4246_v16 = vsel %vm10835_vm8, %v11060_v35, 0.0  ;;  %v11078_v42 = vld [vmem:[#allocation2 + $0x1d] sm:$0xff]  ;;  %v11090_v37 = vld [vmem:[#allocation2 + $0x25] sm:$0xff]  ;;  %v4568_v17 = vsel %vm11918_vm4, %v4564_v47, 0.0  ;;  %v4782_v1 = vld [vmem:[#allocation2 + $0x11] sm:$0xff] }
 0x4ef   :  { %8293 = vmatmul.mubr.msk.f32.gmra.mrb[26].mxu1 %vm3031_vm10, %v11033_v32  ;;  %v4459_v0 = vsel %vm11917_vm11, %v11078_v42, 0.0  ;;  %v4460_v63 = vsel %vm10875_vm9, %v11090_v37, 0.0  ;;  %v4566_v24 = vld [vmem:[#allocation2 + $0x1f] sm:$0xff]  ;;  %v4567_v15 = vld [vmem:[#allocation2 + $0x27] sm:$0xff]  ;;  %v4786_v6 = vsel %vm11919_vm2, %v4782_v1, 0.0  ;;  %vm11920_vm0 = vmmov %vm11918_vm4  ;;  %v4898_v49 = vsel %vm11921_vm6, %v11048_v53, 0.0 }
 0x4f0   :  { %8299 = vmatprep.mubr.msk.f32.mxu1 %vm3031_vm10, %v4243_v4  ;;  %v4570_v46 = vsel %vm10788_vm15, %v4566_v24, 0.0  ;;  %v4571_v19 = vsel %vm10835_vm8, %v4567_v15, 0.0  ;;  %v4677_v36 = vld [vmem:[#allocation2 + $0x20] sm:$0xff]  ;;  %v5013_v56 = vld [vmem:[%s11477_s6 + $0x78] sm:$0xff]  ;;  %v4785_v4 = vld [vmem:[#allocation2 + $0x29] sm:$0xff]  ;;  %v4897_v54 = vsel %vm11920_vm0, %v11045_v14, 0.0 }
 0x4f1   :  { %v4784_v43 = vld [vmem:[#allocation2 + $0x21] sm:$0xff]  ;;  %v8757_v2 = vpack.c.bf16 %v5013_v56, %v5012_v22  ;;  %v4899_v29 = vsel %vm10788_vm15, %v11060_v35, 0.0  ;;  %vm11923_vm3 = vmand %vm11922_vm7, %vm10835_vm8  ;;  %v5007_v59 = vld [vmem:[#allocation2 + $0x2c] sm:$0xff]  ;;  %vm3132_vm13 = vcmp.gt.f32.partialorder %v11006_v52, 0.0  ;;  %v3135_v24 = vmul.f32 0.2, %v11008_v57 }
 0x4f2   :  { %v4788_v34 = vsel %vm10839_vm1, %v4784_v43, 0.0  ;;  %v5011_v61 = vsel %vm11922_vm7, %v5007_v59, 0.0  ;;  %vm11924_vm15 = vmmov %vm11919_vm2  ;;  %v5118_v53 = vld [vmem:[#allocation2 + $0x2d] sm:$0xff]  ;;  %vm3131_vm11 = vcmp.gt.f32.partialorder %v11008_v57, 0.0  ;;  %v5253_v56 = vld [vmem:[#allocation14] sm:$0xff]  ;;  %vm11927_vm0 = vcmask 261120  }
 0x4f3   :  { %8300 = vmatmul.mubr.msk.f32.vlgmr.msra.gmra.mrb[24].mxu1 %vm3031_vm10, %v4244_v30  ;;  %v5123_v30 = vld [vmem:[%s11477_s6 + $0x80] sm:$0xff]  ;;  %vm11925_vm14 = vmand %vm10909_vm5, %vm10849_vm12  ;;  %v5332_v1 = vld [vmem:[#allocation15] sm:$0xff] }
 0x4f4   :  { %8302 = vmatprep.mubr.msk.f32.mxu1 %vm3031_vm10, %v4245_v60  ;;  %8740 = vmatpush3.bf16.msra.mxu1 %v8737_v20  ;;  %v4783_v20 = vld [vmem:[#allocation2 + $0x19] sm:$0xff]  ;;  %v5124_v60 = vld [vmem:[%s11477_s6 + $0x88] sm:$0xff]  ;;  %v5120_v31 = vsel %vm11925_vm14, %v11078_v42, 0.0  ;;  %vm11926_vm8 = vmand %vm11922_vm7, %vm10875_vm9 }
 0x4f5   :  { %8742 = vmatprep.subr.bf16.mxu1 %v8741_v62  ;;  %v4787_v13 = vsel %vm10849_vm12, %v4783_v20, 0.0  ;;  %v5122_v35 = vsel %vm11926_vm8, %v5118_v53, 0.0  ;;  %vm9449_vm12 = vmmov 0   ;;  %v5334_v20 = vld [vmem:[#allocation15 + $0x10] sm:$0xff]  ;;  %v5426_v43 = vld [vmem:[#allocation17 + $0x20] sm:$0xff]  ;;  %vm11928_vm6 = vmmov %vm11927_vm0 }
 0x4f6   :  { %8526 = vmatprep.mubr.msk.f32.mxu0 %vm9449_vm12, %v11670_v58  ;;  %vm11929_vm7 = vmmov %vm11927_vm0 }
 0x4f7   :  { %8303 = vmatmul.mubr.msk.f32.gmra.mrb[26].mxu1 %vm3031_vm10, %v4246_v16  ;;  %v8761_v16 = vpack.c.bf16 %v5124_v60, %v5123_v30 }
 0x4f8   :  { %8309 = vmatprep.mubr.msk.f32.mxu1 %vm3031_vm10, %v4457_v3  ;;  %v4896_v3 = vld [vmem:[#allocation2 + $0x2b] sm:$0xff] }
 0x4f9   :  { %v4900_v14 = vsel %vm11923_vm3, %v4896_v3, 0.0  ;;  %vm5328_vm3 = vcmp.ge.s32.totalorder %v10753_v25, 2 }
 0x4fb   :  { %8310 = vmatmul.mubr.msk.f32.vlgmr.msra.gmra.mrb[24].mxu1 %vm3031_vm10, %v4458_v44 }
 0x4fc   :  { %8312 = vmatprep.mubr.msk.f32.mxu1 %vm3031_vm10, %v4459_v0  ;;  %8744 = vmatpush3.bf16.msra.mxu1 %v8741_v62  ;;  %v4789_v62 = vsel %vm10875_vm9, %v4785_v4, 0.0  ;;  %v5429_v4 = vld [vmem:[#allocation17 + $0x38] sm:$0xff] }
 0x4fd   :  { %8746 = vmatprep.subr.bf16.mxu1 %v8745_v8 }
 0x4ff   :  { %8313 = vmatmul.mubr.msk.f32.gmra.mrb[26].mxu1 %vm3031_vm10, %v4460_v63 }
 0x500   :  { %8319 = vmatprep.mubr.msk.f32.mxu1 %vm3031_vm10, %v4568_v17 }
 0x503   :  { %8320 = vmatmul.mubr.msk.f32.vlgmr.msra.gmra.mrb[24].mxu1 %vm3031_vm10, %v4569_v45 }
 0x504   :  { %8322 = vmatprep.mubr.msk.f32.mxu1 %vm3031_vm10, %v4570_v46  ;;  %8748 = vmatpush3.bf16.msra.mxu1 %v8745_v8 }
 0x505   :  { %8750 = vmatprep.subr.bf16.mxu1 %v8749_v39 }
 0x507   :  { %8323 = vmatmul.mubr.msk.f32.gmra.mrb[26].mxu1 %vm3031_vm10, %v4571_v19  ;;  %v3140_v19 = vsel %vm3132_vm13, %v11006_v52, %v3136_v7  ;;  %v5335_v52 = vld [vmem:[#allocation15 + $0x18] sm:$0xff]  ;;  %vm11941_vm13 = vmmov %vm11927_vm0 }
 0x508   :  { %8329 = vmatprep.mubr.msk.f32.mxu1 %vm3031_vm10, %v4675_v28  ;;  %v3139_v28 = vsel %vm3131_vm11, %v11008_v57, %v3135_v24  ;;  %v8775_v57 = vpack.c.bf16 %v5335_v52, %v5334_v20  ;;  %vm11942_vm11 = vmmov %vm11927_vm0  ;;  %v5987_v52 = vld [vmem:[#allocation17 + $0xe0] sm:$0xff] }
 0x50b   :  { %8330 = vmatmul.mubr.msk.f32.vlgmr.msra.gmra.mrb[24].mxu1 %vm3031_vm10, %v4676_v21 }
 0x50c   :  { %8332 = vmatprep.mubr.msk.f32.mxu1 %vm3031_vm10, %v4677_v36  ;;  %8752 = vmatpush3.bf16.msra.mxu1 %v8749_v39 }
 0x50d   :  { %8754 = vmatprep.subr.bf16.mxu1 %v8753_v55 }
 0x50f   :  { %8333 = vmatmul.mubr.msk.f32.gmra.mrb[26].mxu1 %vm3031_vm10, %v4678_v50  ;;  %v5333_v50 = vld [vmem:[#allocation15 + $0x8] sm:$0xff] }
 0x510   :  { %8339 = vmatprep.mubr.msk.f32.mxu1 %vm3031_vm10, %v4786_v6  ;;  %v8772_v6 = vpack.c.bf16 %v5333_v50, %v5332_v1 }
 0x513   :  { %8340 = vmatmul.mubr.msk.f32.vlgmr.msra.gmra.mrb[24].mxu1 %vm3031_vm10, %v4787_v13 }
 0x514   :  { %8342 = vmatprep.mubr.msk.f32.mxu1 %vm3031_vm10, %v4788_v34  ;;  %8756 = vmatpush3.bf16.msra.mxu1 %v8753_v55  ;;  %v5428_v34 = vld [vmem:[#allocation17 + $0x30] sm:$0xff] }
 0x515   :  { %8758 = vmatprep.subr.bf16.mxu1 %v8757_v2  ;;  %v8781_v60 = vpack.c.bf16 %v5429_v4, %v5428_v34  ;;  %v5990_v34 = vld [vmem:[#allocation17 + $0xf8] sm:$0xff] }
 0x517   :  { %8343 = vmatmul.mubr.msk.f32.gmra.mrb[26].mxu1 %vm3031_vm10, %v4789_v62 }
 0x518   :  { %8349 = vmatprep.mubr.msk.f32.mxu1 %vm3031_vm10, %v4897_v54  ;;  %v5418_v54 = vld [vmem:[#allocation17] sm:$0xff] }
 0x51b   :  { %8350 = vmatmul.mubr.msk.f32.vlgmr.msra.gmra.mrb[24].mxu1 %vm3031_vm10, %v4898_v49 }
 0x51c   :  { %8352 = vmatprep.mubr.msk.f32.mxu1 %vm3031_vm10, %v4899_v29  ;;  %8760 = vmatpush3.bf16.msra.mxu1 %v8757_v2  ;;  %v5427_v2 = vld [vmem:[#allocation17 + $0x28] sm:$0xff]  ;;  %v5327_v29 = vand.u32 1, %v11888_v9  ;;  %v5581_v9 = vld [vmem:[#allocation17 + $0x40] sm:$0xff] }
 0x51d   :  { %8762 = vmatprep.subr.bf16.mxu1 %v8761_v16  ;;  %v8778_v13 = vpack.c.bf16 %v5427_v2, %v5426_v43 }
 0x51e   :  { %vm11240_vm14 = vcmp.ge.s32.totalorder %v5327_v29, 1 }
 0x51f   :  { %8353 = vmatmul.mubr.msk.f32.gmra.mrb[26].mxu1 %vm3031_vm10, %v4900_v14  ;;  %v5420_v14 = vld [vmem:[#allocation17 + $0x10] sm:$0xff]  ;;  %vm11249_vm8 = vmand %vm5328_vm3, %vm11240_vm14 }
 0x520   :  { %8359 = vmatprep.mubr.msk.f32.mxu1 %vm3031_vm10, %v11023_v12  ;;  %v5119_v12 = vsel %vm11924_vm15, %v11075_v40, 0.0  ;;  %vm11930_vm15 = vmmov %vm11927_vm0 }
 0x523   :  { %8360 = vmatmul.mubr.msk.f32.vlgmr.msra.gmra.mrb[24].mxu1 %vm3031_vm10, %v5009_v11  ;;  %v5421_v11 = vld [vmem:[#allocation17 + $0x18] sm:$0xff] }
 0x524   :  { %8362 = vmatprep.mubr.msk.f32.mxu1 %vm3031_vm10, %v11033_v32  ;;  %8764 = vmatpush3.bf16.msra.mxu1 %v8761_v16  ;;  %v5121_v32 = vsel %vm10839_vm1, %v11090_v37, 0.0  ;;  %vm3129_vm1 = vcmp.gt.f32.partialorder %v11004_v51, 0.0  ;;  %v5419_v16 = vld [vmem:[#allocation17 + $0x8] sm:$0xff] }
 0x525   :  { %8765 = vmatprep.subr.bf16.mxu1 %v9448_v23  ;;  %v3137_v37 = vsel %vm3129_vm1, %v11004_v51, %v3133_v33  ;;  %v8784_v49 = vpack.c.bf16 %v5419_v16, %v5418_v54  ;;  %vm11259_vm1 = vcmp.lt.s32.totalorder %v5327_v29, 1  ;;  %v6073_v29 = vld [vmem:[#allocation17 + $0x118] sm:$0xff] }
 0x527   :  { %8363 = vmatmul.mubr.msk.f32.gmra.mrb[26].mxu1 %vm3031_vm10, %v5011_v61  ;;  %v8787_v61 = vpack.c.bf16 %v5421_v11, %v5420_v14 }
 0x528   :  { %8369 = vmatprep.mubr.msk.f32.mxu1 %vm3031_vm10, %v5119_v12 }
 0x52b   :  { %8370 = vmatmul.mubr.msk.f32.vlgmr.msra.gmra.mrb[24].mxu1 %vm3031_vm10, %v5120_v31  ;;  %v5582_v31 = vld [vmem:[#allocation17 + $0x48] sm:$0xff] }
 0x52c   :  { %8372 = vmatprep.mubr.msk.f32.mxu1 %vm3031_vm10, %v5121_v32 }
 0x52f   :  { %8373 = vmatmul.mubr.msk.f32.gmra.mrb[26].mxu1 %vm3031_vm10, %v5122_v35  ;;  %vm3130_vm10 = vcmp.gt.f32.partialorder %v11002_v48, 0.0  ;;  %v8790_v35 = vpack.c.bf16 %v5582_v31, %v5581_v9  ;;  %v6168_v9 = vld [vmem:[#allocation18 + $0x20] sm:$0xff]  ;;  %v6169_v31 = vld [vmem:[#allocation18 + $0x28] sm:$0xff] }
 0x530   :  { %8383 = vmatprep.mubr.msk.f32.mxu1 %vm9449_vm12, %v11670_v58  ;;  %v3138_v0 = vsel %vm3130_vm10, %v11002_v48, %v3134_v5  ;;  %v5584_v5 = vld [vmem:[#allocation17 + $0x58] sm:$0xff]  ;;  %vm11935_vm10 = vmmov %vm11927_vm0 }
 0x5fe   :  { %v8371_v38 = vpop.f32.mrb[24].mxu1 }
 0x5ff   :  { %v5234_v40 = vadd.f32 %v8371_v38, %v7468_v10  ;;  %v5203_v42 = vpop.f32.mrb[25].mxu1 }
 0x600   :  { %v5233_v8 = vadd.f32 %v7468_v10, %v5203_v42  ;;  %v5662_v42 = vld [vmem:[#allocation17 + $0x60] sm:$0xff] }
 0x601   :  { %vm5238_vm9 = vcmp.gt.f32.partialorder %v5234_v40, 0.0  ;;  %v5242_v44 = vmul.f32 0.2, %v5234_v40 }
 0x602   :  { %vm5237_vm5 = vcmp.gt.f32.partialorder %v5233_v8, 0.0  ;;  %v5241_v47 = vmul.f32 0.2, %v5233_v8  ;;  %v8374_v63 = vpop.f32.mrb[26].mxu1 }
 0x603   :  { %v5246_v26 = vsel %vm5238_vm9, %v5234_v40, %v5242_v44  ;;  %v5236_v17 = vadd.f32 %v8374_v63, %v7468_v10  ;;  %v5213_v18 = vpop.f32.mrb[27].mxu1  ;;  %vm11268_vm9 = vmand %vm5328_vm3, %vm11259_vm1  ;;  %v5665_v63 = vld [vmem:[#allocation17 + $0x78] sm:$0xff] }
 0x604   :  { %v5250_v39 = vadd.f32 %v5246_v26, %v3138_v0  ;;  %v5245_v45 = vsel %vm5237_vm5, %v5233_v8, %v5241_v47  ;;  %v5235_v46 = vadd.f32 %v7468_v10, %v5213_v18  ;;  %v5583_v10 = vld [vmem:[#allocation17 + $0x50] sm:$0xff]  ;;  %v5663_v8 = vld [vmem:[#allocation17 + $0x68] sm:$0xff]  ;;  %vm11940_vm5 = vmmov %vm11927_vm0 }
 0x605   :  { %v5249_v48 = vadd.f32 %v5245_v45, %v3137_v37  ;;  %vm5240_vm4 = vcmp.gt.f32.partialorder %v5236_v17, 0.0  ;;  %v5244_v51 = vmul.f32 0.2, %v5236_v17  ;;  %v8793_v38 = vpack.c.bf16 %v5584_v5, %v5583_v10  ;;  %v5664_v47 = vld [vmem:[#allocation17 + $0x70] sm:$0xff]  ;;  %v5742_v18 = vld [vmem:[#allocation17 + $0x88] sm:$0xff]  ;;  %v5744_v45 = vld [vmem:[#allocation17 + $0x98] sm:$0xff] }
 0x606   :  { %vm5239_vm2 = vcmp.gt.f32.partialorder %v5235_v46, 0.0  ;;  %v5243_v15 = vmul.f32 0.2, %v5235_v46  ;;  %v8796_v37 = vpack.c.bf16 %v5663_v8, %v5662_v42  ;;  %v8799_v26 = vpack.c.bf16 %v5665_v63, %v5664_v47  ;;  %v6321_v10 = vld [vmem:[#allocation18 + $0x48] sm:$0xff]  ;;  %v6170_v5 = vld [vmem:[#allocation18 + $0x30] sm:$0xff]  ;;  %v6323_v8 = vld [vmem:[#allocation18 + $0x58] sm:$0xff] }
 0x607   :  { %v5248_v27 = vsel %vm5240_vm4, %v5236_v17, %v5244_v51  ;;  %v8766_v41 = vpack.c.bf16 %v5250_v39, %v5249_v48  ;;  %v5741_v17 = vld [vmem:[#allocation17 + $0x80] sm:$0xff]  ;;  %v5743_v39 = vld [vmem:[#allocation17 + $0x90] sm:$0xff]  ;;  %vm11943_vm4 = vmmov %vm11927_vm0 }
 0x608   :  { %v5252_v55 = vadd.f32 %v5248_v27, %v3140_v19  ;;  %v5247_v21 = vsel %vm5239_vm2, %v5235_v46, %v5243_v15  ;;  %v8802_v24 = vpack.c.bf16 %v5742_v18, %v5741_v17  ;;  %v8805_v48 = vpack.c.bf16 %v5744_v45, %v5743_v39  ;;  %v5823_v51 = vld [vmem:[#allocation17 + $0xa0] sm:$0xff]  ;;  %v5824_v15 = vld [vmem:[#allocation17 + $0xa8] sm:$0xff]  ;;  %v5825_v27 = vld [vmem:[#allocation17 + $0xb0] sm:$0xff] }
 0x609   :  { %v5251_v36 = vadd.f32 %v5247_v21, %v3139_v28  ;;  %8767 = vmatpush3.bf16.msra.mxu1 %v8766_v41  ;;  %v8808_v19 = vpack.c.bf16 %v5824_v15, %v5823_v51  ;;  %v5826_v41 = vld [vmem:[#allocation17 + $0xb8] sm:$0xff]  ;;  %v5905_v21 = vld [vmem:[#allocation17 + $0xc0] sm:$0xff]  ;;  %vm5329_vm2 = vcmp.lt.s32.totalorder %v10753_v25, 2  ;;  %v6322_v42 = vld [vmem:[#allocation18 + $0x50] sm:$0xff] }
 0x60a   :  { %8768 = vmatprep.subr.bf16.mxu1 %v9448_v23  ;;  %v6968_v25 = vld [vmem:[#allocation20 + $0x130] sm:$0xff] }
 0x60b   :  { %v8769_v22 = vpack.c.bf16 %v5252_v55, %v5251_v36  ;;  %v8811_v55 = vpack.c.bf16 %v5826_v41, %v5825_v27  ;;  %v5906_v36 = vld [vmem:[#allocation17 + $0xc8] sm:$0xff] }
 0x60c   :  { %v8814_v50 = vpack.c.bf16 %v5906_v36, %v5905_v21 }
 0x60d   :  { %8770 = vmatpush3.bf16.msra.mxu1 %v8769_v22  ;;  %v5907_v22 = vld [vmem:[#allocation17 + $0xd0] sm:$0xff] }
 0x60e   :  { %8771 = vmatprep.subr.bf16.mxu1 %v9448_v23 }
 0x610   :  { %8384 = vmatmul.mubr.msk.f32.vlgmr.msra.gmra.mrb[28].mxu1 %vm11927_vm0, %v5253_v56  ;;  %v5908_v56 = vld [vmem:[#allocation17 + $0xd8] sm:$0xff]  ;;  %vm11303_vm0 = vmand %vm5329_vm2, %vm11240_vm14 }
 0x611   :  { %8773 = vmatpush3.bf16.msra.mxu1 %v8772_v6  ;;  %8394 = vmatprep.mubr.msk.f32.mxu1 %vm9449_vm12, %v11670_v58  ;;  %v8817_v20 = vpack.c.bf16 %v5908_v56, %v5907_v22 }
 0x612   :  { %8774 = vmatprep.subr.bf16.mxu1 %v9448_v23 }
 0x615   :  { %8776 = vmatpush3.bf16.msra.mxu1 %v8775_v57  ;;  %v5988_v57 = vld [vmem:[#allocation17 + $0xe8] sm:$0xff] }
 0x616   :  { %8777 = vmatprep.subr.bf16.mxu1 %v9448_v23  ;;  %v8820_v2 = vpack.c.bf16 %v5988_v57, %v5987_v52  ;;  %v7480_v52 = vld [vmem:[%s11482_s11] ss:$0 sm:$0xff] }
 0x6e3   :  { %v5323_v62 = vpop.f32.mrb[28].mxu1 }
 0x6e4   :  { %5412 = vst.msk [vmem:[#allocation2 + $0x10] sm:$0xff] %vm11928_vm6, %v5323_v62  ;;  %v8385_v30 = vpop.f32.mrb[29].mxu1  ;;  %8395 = vmatmul.mubr.msk.f32.vlgmr.msra.gmra.mrb[30].mxu1 %vm11929_vm7, %v5323_v62  ;;  %vm11946_vm6 = vmmov %vm11943_vm4 }
 0x6e5   :  { %8779 = vmatpush3.bf16.msra.mxu1 %v8778_v13  ;;  %8405 = vmatprep.mubr.msk.f32.mxu1 %vm9449_vm12, %v11670_v58  ;;  %v5989_v13 = vld [vmem:[#allocation17 + $0xf0] sm:$0xff]  ;;  %v6070_v30 = vld [vmem:[#allocation17 + $0x100] sm:$0xff]  ;;  %vm11947_vm7 = vmmov %vm11943_vm4 }
 0x6e6   :  { %8780 = vmatprep.subr.bf16.mxu1 %v9448_v23  ;;  %v8823_v62 = vpack.c.bf16 %v5990_v34, %v5989_v13 }
 0x6e9   :  { %8782 = vmatpush3.bf16.msra.mxu1 %v8781_v60  ;;  %v6071_v60 = vld [vmem:[#allocation17 + $0x108] sm:$0xff] }
 0x6ea   :  { %8783 = vmatprep.subr.bf16.mxu1 %v9448_v23  ;;  %v8826_v16 = vpack.c.bf16 %v6071_v60, %v6070_v30  ;;  %v6163_v30 = vld [vmem:[#allocation18 + $0x8] sm:$0xff]  ;;  %v6478_v60 = vld [vmem:[#allocation18 + $0x80] sm:$0xff] }
 0x6eb   :  { %v5422_v3 = vld [vmem:[#allocation2 + $0xe] sm:$0xff] }
 0x6ec   :  { %v5425_v59 = vsel %vm5328_vm3, %v5422_v3, 0.0  ;;  %v5413_v32 = vld [vmem:[#allocation2 + $0xd] sm:$0xff] }
 0x6ed   :  { %8406 = vmatmul.mubr.msk.f32.vlgmr.msra.gmra.mrb[32].mxu1 %vm11930_vm15, %v5425_v59  ;;  %v5417_v33 = vsel %vm11249_vm8, %v5413_v32, 0.0  ;;  %v5576_v44 = vld [vmem:[#allocation2 + $0xf] sm:$0xff]  ;;  %vm11325_vm15 = vmand %vm5329_vm2, %vm11259_vm1 }
 0x6ee   :  { %8785 = vmatpush3.bf16.msra.mxu1 %v8784_v49  ;;  %8416 = vmatprep.mubr.msk.f32.mxu1 %vm9449_vm12, %v11670_v58  ;;  %v5580_v7 = vsel %vm11268_vm9, %v5576_v44, 0.0  ;;  %v5661_v46 = vsel %vm11240_vm14, %v5576_v44, 0.0  ;;  %v5740_v28 = vld [vmem:[#allocation2 + $0x10] sm:$0xff]  ;;  %v6072_v49 = vld [vmem:[#allocation17 + $0x110] sm:$0xff] }
 0x6ef   :  { %8786 = vmatprep.subr.bf16.mxu1 %v9448_v23  ;;  %v5819_v1 = vld [vmem:[#allocation2 + $0x11] sm:$0xff]  ;;  %v8829_v14 = vpack.c.bf16 %v6073_v29, %v6072_v49  ;;  %v6164_v29 = vld [vmem:[#allocation18 + $0x10] sm:$0xff] }
 0x6f0   :  { %v5822_v6 = vsel %vm11259_vm1, %v5819_v1, 0.0  ;;  %v5904_v4 = vsel %vm11303_vm0, %v5819_v1, 0.0  ;;  %v5983_v54 = vld [vmem:[#allocation2 + $0x12] sm:$0xff] }
 0x6f1   :  { %v5986_v3 = vsel %vm5329_vm2, %v5983_v54, 0.0  ;;  %v6065_v11 = vld [vmem:[#allocation2 + $0x13] sm:$0xff] }
 0x6f2   :  { %8788 = vmatpush3.bf16.msra.mxu1 %v8787_v61  ;;  %v6069_v61 = vsel %vm11325_vm15, %v6065_v11, 0.0  ;;  %v6320_v32 = vld [vmem:[#allocation18 + $0x40] sm:$0xff]  ;;  %v6479_v54 = vld [vmem:[#allocation18 + $0x88] sm:$0xff] }
 0x6f3   :  { %8789 = vmatprep.subr.bf16.mxu1 %v9448_v23  ;;  %v8856_v49 = vpack.c.bf16 %v6479_v54, %v6478_v60  ;;  %v6962_v59 = vld [vmem:[#allocation20 + $0x100] sm:$0xff] }
 0x6f4   :  { %v6966_v54 = vld [vmem:[#allocation20 + $0x120] sm:$0xff] }
 0x6f5   :  { %8417 = vmatmul.mubr.msk.f32.vlgmr.msra.gmra.mrb[34].mxu1 %vm11935_vm10, %v5417_v33  ;;  %vm11950_vm10 = vmmov %vm11943_vm4  ;;  %v6171_v33 = vld [vmem:[#allocation18 + $0x38] sm:$0xff] }
 0x6f6   :  { %8791 = vmatpush3.bf16.msra.mxu1 %v8790_v35  ;;  %8427 = vmatprep.mubr.msk.f32.mxu1 %vm9449_vm12, %v11670_v58  ;;  %v8832_v35 = vpack.c.bf16 %v6169_v31, %v6168_v9  ;;  %v8835_v44 = vpack.c.bf16 %v6171_v33, %v6170_v5  ;;  %v6481_v9 = vld [vmem:[#allocation18 + $0x98] sm:$0xff]  ;;  %v6399_v5 = vld [vmem:[#allocation18 + $0x60] sm:$0xff]  ;;  %v6400_v33 = vld [vmem:[#allocation18 + $0x68] sm:$0xff] }
 0x6f7   :  { %8792 = vmatprep.subr.bf16.mxu1 %v9448_v23 }
 0x6fa   :  { %8794 = vmatpush3.bf16.msra.mxu1 %v8793_v38  ;;  %v8844_v38 = vpack.c.bf16 %v6321_v10, %v6320_v32 }
 0x6fb   :  { %8795 = vmatprep.subr.bf16.mxu1 %v9448_v23 }
 0x6fc   :  { %8845 = vmatpush3.bf16.msra.mxu0 %v8844_v38  ;;  %v6637_v38 = vld [vmem:[#allocation18 + $0xc0] sm:$0xff] }
 0x6fd   :  { %8428 = vmatmul.mubr.msk.f32.vlgmr.msra.gmra.mrb[36].mxu1 %vm11940_vm5, %v5580_v7  ;;  %8846 = vmatprep.subr.bf16.mxu0 %v9448_v23 }
 0x6fe   :  { %8797 = vmatpush3.bf16.msra.mxu1 %v8796_v37  ;;  %8438 = vmatprep.mubr.msk.f32.mxu1 %vm9449_vm12, %v11670_v58  ;;  %v8847_v37 = vpack.c.bf16 %v6323_v8, %v6322_v42  ;;  %v6638_v42 = vld [vmem:[#allocation18 + $0xc8] sm:$0xff]  ;;  %v8850_v8 = vpack.c.bf16 %v6400_v33, %v6399_v5 }
 0x6ff   :  { %8798 = vmatprep.subr.bf16.mxu1 %v9448_v23 }
 0x700   :  { %8848 = vmatpush3.bf16.msra.mxu0 %v8847_v37  ;;  %v6401_v37 = vld [vmem:[#allocation18 + $0x70] sm:$0xff] }
 0x701   :  { %8855 = vmatprep.subr.bf16.mxu0 %v9448_v23 }
 0x702   :  { %8800 = vmatpush3.bf16.msra.mxu1 %v8799_v26 }
 0x703   :  { %8801 = vmatprep.subr.bf16.mxu1 %v9448_v23 }
 0x705   :  { %8439 = vmatmul.mubr.msk.f32.vlgmr.msra.gmra.mrb[38].mxu1 %vm11941_vm13, %v5661_v46  ;;  %vm11951_vm13 = vmmov %vm11943_vm4 }
 0x706   :  { %8803 = vmatpush3.bf16.msra.mxu1 %v8802_v24  ;;  %8449 = vmatprep.mubr.msk.f32.mxu1 %vm9449_vm12, %v11670_v58 }
 0x707   :  { %8804 = vmatprep.subr.bf16.mxu1 %v9448_v23 }
 0x70a   :  { %8806 = vmatpush3.bf16.msra.mxu1 %v8805_v48 }
 0x70b   :  { %8807 = vmatprep.subr.bf16.mxu1 %v9448_v23 }
 0x70d   :  { %8450 = vmatmul.mubr.msk.f32.vlgmr.msra.gmra.mrb[40].mxu1 %vm11942_vm11, %v5740_v28  ;;  %vm11952_vm11 = vmmov %vm11943_vm4 }
 0x70e   :  { %8809 = vmatpush3.bf16.msra.mxu1 %v8808_v19  ;;  %8460 = vmatprep.mubr.msk.f32.mxu1 %vm9449_vm12, %v11670_v58 }
 0x70f   :  { %8810 = vmatprep.subr.bf16.mxu1 %v9448_v23 }
 0x712   :  { %8812 = vmatpush3.bf16.msra.mxu1 %v8811_v55 }
 0x713   :  { %8813 = vmatprep.subr.bf16.mxu1 %v9448_v23 }
 0x715   :  { %8461 = vmatmul.mubr.msk.f32.vlgmr.msra.gmra.mrb[42].mxu1 %vm11943_vm4, %v5822_v6 }
 0x716   :  { %8815 = vmatpush3.bf16.msra.mxu1 %v8814_v50  ;;  %8471 = vmatprep.mubr.msk.f32.mxu1 %vm9449_vm12, %v11670_v58 }
 0x717   :  { %8816 = vmatprep.subr.bf16.mxu1 %v9448_v23 }
 0x71a   :  { %8818 = vmatpush3.bf16.msra.mxu1 %v8817_v20 }
 0x71b   :  { %8819 = vmatprep.subr.bf16.mxu1 %v9448_v23 }
 0x71d   :  { %8472 = vmatmul.mubr.msk.f32.vlgmr.msra.gmra.mrb[44].mxu1 %vm11946_vm6, %v5904_v4 }
 0x71e   :  { %8821 = vmatpush3.bf16.msra.mxu1 %v8820_v2  ;;  %8482 = vmatprep.mubr.msk.f32.mxu1 %vm9449_vm12, %v11670_v58 }
 0x71f   :  { %8822 = vmatprep.subr.bf16.mxu1 %v9448_v23 }
 0x722   :  { %8824 = vmatpush3.bf16.msra.mxu1 %v8823_v62  ;;  %v6162_v62 = vld [vmem:[#allocation18] sm:$0xff] }
 0x723   :  { %8825 = vmatprep.subr.bf16.mxu1 %v9448_v23 }
 0x725   :  { %8483 = vmatmul.mubr.msk.f32.vlgmr.msra.gmra.mrb[46].mxu1 %vm11947_vm7, %v5986_v3  ;;  %v6165_v3 = vld [vmem:[#allocation18 + $0x18] sm:$0xff] }
 0x726   :  { %8827 = vmatpush3.bf16.msra.mxu1 %v8826_v16  ;;  %8493 = vmatprep.mubr.msk.f32.mxu1 %vm9449_vm12, %v11670_v58  ;;  %v8838_v16 = vpack.c.bf16 %v6163_v30, %v6162_v62  ;;  %v6965_v30 = vld [vmem:[#allocation20 + $0x118] sm:$0xff] }
 0x727   :  { %8828 = vmatprep.subr.bf16.mxu1 %v9448_v23 }
 0x72a   :  { %8830 = vmatpush3.bf16.msra.mxu1 %v8829_v14  ;;  %v6480_v14 = vld [vmem:[#allocation18 + $0x90] sm:$0xff] }
 0x72b   :  { %8831 = vmatprep.subr.bf16.mxu1 %v9448_v23  ;;  %v8859_v10 = vpack.c.bf16 %v6481_v9, %v6480_v14 }
 0x72d   :  { %8494 = vmatmul.mubr.msk.f32.vlgmr.msra.gmra.mrb[48].mxu1 %vm11950_vm10, %v6069_v61  ;;  %vm6977_vm10 = vcmask 523264  }
 0x72e   :  { %8504 = vmatprep.mubr.msk.f32.mxu1 %vm9449_vm12, %v11670_v58  ;;  %8833 = vmatpush3.bf16.msra.mxu1 %v8832_v35  ;;  %v8841_v35 = vpack.c.bf16 %v6165_v3, %v6164_v29  ;;  %v6969_v29 = vld [vmem:[#allocation20 + $0x138] sm:$0xff] }
 0x72f   :  { %8834 = vmatprep.subr.bf16.mxu1 %v9448_v23  ;;  %v8895_v3 = vpack.c.bf16 %v6969_v29, %v6968_v25  ;;  %v7150_v25 = vld [vmem:[%s11490_s19 + $0x20] sm:$0xff]  ;;  %v7151_v29 = vld [vmem:[%s11490_s19 + $0x28] sm:$0xff] }
 0x732   :  { %8836 = vmatpush3.bf16.msra.mxu1 %v8835_v44  ;;  %v8868_v44 = vpack.c.bf16 %v6638_v42, %v6637_v38 }
 0x733   :  { %8837 = vmatprep.subr.bf16.mxu1 %v9448_v23 }
 0x7b7   :  { %v11339_v47 = vpop.f32.mrb[30].mxu1 }
 0x7b8   :  { %v8396_v63 = vpop.f32.mrb[31].mxu1 }
 0x7b9   :  { %v6402_v63 = vld [vmem:[#allocation18 + $0x78] sm:$0xff] }
 0x7c0   :  { %v5499_v7 = vpop.f32.mrb[32].mxu1 }
 0x7c1   :  { %v8407_v26 = vpop.f32.mrb[33].mxu1 }
 0x7c2   :  { %v6640_v26 = vld [vmem:[#allocation18 + $0xd8] sm:$0xff] }
 0x7c8   :  { %v5572_v17 = vpop.f32.mrb[34].mxu1 }
 0x7c9   :  { %v5573_v18 = vadd.f32 %v5572_v17, %v5499_v7  ;;  %v8418_v24 = vpop.f32.mrb[35].mxu1  ;;  %v6639_v7 = vld [vmem:[#allocation18 + $0xd0] sm:$0xff] }
 0x7ca   :  { %v8853_v24 = vpack.c.bf16 %v6402_v63, %v6401_v37 }
 0x7d0   :  { %v5654_v39 = vpop.f32.mrb[36].mxu1 }
 0x7d1   :  { %v5658_v45 = vadd.f32 %v5654_v39, %v5573_v18  ;;  %v8429_v46 = vpop.f32.mrb[37].mxu1  ;;  %v8871_v39 = vpack.c.bf16 %v6640_v26, %v6639_v7 }
 0x7d2   :  { %v6559_v46 = vld [vmem:[#allocation18 + $0xa8] sm:$0xff] }
 0x7d8   :  { %v5735_v48 = vpop.f32.mrb[38].mxu1 }
 0x7d9   :  { %v5739_v51 = vadd.f32 %v5735_v48, %v5658_v45  ;;  %v8440_v15 = vpop.f32.mrb[39].mxu1  ;;  %v6558_v45 = vld [vmem:[#allocation18 + $0xa0] sm:$0xff] }
 0x7da   :  { %v6797_v48 = vld [vmem:[#allocation18 + $0x100] sm:$0xff]  ;;  %v8862_v15 = vpack.c.bf16 %v6559_v46, %v6558_v45 }
 0x7e0   :  { %v5814_v19 = vpop.f32.mrb[40].mxu1 }
 0x7e1   :  { %v5818_v27 = vadd.f32 %v5814_v19, %v5739_v51  ;;  %v8451_v41 = vpop.f32.mrb[41].mxu1  ;;  %v6798_v51 = vld [vmem:[#allocation18 + $0x108] sm:$0xff] }
 0x7e2   :  { %v8880_v19 = vpack.c.bf16 %v6798_v51, %v6797_v48  ;;  %v6561_v41 = vld [vmem:[#allocation18 + $0xb8] sm:$0xff]  ;;  %v7490_v48 = vld [vmem:[%s11484_s13] ss:$0 sm:$0xff] }
 0x7e8   :  { %v5896_v28 = vpop.f32.mrb[42].mxu1 }
 0x7e9   :  { %v5900_v55 = vadd.f32 %v5896_v28, %v5818_v27  ;;  %v8462_v21 = vpop.f32.mrb[43].mxu1  ;;  %v6560_v27 = vld [vmem:[#allocation18 + $0xb0] sm:$0xff] }
 0x7ea   :  { %v6799_v28 = vld [vmem:[#allocation18 + $0x110] sm:$0xff] }
 0x7f0   :  { %v5978_v36 = vpop.f32.mrb[44].mxu1 }
 0x7f1   :  { %v5982_v1 = vadd.f32 %v5978_v36, %v5900_v55  ;;  %v8473_v50 = vpop.f32.mrb[45].mxu1  ;;  %v6800_v55 = vld [vmem:[#allocation18 + $0x118] sm:$0xff] }
 0x7f2   :  { %v8883_v50 = vpack.c.bf16 %v6800_v55, %v6799_v28  ;;  %v6887_v55 = vld [vmem:[%s11485_s14] sm:$0x3] }
 0x7f8   :  { %v6060_v22 = vpop.f32.mrb[46].mxu1 }
 0x7f9   :  { %v6064_v56 = vadd.f32 %v6060_v22, %v5982_v1  ;;  %v8484_v6 = vpop.f32.mrb[47].mxu1  ;;  %v8865_v1 = vpack.c.bf16 %v6561_v41, %v6560_v27  ;;  %v6717_v22 = vld [vmem:[#allocation18 + $0xe0] sm:$0xff] }
 0x7fa   :  { %v6719_v6 = vld [vmem:[#allocation18 + $0xf0] sm:$0xff] }
 0x800   :  { %v6143_v20 = vpop.f32.mrb[48].mxu1 }
 0x801   :  { %v6147_v57 = vadd.f32 %v6143_v20, %v6064_v56  ;;  %v8495_v2 = vpop.f32.mrb[49].mxu1  ;;  %v6718_v56 = vld [vmem:[#allocation18 + $0xe8] sm:$0xff]  ;;  %v6720_v20 = vld [vmem:[#allocation18 + $0xf8] sm:$0xff] }
 0x802   :  { %v8874_v43 = vpack.c.bf16 %v6718_v56, %v6717_v22  ;;  %v8877_v2 = vpack.c.bf16 %v6720_v20, %v6719_v6  ;;  %v7057_v22 = vld [vmem:[#allocation21 + $0x118] sm:$0xff]  ;;  %v7058_v56 = vld [vmem:[#allocation21 + $0x120] sm:$0xff] }
 0x803   :  { %v6155_v13 = vadd.f32 %v7480_v52, %v6147_v57 }
 0x805   :  { %vm6156_vm5 = vcmp.gt.f32.partialorder %v6155_v13, 0.0  ;;  %v6157_v34 = vmul.f32 0.2, %v6155_v13 }
 0x807   :  { %v6158_v4 = vsel %vm6156_vm5, %v6155_v13, %v6157_v34  ;;  %v6963_v34 = vld [vmem:[#allocation20 + $0x108] sm:$0xff] }
 0x808   :  { %6159 = vst.msk [vmem:[#allocation2 + $0x10] sm:$0xff] %vm11951_vm13, %v6158_v4  ;;  %v6964_v4 = vld [vmem:[#allocation20 + $0x110] sm:$0xff]  ;;  %v8886_v62 = vpack.c.bf16 %v6963_v34, %v6962_v59  ;;  %v7148_v59 = vld [vmem:[%s11490_s19 + $0x10] sm:$0xff]  ;;  %vm7227_vm13 = vcmask 254976  }
 0x809   :  { %v8889_v60 = vpack.c.bf16 %v6965_v30, %v6964_v4 }
 0x80f   :  { %v6166_v11 = vld [vmem:[#allocation2 + $0xe] sm:$0xff] }
 0x810   :  { %v6318_v61 = vld [vmem:[#allocation2 + $0xf] sm:$0xff]  ;;  %v6167_v31 = vsel %vm5328_vm3, %v6166_v11, 0.0  ;;  %vm11953_vm3 = vmmov %vm11943_vm4 }
 0x811   :  { %v6319_v32 = vsel %vm11268_vm9, %v6318_v61, 0.0  ;;  %8505 = vmatmul.mubr.msk.f32.vlgmr.msra.gmra.mrb[50].mxu1 %vm11952_vm11, %v6167_v31  ;;  %v6160_v0 = vld [vmem:[#allocation2 + $0xd] sm:$0xff]  ;;  %vm11954_vm9 = vmmov %vm11953_vm3  ;;  %v6398_v21 = vsel %vm11240_vm14, %v6318_v61, 0.0 }
 0x812   :  { %8527 = vmatmul.mubr.msk.f32.vlgmr.msra.gmra.mrb[20].mxu0 %vm11943_vm4, %v6319_v32  ;;  %8839 = vmatpush3.bf16.msra.mxu1 %v8838_v16  ;;  %v6161_v17 = vsel %vm11249_vm8, %v6160_v0, 0.0  ;;  %v6477_v18 = vld [vmem:[#allocation2 + $0x10] sm:$0xff]  ;;  %vm11955_vm8 = vmmov %vm11953_vm3 }
 0x813   :  { %8857 = vmatpush3.bf16.msra.mxu0 %v8856_v49  ;;  %8840 = vmatprep.subr.bf16.mxu1 %v9448_v23  ;;  %v6556_v53 = vld [vmem:[#allocation2 + $0x11] sm:$0xff]  ;;  %vm11956_vm6 = vmmov %vm11953_vm3 }
 0x814   :  { %8858 = vmatprep.subr.bf16.mxu0 %v9448_v23  ;;  %8515 = vmatprep.mubr.msk.f32.mxu1 %vm9449_vm12, %v11670_v58  ;;  %v6636_v36 = vsel %vm11303_vm0, %v6556_v53, 0.0  ;;  %v6795_v12 = vld [vmem:[#allocation2 + $0x13] sm:$0xff]  ;;  %v6557_v52 = vsel %vm11259_vm1, %v6556_v53, 0.0  ;;  %vm11957_vm14 = vmmov %vm11953_vm3  ;;  %v5410_v53 = vmul.f32 0.2, %v11339_v47 }
 0x815   :  { %8548 = vmatprep.mubr.msk.f32.mxu0 %vm9449_vm12, %v11670_v58  ;;  %v6796_v57 = vsel %vm11325_vm15, %v6795_v12, 0.0  ;;  %vm11958_vm0 = vmmov %vm11953_vm3  ;;  %v6715_v13 = vld [vmem:[#allocation2 + $0x12] sm:$0xff]  ;;  %vm6888_vm15 = vcmask 64512  }
 0x816   :  { %8842 = vmatpush3.bf16.msra.mxu1 %v8841_v35  ;;  %v6716_v40 = vsel %vm5329_vm2, %v6715_v13, 0.0  ;;  %vm11959_vm1 = vmmov %vm11958_vm0  ;;  %v6967_v16 = vld [vmem:[#allocation20 + $0x128] sm:$0xff]  ;;  %vm5409_vm2 = vcmp.gt.f32.partialorder %v11339_v47, 0.0  ;;  %v7146_v13 = vld [vmem:[%s11490_s19] sm:$0xff] }
 0x817   :  { %8860 = vmatpush3.bf16.msra.mxu0 %v8859_v10  ;;  %8849 = vmatprep.subr.bf16.mxu1 %v9448_v23  ;;  %v8892_v49 = vpack.c.bf16 %v6967_v16, %v6966_v54  ;;  %v5411_v27 = vsel %vm5409_vm2, %v11339_v47, %v5410_v53  ;;  %v7059_v12 = vld [vmem:[#allocation21 + $0x128] sm:$0xff] }
 0x818   :  { %8867 = vmatprep.subr.bf16.mxu0 %v9448_v23 }
 0x819   :  { %8516 = vmatmul.mubr.msk.f32.vlgmr.msra.gmra.mrb[52].mxu1 %vm11953_vm3, %v6161_v17 }
 0x81a   :  { %8549 = vmatmul.mubr.msk.f32.vlgmr.msra.gmra.mrb[22].mxu0 %vm11954_vm9, %v6477_v18  ;;  %8851 = vmatpush3.bf16.msra.mxu1 %v8850_v8 }
 0x81b   :  { %8869 = vmatpush3.bf16.msra.mxu0 %v8868_v44  ;;  %8852 = vmatprep.subr.bf16.mxu1 %v9448_v23 }
 0x81c   :  { %8870 = vmatprep.subr.bf16.mxu0 %v9448_v23  ;;  %8537 = vmatprep.mubr.msk.f32.mxu1 %vm9449_vm12, %v11670_v58 }
 0x81d   :  { %8570 = vmatprep.mubr.msk.f32.mxu0 %vm9449_vm12, %v11670_v58 }
 0x81e   :  { %8854 = vmatpush3.bf16.msra.mxu1 %v8853_v24 }
 0x81f   :  { %8872 = vmatpush3.bf16.msra.mxu0 %v8871_v39  ;;  %8861 = vmatprep.subr.bf16.mxu1 %v9448_v23 }
 0x820   :  { %8879 = vmatprep.subr.bf16.mxu0 %v9448_v23 }
 0x821   :  { %8538 = vmatmul.mubr.msk.f32.vlgmr.msra.gmra.mrb[54].mxu1 %vm11955_vm8, %v6398_v21  ;;  %v7054_v21 = vld [vmem:[#allocation21 + $0x100] sm:$0xff] }
 0x822   :  { %8571 = vmatmul.mubr.msk.f32.vlgmr.msra.gmra.mrb[24].mxu0 %vm11956_vm6, %v6636_v36  ;;  %8863 = vmatpush3.bf16.msra.mxu1 %v8862_v15  ;;  %v7055_v36 = vld [vmem:[#allocation21 + $0x108] sm:$0xff] }
 0x823   :  { %8881 = vmatpush3.bf16.msra.mxu0 %v8880_v19  ;;  %8864 = vmatprep.subr.bf16.mxu1 %v9448_v23 }
 0x824   :  { %8882 = vmatprep.subr.bf16.mxu0 %v9448_v23  ;;  %8559 = vmatprep.mubr.msk.f32.mxu1 %vm9449_vm12, %v11670_v58 }
 0x825   :  { %8592 = vmatprep.mubr.msk.f32.mxu0 %vm9449_vm12, %v11670_v58 }
 0x826   :  { %8866 = vmatpush3.bf16.msra.mxu1 %v8865_v1  ;;  %v7056_v1 = vld [vmem:[#allocation21 + $0x110] sm:$0xff] }
 0x827   :  { %8884 = vmatpush3.bf16.msra.mxu0 %v8883_v50  ;;  %8873 = vmatprep.subr.bf16.mxu1 %v9448_v23  ;;  %v8898_v50 = vpack.c.bf16 %v7055_v36, %v7054_v21  ;;  %v8901_v47 = vpack.c.bf16 %v7057_v22, %v7056_v1 }
 0x828   :  { %8885 = vmatprep.subr.bf16.mxu0 %v9448_v23 }
 0x829   :  { %8560 = vmatmul.mubr.msk.f32.vlgmr.msra.gmra.mrb[56].mxu1 %vm11957_vm14, %v6557_v52  ;;  %v7060_v52 = vld [vmem:[#allocation21 + $0x130] sm:$0xff] }
 0x82a   :  { %8593 = vmatmul.mubr.msk.f32.vlgmr.msra.gmra.mrb[26].mxu0 %vm11958_vm0, %v6796_v57  ;;  %8875 = vmatpush3.bf16.msra.mxu1 %v8874_v43  ;;  %v8904_v43 = vpack.c.bf16 %v7059_v12, %v7058_v56  ;;  %v7061_v57 = vld [vmem:[#allocation21 + $0x138] sm:$0xff] }
 0x82b   :  { %8581 = vmatprep.mubr.msk.f32.mxu1 %vm9449_vm12, %v11670_v58  ;;  %8876 = vmatprep.subr.bf16.mxu1 %v9448_v23 }
 0x82c   :  { %8616 = vmatprep.mubr.msk.f32.mxu0 %vm9449_vm12, %v11670_v58  ;;  %8887 = vmatpush3.bf16.msra.mxu0 %v8886_v62  ;;  %v7492_v62 = vld [vmem:[%s11487_s16] ss:$0 sm:$0xff] }
 0x82d   :  { %8888 = vmatprep.subr.bf16.mxu0 %v9448_v23 }
 0x82e   :  { %8878 = vmatpush3.bf16.msra.mxu1 %v8877_v2  ;;  %v8907_v2 = vpack.c.bf16 %v7061_v57, %v7060_v52 }
 0x82f   :  { %8595 = vmatprep.subr.mxu1 %v11670_v58 }
 0x830   :  { %8890 = vmatpush3.bf16.msra.mxu0 %v8889_v60 }
 0x831   :  { %8582 = vmatmul.mubr.msk.f32.vlgmr.msra.gmra.mrb[58].mxu1 %vm11959_vm1, %v6716_v40  ;;  %8891 = vmatprep.subr.bf16.mxu0 %v9448_v23  ;;  %v7147_v40 = vld [vmem:[%s11490_s19 + $0x8] sm:$0xff] }
 0x832   :  { %8597 = vmatprep.mubr.msk.f32.mxu1 %vm9449_vm12, %v11670_v58  ;;  %v8910_v34 = vpack.c.bf16 %v7147_v40, %v7146_v13 }
 0x834   :  { %8893 = vmatpush3.bf16.msra.mxu0 %v8892_v49 }
 0x835   :  { %8894 = vmatprep.subr.bf16.mxu0 %v9448_v23 }
 0x838   :  { %8896 = vmatpush3.bf16.msra.mxu0 %v8895_v3  ;;  %v8916_v3 = vpack.c.bf16 %v7151_v29, %v7150_v25 }
 0x839   :  { %8909 = vmatprep.subr.bf16.mxu0 %v9448_v23 }
 0x8e4   :  { %v6241_v14 = vpop.f32.mrb[50].mxu1 }
 0x8e5   :  { %v6393_v11 = vpop.f32.mrb[20].mxu0  ;;  %v8506_v61 = vpop.f32.mrb[51].mxu1 }
 0x8e6   :  { %v8528_v9 = vpop.f32.mrb[21].mxu0 }
 0x8e7   :  { %v7494_v9 = vld [vmem:[%s11960_s20] ss:$0 sm:$0xff] }
 0x8ec   :  { %v6314_v31 = vpop.f32.mrb[52].mxu1 }
 0x8ed   :  { %v6551_v32 = vpop.f32.mrb[22].mxu0  ;;  %v6315_v35 = vadd.f32 %v6314_v31, %v6241_v14  ;;  %v8517_v10 = vpop.f32.mrb[53].mxu1  ;;  %v7152_v14 = vld [vmem:[%s11490_s19 + $0x30] sm:$0xff] }
 0x8ee   :  { %v8550_v5 = vpop.f32.mrb[23].mxu0 }
 0x8ef   :  { %v6397_v33 = vadd.f32 %v6393_v11, %v6315_v35  ;;  %v7153_v11 = vld [vmem:[%s11490_s19 + $0x38] sm:$0xff] }
 0x8f0   :  { %v8919_v61 = vpack.c.bf16 %v7153_v11, %v7152_v14 }
 0x8f4   :  { %v6472_v38 = vpop.f32.mrb[54].mxu1 }
 0x8f5   :  { %v6710_v42 = vpop.f32.mrb[24].mxu0  ;;  %v6476_v0 = vadd.f32 %v6472_v38, %v6397_v33  ;;  %v8539_v8 = vpop.f32.mrb[55].mxu1 }
 0x8f6   :  { %v8572_v44 = vpop.f32.mrb[25].mxu0 }
 0x8f7   :  { %v6555_v37 = vadd.f32 %v6551_v32, %v6476_v0 }
 0x8fc   :  { %v6631_v63 = vpop.f32.mrb[56].mxu1 }
 0x8fd   :  { %v6870_v7 = vpop.f32.mrb[26].mxu0  ;;  %v6635_v26 = vadd.f32 %v6631_v63, %v6555_v37  ;;  %v8561_v17 = vpop.f32.mrb[57].mxu1 }
 0x8fe   :  { %v8594_v18 = vpop.f32.mrb[27].mxu0 }
 0x8ff   :  { %v6714_v24 = vadd.f32 %v6710_v42, %v6635_v26 }
 0x904   :  { %v6790_v39 = vpop.f32.mrb[58].mxu1 }
 0x905   :  { %v6794_v45 = vadd.f32 %v6790_v39, %v6714_v24  ;;  %v8583_v46 = vpop.f32.mrb[59].mxu1 }
 0x907   :  { %v6874_v51 = vadd.f32 %v6870_v7, %v6794_v45 }
 0x909   :  { %v6882_v15 = vadd.f32 %v7490_v48, %v6874_v51 }
 0x90b   :  { %vm6883_vm7 = vcmp.gt.f32.partialorder %v6882_v15, 0.0  ;;  %v6884_v19 = vmul.f32 0.2, %v6882_v15 }
 0x90d   :  { %v6885_v41 = vsel %vm6883_vm7, %v6882_v15, %v6884_v19 }
 0x90e   :  { %v6886_v28 = vadd.f32 %v6885_v41, %v5411_v27 }
 0x910   :  { %8596 = vmatpush3.msra.mxu1 %v6886_v28 }
 0x911   :  { %8598 = vmatmul.mubr.msk.f32.vlgmr.msra.gmra.mrb[60].mxu1 %vm6888_vm15, %v6887_v55  ;;  %8897 = vmatprep.subr.bf16.mxu1 %v9448_v23 }
 0x912   :  { %8635 = vmatprep.mubr.msk.f32.mxu1 %vm9449_vm12, %v11670_v58  ;;  %8899 = vmatpush3.bf16.msra.mxu1 %v8898_v50 }
 0x913   :  { %8900 = vmatprep.subr.bf16.mxu1 %v9448_v23 }
 0x916   :  { %8902 = vmatpush3.bf16.msra.mxu1 %v8901_v47 }
 0x917   :  { %8903 = vmatprep.subr.bf16.mxu1 %v9448_v23 }
 0x91a   :  { %8905 = vmatpush3.bf16.msra.mxu1 %v8904_v43 }
 0x91b   :  { %8906 = vmatprep.subr.bf16.mxu1 %v9448_v23 }
 0x91e   :  { %8908 = vmatpush3.bf16.msra.mxu1 %v8907_v2 }
 0x9e4   :  { %v6958_v6 = vpop.f32.mrb[60].mxu1 }
 0x9e5   :  { %8617 = vmatmul.mubr.msk.f32.vlgmr.msra.gmra.mrb[28].mxu0 %vm6977_vm10, %v6958_v6  ;;  %v8599_v20 = vpop.f32.mrb[61].mxu1 }
 0x9e6   :  { %8654 = vmatprep.mubr.msk.f32.mxu0 %vm9449_vm12, %v11670_v58  ;;  %v7149_v58 = vld [vmem:[%s11490_s19 + $0x18] sm:$0xff]  ;;  %8911 = vmatpush3.bf16.msra.mxu0 %v8910_v34  ;;  %s9395_s19 = scalar_lea.vmem %s7236_s26, 32 }
 0x9e7   :  { %v8913_v4 = vpack.c.bf16 %v7149_v58, %v7148_v59  ;;  %8912 = vmatprep.subr.bf16.mxu0 %v9448_v23  ;;  %p9396_p12 = scmp.ne.s32.totalorder %s7236_s26, %s9395_s19  ;;  %p9401_p0 = scmp.lt.s32.totalorder %s9395_s19, %s9395_s19 }
 0x9e9   :  { %p9402_p1 = por %p9401_p0, %p9400_p13 }
 0x9ea   :  { %8914 = vmatpush3.bf16.msra.mxu0 %v8913_v4 }
 0x9eb   :  { %8915 = vmatprep.subr.bf16.mxu0 %v9448_v23  ;;  %p9403_p2 = pnand %p9402_p1, %p9396_p12 }
 0x9ee   :  { %8917 = vmatpush3.bf16.msra.mxu0 %v8916_v3 }
 0x9ef   :  { %8918 = vmatprep.subr.bf16.mxu0 %v9448_v23 }
 0x9f2   :  { %8920 = vmatpush3.bf16.msra.mxu0 %v8919_v61 }
 0xab8   :  { %v7047_v30 = vpop.f32.mrb[28].mxu0 }
 0xab9   :  { %v7048_v60 = vadd.f32 %v7492_v62, %v7047_v30  ;;  %v8618_v54 = vpop.f32.mrb[29].mxu0 }
 0xabb   :  { %vm7051_vm12 = vcmp.gt.f32.partialorder %v7048_v60, 0.0  ;;  %v7052_v16 = vmul.f32 0.2, %v7048_v60 }
 0xabd   :  { %v7053_v49 = vsel %vm7051_vm12, %v7048_v60, %v7052_v16 }
 0xabe   :  { %8636 = vmatmul.mubr.msk.f32.vlgmr.msra.gmra.mrb[62].mxu1 %vm6977_vm10, %v7053_v49 }
 0xb91   :  { %v7138_v31 = vpop.f32.mrb[62].mxu1 }
 0xb92   :  { %v7139_v32 = vadd.f32 %v7494_v9, %v7138_v31  ;;  %v8637_v35 = vpop.f32.mrb[63].mxu1 }
 0xb94   :  { %vm7142_vm5 = vcmp.gt.f32.partialorder %v7139_v32, 0.0  ;;  %v7143_v10 = vmul.f32 0.2, %v7139_v32 }
 0xb96   :  { %v7144_v23 = vsel %vm7142_vm5, %v7139_v32, %v7143_v10 }
 0xb97   :  { %v7145_v5 = vadd.f32 %v7144_v23, %v6958_v6 }
 0xb99   :  { %8655 = vmatmul.mubr.msk.f32.vlgmr.msra.gmra.mrb[30].mxu0 %vm6977_vm10, %v7145_v5 }
 0xc6c   :  { %v7223_v33 = vpop.f32.mrb[30].mxu0 }
 0xc6d   :  { %v8656_v38 = vpop.f32.mrb[31].mxu0  ;;  %7228 = vst.msk [vmem:[#allocation23] sm:$0x3] %vm7227_vm13, %v7223_v33 }
 0xc6e   :  { %9406 = shalt.err (!%p9403_p2)
}
 0xc6f   :  { %s11961_s23 = sld [smem:[#allocation60_spill]] }
 0xc75   :  { %s9407_s11 = scalar_lea.hbm %s11961_s23, 32 }
 0xc76   :  { %p9408_p3 = scmp.ne.s32.totalorder %s11961_s23, %s9407_s11  ;;  %p9411_p4 = scmp.lt.u32.totalorder %s9407_s11, %s11961_s23 }
 0xc78   :  { %p9413_p5 = pnand %p9411_p4, %p9408_p3 }
 0xc7a   :  { %9416 = shalt.err (!%p9413_p5)
}
 0xc7b   :  { %7238 = dma.vmem_to_hbm [thread:$0]  %s7236_s26, 32, %s11961_s23, [#allocation5]  }
 0xc7c   :  { %9431 = dma.done.wait [#allocation5], 32  }
 0xc7d   :  { %9432 = vsyncadd [#allocation5], 4294967264 }
 0xc7e   :  { %7242 = vsyncpa [#allocation4], 1 }
 0xc7f   :  { %7243 = vsyncpa [#allocation7], 1 }
 0xc80   :  { %7244 = vsyncpa [#allocation10], 1 }
 0xc81   :  { %7245 = vsyncpa [#allocation13], 1 }
 0xc82   :  { %7246 = vsyncpa [#allocation16], 1 }
 0xc83   :  { %7247 = vsyncpa [#allocation19], 1 }
 0xc84   :  { %7248 = vsyncpa [#allocation22], 1 }
 0xc85   :  { %7249 = vsyncpa [#allocation5], 1 }

</bundles_post_ra>
